<compile_context>
chip_gen: v6e
topology: v6e:2x2x1
jax: 0.10.0
libtpu: 0.0.40
codegen_flags: <defaults>
</compile_context>

<pallas_src>
import math
import numpy as np
import jax
import jax.numpy as jnp
from jax.experimental import pallas as pl
from jax.experimental.pallas import tpu as pltpu


# ------------------------------ fused kernel --------------------------------

def _fused_kernel(adjrow_ref, emb_ref, cma_ref, cmq_ref, mp1_ref, mp2_ref,
                  gw_ref, gb_ref, w01_ref, w2b_ref, b1_ref, b2_ref,
                  dw_ref, db_ref, out_ref):
    f32 = jnp.float32
    rows = adjrow_ref.shape[0]          # 2 * pairs_per_step * seq
    h = emb_ref.shape[1]
    k = b1_ref.shape[1]
    bp = out_ref.shape[0]               # pairs per grid step
    seq = rows // (2 * bp)

    # ---- GCN layer restricted to the gathered word rows (bf16 MXU, f32 acc) -
    # x = A[word_rows] @ embedding == layer1[word_rows]; padded rows of the
    # gathered adjacency block are zero, so padded x rows are exactly zero.
    x2d = jnp.dot(adjrow_ref[...], emb_ref[...],
                  preferred_element_type=f32)                    # [rows, H] f32
    x4 = x2d.reshape(bp, 2, seq, h)     # (pair, side[Q=0, A=1], pos, H)
    xq = x4[:, 0]                                                # [bp, L, H]
    xa = x4[:, 1]

    # ---- alignment attention, computed once per (Q, A) pair -----------------
    # The A-side score is mathematically the transpose of the Q-side score; it
    # is re-derived with the same contract-last-dim einsum (operands swapped),
    # which is cheaper/safer than a sub-tile (L,L) transpose at L=8.
    def soft_att(x_lhs, x_rhs, col_mask):
        s = jnp.einsum('blh,bmh->blm', x_lhs, x_rhs,
                       preferred_element_type=f32)               # [bp, L, L]
        s = s + (col_mask - 1.0) * 1e30         # mask padded partner columns
        s = s - jnp.max(s, axis=-1, keepdims=True)
        p = jnp.exp(s)
        w = p / jnp.sum(p, axis=-1, keepdims=True)
        return jnp.einsum('blm,bmh->blh', w, x_rhs,
                          preferred_element_type=f32)            # [bp, L, H]

    e_q = soft_att(xq, xa, cma_ref[...])        # EQ (attend over A positions)
    e_a = soft_att(xa, xq, cmq_ref[...])        # EA (attend over Q positions)
    e4 = jnp.concatenate([e_q[:, None], e_a[:, None]], axis=1)   # [bp,2,L,H]

    # ---- gated mix: X_s = mm(1 - diag(g), X) + mm(diag(g), E) ----------------
    # (1 - diag(g)) has ones off-diagonal, so faithfully:
    #   X_s[l] = sum_k X[k] - g_l * X[l] + g_l * E[l]
    g = jax.nn.sigmoid(jnp.sum(x4 * gw_ref[...], axis=-1, keepdims=True)
                       + gb_ref[...])                            # [bp,2,L,1]
    sum_x = jnp.sum(x4, axis=2, keepdims=True)  # padded rows of x are zero
    x_s = sum_x - g * x4 + g * e4

    sub = x4 - x_s
    t2d = jnp.concatenate([sub * sub, x4 * x_s],
                          axis=-1).reshape(rows, 2 * h)          # [rows, 2H]

    # ---- Conv2d encoders as 2-D matmuls (bf16 operands, single weight push) --
    # fs=1 and fs=2-row0 weights are concatenated into one [2H, 2K] matmul.
    t_bf = t2d.astype(jnp.bfloat16)
    pre01 = jnp.dot(t_bf, w01_ref[...], preferred_element_type=f32)  # [rows,2K]
    u2b = jnp.dot(t_bf, w2b_ref[...], preferred_element_type=f32)    # [rows, K]
    # fs=2 needs t[l+1] @ W2_row1: shift the narrow matmul OUTPUT by one row
    # (wrap rows land on positions that mp2 masks; 8x cheaper than shifting t).
    u2b_shift = jnp.concatenate([u2b[1:], u2b[:1]], axis=0)

    enc1 = jnp.maximum(pre01[:, :k] + b1_ref[...], 0.0)              # [rows, K]
    enc2 = jnp.maximum(pre01[:, k:] + u2b_shift + b2_ref[...], 0.0)  # [rows, K]

    # masked max-pool over positions (relu output >= 0, so zeroing pads is exact)
    pool1 = jnp.max((enc1 * mp1_ref[...]).reshape(bp, 2, seq, k), axis=2)
    pool2 = jnp.max((enc2 * mp2_ref[...]).reshape(bp, 2, seq, k), axis=2)

    rex = jnp.maximum(jnp.concatenate([pool1, pool2], axis=-1), 0.0)  # [bp,2,2K]
    re = jnp.concatenate([rex[:, 0, :], rex[:, 1, :]], axis=-1)       # [bp, 4K]

    # ---- dense(4K -> 2) as two VPU row reductions + log-softmax(dim=1) -------
    dw = dw_ref[...]                                                  # [2, 4K]
    db = db_ref[...]                                                  # [1, 2]
    l0 = jnp.sum(re * dw[0:1, :], axis=1, keepdims=True) + db[:, 0:1]
    l1 = jnp.sum(re * dw[1:2, :], axis=1, keepdims=True) + db[:, 1:2]
    m = jnp.maximum(l0, l1)
    lse = m + jnp.log(jnp.exp(l0 - m) + jnp.exp(l1 - m))
    logp = jnp.concatenate([l0 - lse, l1 - lse], axis=1)              # [bp, 2]

    # lane-dense (bp, 128) output slab; wrapper slices columns 0:2.
    out_ref[...] = jnp.concatenate(
        [logp, jnp.zeros((bp, out_ref.shape[1] - 2), f32)], axis=1)


# ------------------------------- model glue ---------------------------------

def gcn_alignment_gate_att_forward(params, adj, doc_att, att_words,
                                   batch_x, batch_y, pairs_per_step=None):
    """Host glue: dict lookups -> tiny int index / mask arrays, a device row
    gather of the adjacency, then one grid-tiled pallas_call.
    Returns [B, 2] log-probabilities."""
    n = adj.shape[0]
    h = params["embedding"].shape[1]
    k = params["conv_w2b"].shape[1]
    bsz = len(batch_x)
    assert len(batch_y) == bsz

    def words_of(v):
        ws = []
        for att in doc_att[str(int(v))]:
            if att == -1:
                continue
            ws.extend(att_words[str(att)])
        return ws

    max_words = max(len(words_of(v)) for v in list(batch_x) + list(batch_y))
    seq = max(8, ((max_words + 7) // 8) * 8)      # sublane-aligned padding

    # ---- host: only small int32 indices + float masks (no one-hot, no N dim)
    word_idx = np.zeros((bsz, 2, seq), np.int32)
    mpos = np.zeros((bsz, 2, seq), np.float32)    # valid positions  (fs=1 pool)
    mpos2 = np.zeros((bsz, 2, seq), np.float32)   # positions < len-1 (fs=2 pool)
    for i, (vq, va) in enumerate(zip(batch_x, batch_y)):
        for s, v in enumerate((vq, va)):
            ws = words_of(v)
            assert len(ws) >= 2, "filter_size=2 conv needs at least 2 words"
            word_idx[i, s, :len(ws)] = ws
            mpos[i, s, :len(ws)] = 1.0
            mpos2[i, s, :len(ws) - 1] = 1.0

    # Gather only the needed adjacency rows on device; since layer1 = A @ E,
    # x = A[rows] @ E == layer1[rows]. Padded rows are zeroed so in-kernel
    # position sums stay exact.  Rows are cast to bf16 for the MXU.
    idx_flat = jnp.asarray(word_idx.reshape(-1))
    valid = jnp.asarray(mpos.reshape(-1, 1))
    adj_rows = (jnp.take(jnp.asarray(adj, jnp.float32), idx_flat, axis=0)
                * valid).astype(jnp.bfloat16)                    # [B*2*L, N]

    mp1 = jnp.asarray(mpos.reshape(-1, 1))                       # [B*2*L, 1]
    mp2 = jnp.asarray(mpos2.reshape(-1, 1))
    cmask_q = jnp.asarray(mpos[:, 0, :][:, None, :])             # [B, 1, L]
    cmask_a = jnp.asarray(mpos[:, 1, :][:, None, :])             # [B, 1, L]

    emb_bf = params["embedding"].astype(jnp.bfloat16)
    w01_bf = params["conv_w01"].astype(jnp.bfloat16)
    w2b_bf = params["conv_w2b"].astype(jnp.bfloat16)

    # ---- pairs per grid step: ~128 matmul rows per step, and an output block
    #      that is sublane-aligned (multiple of 8 rows, or the full batch).
    if pairs_per_step is None:
        target = max(1, 128 // (2 * seq))
        cand = [d for d in range(1, bsz + 1)
                if bsz % d == 0 and d <= target and (d % 8 == 0 or d == bsz)]
        pairs_per_step = max(cand) if cand else bsz
    bp = pairs_per_step
    assert bsz % bp == 0 and (bp % 8 == 0 or bp == bsz)
    grid = (bsz // bp,)
    rows_blk = 2 * bp * seq

    in_specs = [
        pl.BlockSpec((rows_blk, n), lambda i: (i, 0)),       # gathered adj rows (bf16)
        pl.BlockSpec((n, h), lambda i: (0, 0)),              # embedding (bf16)
        pl.BlockSpec((bp, 1, seq), lambda i: (i, 0, 0)),     # valid-A column mask
        pl.BlockSpec((bp, 1, seq), lambda i: (i, 0, 0)),     # valid-Q column mask
        pl.BlockSpec((rows_blk, 1), lambda i: (i, 0)),       # fs=1 pool mask
        pl.BlockSpec((rows_blk, 1), lambda i: (i, 0)),       # fs=2 pool mask
        pl.BlockSpec((1, h), lambda i: (0, 0)),              # gate weight
        pl.BlockSpec((1, 1), lambda i: (0, 0)),              # gate bias (=3)
        pl.BlockSpec((2 * h, 2 * k), lambda i: (0, 0)),      # [W_fs1 | W_fs2_r0] (bf16)
        pl.BlockSpec((2 * h, k), lambda i: (0, 0)),          # W_fs2_row1 (bf16)
        pl.BlockSpec((1, k), lambda i: (0, 0)),              # conv1 bias
        pl.BlockSpec((1, k), lambda i: (0, 0)),              # conv2 bias
        pl.BlockSpec((2, 4 * k), lambda i: (0, 0)),          # dense W
        pl.BlockSpec((1, 2), lambda i: (0, 0)),              # dense b
    ]
    out_specs = pl.BlockSpec((bp, 128), lambda i: (i, 0))

    args = (adj_rows, emb_bf, cmask_a, cmask_q, mp1, mp2,
            params["gate_w"], params["gate_b"], w01_bf, w2b_bf,
            params["conv1_b"], params["conv2_b"],
            params["dense_w"], params["dense_b"])

    # ---- VMEM budget: ~4x the per-step working set, floored at the 32 MiB
    #      scoped default, capped below physical VMEM (64 MiB/TC on v7x).
    def nbytes(shape, itemsize):
        return int(np.prod(shape)) * itemsize
    step_bytes = (
        2 * nbytes((rows_blk, n), 2)               # double-buffered row blocks
        + nbytes((n, h), 2)                        # embedding
        + nbytes((2 * h, 3 * k), 2)                # conv weights
        + 4 * nbytes((rows_blk, 1), 4)             # pool masks (x2 buffers)
        + 4 * nbytes((bp, 1, seq), 4)              # column masks
        + 2 * nbytes((bp, 128), 4)                 # output blocks
        + 8 * nbytes((rows_blk, h), 4)             # x / e / x_s / gate temps
        + 3 * nbytes((rows_blk, 2 * h), 4)         # t and conv temps
        + 3 * nbytes((bp, seq, seq), 4))           # score / softmax temps
    try:
        info = pltpu.get_tpu_info()
        phys_vmem = int(getattr(info, "vmem_capacity_bytes", 64 * 1024 * 1024))
    except Exception:
        phys_vmem = 64 * 1024 * 1024
    vmem_limit = int(min(3 * phys_vmem // 4,
                         max(32 * 1024 * 1024, 4 * step_bytes)))

    out_pad = pl.pallas_call(
        _fused_kernel,
        out_shape=jax.ShapeDtypeStruct((bsz, 128), jnp.float32),
        grid_spec=pltpu.PrefetchScalarGridSpec(
            num_scalar_prefetch=0, grid=grid,
            in_specs=in_specs, out_specs=out_specs),
        compiler_params=pltpu.CompilerParams(
            dimension_semantics=("parallel",),     # shard chunks across 2 TCs on v7x
            vmem_limit_bytes=vmem_limit),
    )(*args)
    return out_pad[:, :2]


# ---------------------------------- main -------------------------------------

if __name__ == "__main__":
    key = jax.random.PRNGKey(0)
    N = 32     # graph nodes == input_dim (featureless GCN)
    H = 32     # hidden_dim
    K = 8      # kernel_num
    B = 16     # batch size (pairs)  -> grid = (2,) with 8 pairs per step
    NATT = 6   # number of attribute buckets

    keys = jax.random.split(key, 10)

    def xavier(k_, shape):
        bound = math.sqrt(6.0 / (shape[0] + shape[1]))
        return jax.random.uniform(k_, shape, jnp.float32, -bound, bound)

    def unif(k_, shape, fan_in):
        bound = 1.0 / math.sqrt(fan_in)
        return jax.random.uniform(k_, shape, jnp.float32, -bound, bound)

    # deterministic row-normalized adjacency
    adj = jax.random.uniform(keys[0], (N, N), dtype=jnp.float32)
    adj = adj / jnp.sum(adj, axis=1, keepdims=True)

    w_fs1 = unif(keys[3], (2 * H, K), 2 * H)
    w_fs2_row0 = unif(keys[4], (2 * H, K), 2 * 2 * H)
    params = {
        "embedding": xavier(keys[1], (N, H)),
        # gate = Sequential(Linear(H, 1), Sigmoid()); bias filled with 3
        "gate_w": unif(keys[2], (1, H), H),
        "gate_b": jnp.full((1, 1), 3.0, jnp.float32),
        # Conv2d encoders pre-reshaped to matmul layout:
        #   conv_w01 = [W_fs1 (2H,K) | W_fs2_row0 (2H,K)],  conv_w2b = W_fs2_row1
        "conv_w01": jnp.concatenate([w_fs1, w_fs2_row0], axis=1),
        "conv_w2b": unif(keys[5], (2 * H, K), 2 * 2 * H),
        "conv1_b": unif(keys[6], (1, K), 2 * H),
        "conv2_b": unif(keys[7], (1, K), 2 * 2 * H),
        # dense = Linear(4K, 2) in PyTorch [out, in] layout
        "dense_w": unif(keys[8], (2, 4 * K), 4 * K),
        "dense_b": unif(keys[9], (1, 2), 4 * K),
    }

    # doc_att: str(node) -> attribute ids (-1 means missing, skipped)
    # att_words: str(att) -> word row indices into layer1
    att_words = {str(a): [int((a * 5 + 3 * j) % N) for j in range(2 + a % 3)]
                 for a in range(NATT)}
    doc_att = {str(i): [i % NATT, -1 if i % 4 == 0 else (2 * i + 1) % NATT]
               for i in range(N)}

    batch_x = list(range(B))
    batch_y = [(i + 7) % N for i in range(B)]

    out = gcn_alignment_gate_att_forward(params, adj, doc_att, att_words,
                                         batch_x, batch_y)
    out = jax.block_until_ready(out)

    assert out.shape == (B, 2) and out.dtype == jnp.float32
    assert bool(jnp.all(jnp.isfinite(out)))
    # log-softmax rows must exponentiate-sum to ~1
    assert bool(jnp.all(jnp.abs(jnp.sum(jnp.exp(out), axis=1) - 1.0) < 1e-4))
    print("KERNEL_OK")
</pallas_src>

<mosaic_0001>
module attributes {stable_mosaic.version = 11 : i64} {
  func.func @_fused_kernel(%arg0: i32, %arg1: memref<128x32xbf16, #tpu.memory_space<vmem>>, %arg2: memref<32x32xbf16, #tpu.memory_space<vmem>>, %arg3: memref<8x1x8xf32, #tpu.memory_space<vmem>>, %arg4: memref<8x1x8xf32, #tpu.memory_space<vmem>>, %arg5: memref<128x1xf32, #tpu.memory_space<vmem>>, %arg6: memref<128x1xf32, #tpu.memory_space<vmem>>, %arg7: memref<1x32xf32, #tpu.memory_space<vmem>>, %arg8: memref<1x1xf32, #tpu.memory_space<vmem>>, %arg9: memref<64x16xbf16, #tpu.memory_space<vmem>>, %arg10: memref<64x8xbf16, #tpu.memory_space<vmem>>, %arg11: memref<1x8xf32, #tpu.memory_space<vmem>>, %arg12: memref<1x8xf32, #tpu.memory_space<vmem>>, %arg13: memref<2x32xf32, #tpu.memory_space<vmem>>, %arg14: memref<1x2xf32, #tpu.memory_space<vmem>>, %arg15: memref<8x128xf32, #tpu.memory_space<vmem>>) attributes {dimension_semantics = [#tpu.dimension_semantics<parallel>], iteration_bounds = array<i64: 2>, scalar_prefetch = 0 : i64, scratch_operands = 0 : i64, tpu.core_type = #tpu.core_type<tc>, window_params = [{transform_indices = @transform_0, window_bounds = array<i64: 128, 32>}, {pipeline_mode = #tpu.pipeline_mode<synchronous>, transform_indices = @transform_1, window_bounds = array<i64: 32, 32>}, {transform_indices = @transform_2, window_bounds = array<i64: 8, 1, 8>}, {transform_indices = @transform_3, window_bounds = array<i64: 8, 1, 8>}, {transform_indices = @transform_4, window_bounds = array<i64: 128, 1>}, {transform_indices = @transform_5, window_bounds = array<i64: 128, 1>}, {pipeline_mode = #tpu.pipeline_mode<synchronous>, transform_indices = @transform_6, window_bounds = array<i64: 1, 32>}, {pipeline_mode = #tpu.pipeline_mode<synchronous>, transform_indices = @transform_7, window_bounds = array<i64: 1, 1>}, {pipeline_mode = #tpu.pipeline_mode<synchronous>, transform_indices = @transform_8, window_bounds = array<i64: 64, 16>}, {pipeline_mode = #tpu.pipeline_mode<synchronous>, transform_indices = @transform_9, window_bounds = array<i64: 64, 8>}, {pipeline_mode = #tpu.pipeline_mode<synchronous>, transform_indices = @transform_10, window_bounds = array<i64: 1, 8>}, {pipeline_mode = #tpu.pipeline_mode<synchronous>, transform_indices = @transform_11, window_bounds = array<i64: 1, 8>}, {pipeline_mode = #tpu.pipeline_mode<synchronous>, transform_indices = @transform_12, window_bounds = array<i64: 2, 32>}, {pipeline_mode = #tpu.pipeline_mode<synchronous>, transform_indices = @transform_13, window_bounds = array<i64: 1, 2>}, {transform_indices = @transform_14, window_bounds = array<i64: 8, 128>}]} {
    %c0 = arith.constant 0 : index
    %c0_0 = arith.constant 0 : index
    %0 = vector.load %arg1[%c0, %c0_0] : memref<128x32xbf16, #tpu.memory_space<vmem>>, vector<128x32xbf16>
    %c0_1 = arith.constant 0 : index
    %c0_2 = arith.constant 0 : index
    %1 = vector.load %arg2[%c0_1, %c0_2] : memref<32x32xbf16, #tpu.memory_space<vmem>>, vector<32x32xbf16>
    %cst = arith.constant dense<0.000000e+00> : vector<128x32xf32>
    %2 = tpu.matmul %0, %1, %cst {dimension_numbers = #tpu.dot_dimension_numbers<[1], [0], [0], [1], [0, 0, 1, 1], [], []>} : vector<128x32xbf16>, vector<32x32xbf16>, vector<128x32xf32> -> vector<128x32xf32>
    %3 = vector.shape_cast %2 : vector<128x32xf32> to vector<8x2x8x32xf32>
    %4 = vector.extract_strided_slice %3 {offsets = [0, 0, 0, 0], sizes = [8, 1, 8, 32], strides = [1, 1, 1, 1]} : vector<8x2x8x32xf32> to vector<8x1x8x32xf32>
    %5 = vector.shape_cast %4 : vector<8x1x8x32xf32> to vector<8x8x32xf32>
    %6 = vector.extract_strided_slice %3 {offsets = [0, 1, 0, 0], sizes = [8, 1, 8, 32], strides = [1, 1, 1, 1]} : vector<8x2x8x32xf32> to vector<8x1x8x32xf32>
    %7 = vector.shape_cast %6 : vector<8x1x8x32xf32> to vector<8x8x32xf32>
    %c0_3 = arith.constant 0 : index
    %c0_4 = arith.constant 0 : index
    %c0_5 = arith.constant 0 : index
    %8 = vector.load %arg3[%c0_3, %c0_4, %c0_5] : memref<8x1x8xf32, #tpu.memory_space<vmem>>, vector<8x1x8xf32>
    "tpu.trace_start"() <{level = 10 : i32, message = "blh,bmh->blm"}> : () -> ()
    %cst_6 = arith.constant dense<0.000000e+00> : vector<8x8x8xf32>
    %9 = tpu.matmul %5, %7, %cst_6 {dimension_numbers = #tpu.dot_dimension_numbers<[2], [2], [1], [1], [0, 0, 0, 1, 1, 1], [0], [0]>} : vector<8x8x32xf32>, vector<8x8x32xf32>, vector<8x8x8xf32> -> vector<8x8x8xf32>
    "tpu.trace_stop"() : () -> ()
    %cst_7 = arith.constant 1.000000e+00 : f32
    %10 = vector.broadcast %cst_7 : f32 to vector<8x1x8xf32>
    %11 = arith.subf %8, %10 : vector<8x1x8xf32>
    %cst_8 = arith.constant 1.000000e+30 : f32
    %12 = vector.broadcast %cst_8 : f32 to vector<8x1x8xf32>
    %13 = arith.mulf %11, %12 : vector<8x1x8xf32>
    %14 = vector.broadcast %13 : vector<8x1x8xf32> to vector<8x8x8xf32>
    %15 = arith.addf %9, %14 : vector<8x8x8xf32>
    %cst_9 = arith.constant dense<0xFF800000> : vector<8x8xf32>
    %16 = vector.multi_reduction <maximumf>, %15, %cst_9 [2] : vector<8x8x8xf32> to vector<8x8xf32>
    %17 = vector.shape_cast %16 : vector<8x8xf32> to vector<8x8x1xf32>
    %18 = vector.broadcast %17 : vector<8x8x1xf32> to vector<8x8x8xf32>
    %19 = arith.subf %15, %18 : vector<8x8x8xf32>
    %20 = math.exp %19 : vector<8x8x8xf32>
    %cst_10 = arith.constant dense<0.000000e+00> : vector<8x8xf32>
    %21 = vector.multi_reduction <add>, %20, %cst_10 [2] : vector<8x8x8xf32> to vector<8x8xf32>
    %22 = vector.shape_cast %21 : vector<8x8xf32> to vector<8x8x1xf32>
    %23 = vector.broadcast %22 : vector<8x8x1xf32> to vector<8x8x8xf32>
    %24 = arith.divf %20, %23 : vector<8x8x8xf32>
    "tpu.trace_start"() <{level = 10 : i32, message = "blm,bmh->blh"}> : () -> ()
    %cst_11 = arith.constant dense<0.000000e+00> : vector<8x8x32xf32>
    %25 = tpu.matmul %24, %7, %cst_11 {dimension_numbers = #tpu.dot_dimension_numbers<[2], [1], [1], [2], [0, 0, 0, 1, 1, 2], [0], [0]>} : vector<8x8x8xf32>, vector<8x8x32xf32>, vector<8x8x32xf32> -> vector<8x8x32xf32>
    "tpu.trace_stop"() : () -> ()
    %c0_12 = arith.constant 0 : index
    %c0_13 = arith.constant 0 : index
    %c0_14 = arith.constant 0 : index
    %26 = vector.load %arg4[%c0_12, %c0_13, %c0_14] : memref<8x1x8xf32, #tpu.memory_space<vmem>>, vector<8x1x8xf32>
    "tpu.trace_start"() <{level = 10 : i32, message = "blh,bmh->blm"}> : () -> ()
    %cst_15 = arith.constant dense<0.000000e+00> : vector<8x8x8xf32>
    %27 = tpu.matmul %7, %5, %cst_15 {dimension_numbers = #tpu.dot_dimension_numbers<[2], [2], [1], [1], [0, 0, 0, 1, 1, 1], [0], [0]>} : vector<8x8x32xf32>, vector<8x8x32xf32>, vector<8x8x8xf32> -> vector<8x8x8xf32>
    "tpu.trace_stop"() : () -> ()
    %cst_16 = arith.constant 1.000000e+00 : f32
    %28 = vector.broadcast %cst_16 : f32 to vector<8x1x8xf32>
    %29 = arith.subf %26, %28 : vector<8x1x8xf32>
    %cst_17 = arith.constant 1.000000e+30 : f32
    %30 = vector.broadcast %cst_17 : f32 to vector<8x1x8xf32>
    %31 = arith.mulf %29, %30 : vector<8x1x8xf32>
    %32 = vector.broadcast %31 : vector<8x1x8xf32> to vector<8x8x8xf32>
    %33 = arith.addf %27, %32 : vector<8x8x8xf32>
    %cst_18 = arith.constant dense<0xFF800000> : vector<8x8xf32>
    %34 = vector.multi_reduction <maximumf>, %33, %cst_18 [2] : vector<8x8x8xf32> to vector<8x8xf32>
    %35 = vector.shape_cast %34 : vector<8x8xf32> to vector<8x8x1xf32>
    %36 = vector.broadcast %35 : vector<8x8x1xf32> to vector<8x8x8xf32>
    %37 = arith.subf %33, %36 : vector<8x8x8xf32>
    %38 = math.exp %37 : vector<8x8x8xf32>
    %cst_19 = arith.constant dense<0.000000e+00> : vector<8x8xf32>
    %39 = vector.multi_reduction <add>, %38, %cst_19 [2] : vector<8x8x8xf32> to vector<8x8xf32>
    %40 = vector.shape_cast %39 : vector<8x8xf32> to vector<8x8x1xf32>
    %41 = vector.broadcast %40 : vector<8x8x1xf32> to vector<8x8x8xf32>
    %42 = arith.divf %38, %41 : vector<8x8x8xf32>
    "tpu.trace_start"() <{level = 10 : i32, message = "blm,bmh->blh"}> : () -> ()
    %cst_20 = arith.constant dense<0.000000e+00> : vector<8x8x32xf32>
    %43 = tpu.matmul %42, %5, %cst_20 {dimension_numbers = #tpu.dot_dimension_numbers<[2], [1], [1], [2], [0, 0, 0, 1, 1, 2], [0], [0]>} : vector<8x8x8xf32>, vector<8x8x32xf32>, vector<8x8x32xf32> -> vector<8x8x32xf32>
    "tpu.trace_stop"() : () -> ()
    %44 = vector.shape_cast %25 : vector<8x8x32xf32> to vector<8x1x8x32xf32>
    %45 = vector.shape_cast %43 : vector<8x8x32xf32> to vector<8x1x8x32xf32>
    %46 = tpu.concatenate %44, %45 in 1 : vector<8x1x8x32xf32>, vector<8x1x8x32xf32> -> vector<8x2x8x32xf32>
    %c0_21 = arith.constant 0 : index
    %c0_22 = arith.constant 0 : index
    %47 = vector.load %arg7[%c0_21, %c0_22] : memref<1x32xf32, #tpu.memory_space<vmem>>, vector<1x32xf32>
    %48 = vector.shape_cast %47 : vector<1x32xf32> to vector<1x1x1x32xf32>
    %49 = vector.broadcast %48 : vector<1x1x1x32xf32> to vector<8x2x8x32xf32>
    %50 = arith.mulf %3, %49 : vector<8x2x8x32xf32>
    %cst_23 = arith.constant dense<0.000000e+00> : vector<8x2x8xf32>
    %51 = vector.multi_reduction <add>, %50, %cst_23 [3] : vector<8x2x8x32xf32> to vector<8x2x8xf32>
    %52 = vector.shape_cast %51 : vector<8x2x8xf32> to vector<8x2x8x1xf32>
    %c0_24 = arith.constant 0 : index
    %c0_25 = arith.constant 0 : index
    %53 = vector.load %arg8[%c0_24, %c0_25] : memref<1x1xf32, #tpu.memory_space<vmem>>, vector<1x1xf32>
    %54 = vector.shape_cast %53 : vector<1x1xf32> to vector<1x1x1x1xf32>
    %55 = vector.broadcast %54 : vector<1x1x1x1xf32> to vector<8x2x8x1xf32>
    %56 = arith.addf %52, %55 : vector<8x2x8x1xf32>
    %57 = arith.negf %56 : vector<8x2x8x1xf32>
    %58 = math.exp %57 : vector<8x2x8x1xf32>
    %cst_26 = arith.constant 1.000000e+00 : f32
    %59 = vector.broadcast %cst_26 : f32 to vector<8x2x8x1xf32>
    %60 = arith.addf %59, %58 : vector<8x2x8x1xf32>
    %61 = arith.divf %59, %60 : vector<8x2x8x1xf32>
    %cst_27 = arith.constant dense<0.000000e+00> : vector<8x2x32xf32>
    %62 = vector.multi_reduction <add>, %3, %cst_27 [2] : vector<8x2x8x32xf32> to vector<8x2x32xf32>
    %63 = vector.shape_cast %62 : vector<8x2x32xf32> to vector<8x2x1x32xf32>
    %64 = vector.broadcast %61 : vector<8x2x8x1xf32> to vector<8x2x8x32xf32>
    %65 = arith.mulf %64, %3 : vector<8x2x8x32xf32>
    %66 = vector.broadcast %63 : vector<8x2x1x32xf32> to vector<8x2x8x32xf32>
    %67 = arith.subf %66, %65 : vector<8x2x8x32xf32>
    %68 = vector.broadcast %61 : vector<8x2x8x1xf32> to vector<8x2x8x32xf32>
    %69 = arith.mulf %68, %46 : vector<8x2x8x32xf32>
    %70 = arith.addf %67, %69 : vector<8x2x8x32xf32>
    %71 = arith.subf %3, %70 : vector<8x2x8x32xf32>
    %72 = arith.mulf %71, %71 : vector<8x2x8x32xf32>
    %73 = arith.mulf %3, %70 : vector<8x2x8x32xf32>
    %74 = tpu.concatenate %72, %73 in 3 : vector<8x2x8x32xf32>, vector<8x2x8x32xf32> -> vector<8x2x8x64xf32>
    %75 = vector.shape_cast %74 : vector<8x2x8x64xf32> to vector<128x64xf32>
    %76 = arith.truncf %75 : vector<128x64xf32> to vector<128x64xbf16>
    %c0_28 = arith.constant 0 : index
    %c0_29 = arith.constant 0 : index
    %77 = vector.load %arg9[%c0_28, %c0_29] : memref<64x16xbf16, #tpu.memory_space<vmem>>, vector<64x16xbf16>
    %cst_30 = arith.constant dense<0.000000e+00> : vector<128x16xf32>
    %78 = tpu.matmul %76, %77, %cst_30 {dimension_numbers = #tpu.dot_dimension_numbers<[1], [0], [0], [1], [0, 0, 1, 1], [], []>} : vector<128x64xbf16>, vector<64x16xbf16>, vector<128x16xf32> -> vector<128x16xf32>
    %c0_31 = arith.constant 0 : index
    %c0_32 = arith.constant 0 : index
    %79 = vector.load %arg10[%c0_31, %c0_32] : memref<64x8xbf16, #tpu.memory_space<vmem>>, vector<64x8xbf16>
    %cst_33 = arith.constant dense<0.000000e+00> : vector<128x8xf32>
    %80 = tpu.matmul %76, %79, %cst_33 {dimension_numbers = #tpu.dot_dimension_numbers<[1], [0], [0], [1], [0, 0, 1, 1], [], []>} : vector<128x64xbf16>, vector<64x8xbf16>, vector<128x8xf32> -> vector<128x8xf32>
    %81 = vector.extract_strided_slice %80 {offsets = [1, 0], sizes = [127, 8], strides = [1, 1]} : vector<128x8xf32> to vector<127x8xf32>
    %82 = vector.extract_strided_slice %80 {offsets = [0, 0], sizes = [1, 8], strides = [1, 1]} : vector<128x8xf32> to vector<1x8xf32>
    %83 = tpu.concatenate %81, %82 in 0 : vector<127x8xf32>, vector<1x8xf32> -> vector<128x8xf32>
    %84 = vector.extract_strided_slice %78 {offsets = [0, 0], sizes = [128, 8], strides = [1, 1]} : vector<128x16xf32> to vector<128x8xf32>
    %c0_34 = arith.constant 0 : index
    %c0_35 = arith.constant 0 : index
    %85 = vector.load %arg11[%c0_34, %c0_35] : memref<1x8xf32, #tpu.memory_space<vmem>>, vector<1x8xf32>
    %86 = vector.broadcast %85 : vector<1x8xf32> to vector<128x8xf32>
    %87 = arith.addf %84, %86 : vector<128x8xf32>
    %cst_36 = arith.constant 0.000000e+00 : f32
    %88 = vector.broadcast %cst_36 : f32 to vector<128x8xf32>
    %89 = arith.maximumf %87, %88 : vector<128x8xf32>
    %90 = vector.extract_strided_slice %78 {offsets = [0, 8], sizes = [128, 8], strides = [1, 1]} : vector<128x16xf32> to vector<128x8xf32>
    %91 = arith.addf %90, %83 : vector<128x8xf32>
    %c0_37 = arith.constant 0 : index
    %c0_38 = arith.constant 0 : index
    %92 = vector.load %arg12[%c0_37, %c0_38] : memref<1x8xf32, #tpu.memory_space<vmem>>, vector<1x8xf32>
    %93 = vector.broadcast %92 : vector<1x8xf32> to vector<128x8xf32>
    %94 = arith.addf %91, %93 : vector<128x8xf32>
    %cst_39 = arith.constant 0.000000e+00 : f32
    %95 = vector.broadcast %cst_39 : f32 to vector<128x8xf32>
    %96 = arith.maximumf %94, %95 : vector<128x8xf32>
    %c0_40 = arith.constant 0 : index
    %c0_41 = arith.constant 0 : index
    %97 = vector.load %arg5[%c0_40, %c0_41] : memref<128x1xf32, #tpu.memory_space<vmem>>, vector<128x1xf32>
    %98 = vector.broadcast %97 : vector<128x1xf32> to vector<128x8xf32>
    %99 = arith.mulf %89, %98 : vector<128x8xf32>
    %100 = vector.shape_cast %99 : vector<128x8xf32> to vector<8x2x8x8xf32>
    %cst_42 = arith.constant dense<0xFF800000> : vector<8x2x8xf32>
    %101 = vector.multi_reduction <maximumf>, %100, %cst_42 [2] : vector<8x2x8x8xf32> to vector<8x2x8xf32>
    %c0_43 = arith.constant 0 : index
    %c0_44 = arith.constant 0 : index
    %102 = vector.load %arg6[%c0_43, %c0_44] : memref<128x1xf32, #tpu.memory_space<vmem>>, vector<128x1xf32>
    %103 = vector.broadcast %102 : vector<128x1xf32> to vector<128x8xf32>
    %104 = arith.mulf %96, %103 : vector<128x8xf32>
    %105 = vector.shape_cast %104 : vector<128x8xf32> to vector<8x2x8x8xf32>
    %cst_45 = arith.constant dense<0xFF800000> : vector<8x2x8xf32>
    %106 = vector.multi_reduction <maximumf>, %105, %cst_45 [2] : vector<8x2x8x8xf32> to vector<8x2x8xf32>
    %107 = tpu.concatenate %101, %106 in 2 : vector<8x2x8xf32>, vector<8x2x8xf32> -> vector<8x2x16xf32>
    %cst_46 = arith.constant 0.000000e+00 : f32
    %108 = vector.broadcast %cst_46 : f32 to vector<8x2x16xf32>
    %109 = arith.maximumf %107, %108 : vector<8x2x16xf32>
    %110 = vector.extract_strided_slice %109 {offsets = [0, 0, 0], sizes = [8, 1, 16], strides = [1, 1, 1]} : vector<8x2x16xf32> to vector<8x1x16xf32>
    %111 = vector.shape_cast %110 : vector<8x1x16xf32> to vector<8x16xf32>
    %112 = vector.extract_strided_slice %109 {offsets = [0, 1, 0], sizes = [8, 1, 16], strides = [1, 1, 1]} : vector<8x2x16xf32> to vector<8x1x16xf32>
    %113 = vector.shape_cast %112 : vector<8x1x16xf32> to vector<8x16xf32>
    %114 = tpu.concatenate %111, %113 in 1 : vector<8x16xf32>, vector<8x16xf32> -> vector<8x32xf32>
    %c0_47 = arith.constant 0 : index
    %c0_48 = arith.constant 0 : index
    %115 = vector.load %arg13[%c0_47, %c0_48] : memref<2x32xf32, #tpu.memory_space<vmem>>, vector<2x32xf32>
    %c0_49 = arith.constant 0 : index
    %c0_50 = arith.constant 0 : index
    %116 = vector.load %arg14[%c0_49, %c0_50] : memref<1x2xf32, #tpu.memory_space<vmem>>, vector<1x2xf32>
    %117 = vector.extract_strided_slice %115 {offsets = [0, 0], sizes = [1, 32], strides = [1, 1]} : vector<2x32xf32> to vector<1x32xf32>
    %118 = vector.broadcast %117 : vector<1x32xf32> to vector<8x32xf32>
    %119 = arith.mulf %114, %118 : vector<8x32xf32>
    %cst_51 = arith.constant dense<0.000000e+00> : vector<8xf32>
    %120 = vector.multi_reduction <add>, %119, %cst_51 [1] : vector<8x32xf32> to vector<8xf32>
    %121 = vector.shape_cast %120 : vector<8xf32> to vector<8x1xf32>
    %122 = vector.extract_strided_slice %116 {offsets = [0, 0], sizes = [1, 1], strides = [1, 1]} : vector<1x2xf32> to vector<1x1xf32>
    %123 = vector.broadcast %122 : vector<1x1xf32> to vector<8x1xf32>
    %124 = arith.addf %121, %123 : vector<8x1xf32>
    %125 = vector.extract_strided_slice %115 {offsets = [1, 0], sizes = [1, 32], strides = [1, 1]} : vector<2x32xf32> to vector<1x32xf32>
    %126 = vector.broadcast %125 : vector<1x32xf32> to vector<8x32xf32>
    %127 = arith.mulf %114, %126 : vector<8x32xf32>
    %cst_52 = arith.constant dense<0.000000e+00> : vector<8xf32>
    %128 = vector.multi_reduction <add>, %127, %cst_52 [1] : vector<8x32xf32> to vector<8xf32>
    %129 = vector.shape_cast %128 : vector<8xf32> to vector<8x1xf32>
    %130 = vector.extract_strided_slice %116 {offsets = [0, 1], sizes = [1, 1], strides = [1, 1]} : vector<1x2xf32> to vector<1x1xf32>
    %131 = vector.broadcast %130 : vector<1x1xf32> to vector<8x1xf32>
    %132 = arith.addf %129, %131 : vector<8x1xf32>
    %133 = arith.maximumf %124, %132 : vector<8x1xf32>
    %134 = arith.subf %124, %133 : vector<8x1xf32>
    %135 = math.exp %134 : vector<8x1xf32>
    %136 = arith.subf %132, %133 : vector<8x1xf32>
    %137 = math.exp %136 : vector<8x1xf32>
    %138 = arith.addf %135, %137 : vector<8x1xf32>
    %139 = math.log %138 : vector<8x1xf32>
    %140 = arith.addf %133, %139 : vector<8x1xf32>
    %141 = arith.subf %124, %140 : vector<8x1xf32>
    %142 = arith.subf %132, %140 : vector<8x1xf32>
    %143 = tpu.concatenate %141, %142 in 1 : vector<8x1xf32>, vector<8x1xf32> -> vector<8x2xf32>
    %cst_53 = arith.constant 0.000000e+00 : f32
    %144 = vector.broadcast %cst_53 : f32 to vector<8x126xf32>
    %145 = tpu.concatenate %143, %144 in 1 : vector<8x2xf32>, vector<8x126xf32> -> vector<8x128xf32>
    %c0_54 = arith.constant 0 : index
    %c0_55 = arith.constant 0 : index
    %146 = vector.load %arg15[%c0_54, %c0_55] : memref<8x128xf32, #tpu.memory_space<vmem>>, vector<8x128xf32>
    tpu.vector_store %arg15[%c0_54, %c0_55], %145 {strides = array<i32>} : memref<8x128xf32, #tpu.memory_space<vmem>>, vector<8x128xf32>,
    return
  }
  func.func @transform_0(%arg0: i32) -> (i32, i32) {
    %c0_i32 = arith.constant 0 : i32
    %c0_i32_0 = arith.constant 0 : i32
    return %arg0, %c0_i32 : i32, i32
  }
  func.func @transform_1(%arg0: i32) -> (i32, i32) {
    %c0_i32 = arith.constant 0 : i32
    %c0_i32_0 = arith.constant 0 : i32
    %c0_i32_1 = arith.constant 0 : i32
    return %c0_i32, %c0_i32_0 : i32, i32
  }
  func.func @transform_2(%arg0: i32) -> (i32, i32, i32) {
    %c0_i32 = arith.constant 0 : i32
    %c0_i32_0 = arith.constant 0 : i32
    %c0_i32_1 = arith.constant 0 : i32
    return %arg0, %c0_i32, %c0_i32_0 : i32, i32, i32
  }
  func.func @transform_3(%arg0: i32) -> (i32, i32, i32) {
    %c0_i32 = arith.constant 0 : i32
    %c0_i32_0 = arith.constant 0 : i32
    %c0_i32_1 = arith.constant 0 : i32
    return %arg0, %c0_i32, %c0_i32_0 : i32, i32, i32
  }
  func.func @transform_4(%arg0: i32) -> (i32, i32) {
    %c0_i32 = arith.constant 0 : i32
    %c0_i32_0 = arith.constant 0 : i32
    return %arg0, %c0_i32 : i32, i32
  }
  func.func @transform_5(%arg0: i32) -> (i32, i32) {
    %c0_i32 = arith.constant 0 : i32
    %c0_i32_0 = arith.constant 0 : i32
    return %arg0, %c0_i32 : i32, i32
  }
  func.func @transform_6(%arg0: i32) -> (i32, i32) {
    %c0_i32 = arith.constant 0 : i32
    %c0_i32_0 = arith.constant 0 : i32
    %c0_i32_1 = arith.constant 0 : i32
    return %c0_i32, %c0_i32_0 : i32, i32
  }
  func.func @transform_7(%arg0: i32) -> (i32, i32) {
    %c0_i32 = arith.constant 0 : i32
    %c0_i32_0 = arith.constant 0 : i32
    %c0_i32_1 = arith.constant 0 : i32
    return %c0_i32, %c0_i32_0 : i32, i32
  }
  func.func @transform_8(%arg0: i32) -> (i32, i32) {
    %c0_i32 = arith.constant 0 : i32
    %c0_i32_0 = arith.constant 0 : i32
    %c0_i32_1 = arith.constant 0 : i32
    return %c0_i32, %c0_i32_0 : i32, i32
  }
  func.func @transform_9(%arg0: i32) -> (i32, i32) {
    %c0_i32 = arith.constant 0 : i32
    %c0_i32_0 = arith.constant 0 : i32
    %c0_i32_1 = arith.constant 0 : i32
    return %c0_i32, %c0_i32_0 : i32, i32
  }
  func.func @transform_10(%arg0: i32) -> (i32, i32) {
    %c0_i32 = arith.constant 0 : i32
    %c0_i32_0 = arith.constant 0 : i32
    %c0_i32_1 = arith.constant 0 : i32
    return %c0_i32, %c0_i32_0 : i32, i32
  }
  func.func @transform_11(%arg0: i32) -> (i32, i32) {
    %c0_i32 = arith.constant 0 : i32
    %c0_i32_0 = arith.constant 0 : i32
    %c0_i32_1 = arith.constant 0 : i32
    return %c0_i32, %c0_i32_0 : i32, i32
  }
  func.func @transform_12(%arg0: i32) -> (i32, i32) {
    %c0_i32 = arith.constant 0 : i32
    %c0_i32_0 = arith.constant 0 : i32
    %c0_i32_1 = arith.constant 0 : i32
    return %c0_i32, %c0_i32_0 : i32, i32
  }
  func.func @transform_13(%arg0: i32) -> (i32, i32) {
    %c0_i32 = arith.constant 0 : i32
    %c0_i32_0 = arith.constant 0 : i32
    %c0_i32_1 = arith.constant 0 : i32
    return %c0_i32, %c0_i32_0 : i32, i32
  }
  func.func @transform_14(%arg0: i32) -> (i32, i32) {
    %c0_i32 = arith.constant 0 : i32
    %c0_i32_0 = arith.constant 0 : i32
    return %arg0, %c0_i32 : i32, i32
  }
}

</mosaic_0001>

<bundles_post_ra>
// kernel: tpu_custom_call.1
= control target key start
LH: loop header
LB: loop body
LE: loop exit
PB: predicated region body
PF: predicated region fallthrough
CT: control target
= control target key end

     0   :  { %s7314_s0 = inlined_call_operand.vmem [shape: bf16[256,32], index: 0, kind: input, shape index: {}]   ;;  %s7315_s1 = inlined_call_operand.vmem [shape: bf16[32,32], index: 1, kind: input, shape index: {}]   ;;  %s7316_s2 = inlined_call_operand.vmem [shape: f32[16,1,8], index: 2, kind: input, shape index: {}]   ;;  %s7317_s3 = inlined_call_operand.vmem [shape: f32[16,1,8], index: 3, kind: input, shape index: {}]   ;;  %s7318_s4 = inlined_call_operand.vmem [shape: f32[256,1], index: 4, kind: input, shape index: {}]   ;;  %s7319_s5 = inlined_call_operand.vmem [shape: f32[256,1], index: 5, kind: input, shape index: {}]   ;;  %s7320_s6 = inlined_call_operand.vmem [shape: f32[1,32], index: 6, kind: input, shape index: {}]   ;;  %s7321_s7 = inlined_call_operand.<no memory space> [shape: f32[1,1], index: 7, kind: input, shape index: {}]   ;;  %s7322_s8 = inlined_call_operand.vmem [shape: bf16[64,16], index: 8, kind: input, shape index: {}]   ;;  %s7323_s9 = inlined_call_operand.vmem [shape: bf16[64,8], index: 9, kind: input, shape index: {}]   ;;  %s7324_s10 = inlined_call_operand.vmem [shape: f32[1,8], index: 10, kind: input, shape index: {}]   ;;  %s7325_s11 = inlined_call_operand.vmem [shape: f32[1,8], index: 11, kind: input, shape index: {}]   ;;  %s7326_s12 = inlined_call_operand.vmem [shape: f32[2,32], index: 12, kind: input, shape index: {}]   ;;  %s7327_s13 = inlined_call_operand.vmem [shape: f32[1,2], index: 13, kind: input, shape index: {}]   ;;  %s7328_s14 = inlined_call_operand.hbm [shape: f32[16,128], index: 14, kind: output, shape index: {}]  }
   0x1   :  { %7348 = sst [smem:[#allocation19_spill]] %s7314_s0  ;;  %v19_v0 = vstv %s7321_s7 }
   0x2   :  { %7349 = sst [smem:[#allocation20_spill]] %s7315_s1  ;;  %20 = vst [vmem:[#allocation2] sm:$0x1] %v19_v0 }
   0x3   :  { %7350 = sst [smem:[#allocation21_spill]] %s7316_s2 }
   0x4   :  { %21 = vsyncpa [#allocation4], 0 }
   0x5   :  { %23 = vsyncpa [#allocation4 + $0x1], 0  ;;  %s6078_s15 = smov 0   ;;  %s6080_s16 = smov 0  }
   0x6   :  { %s6082_s17 = smov 0   ;;  %s6084_s18 = smov 0  }
   0x7 LB: > { %s6099_s7 = sadd.s32 4294967295, %s5989_s18   ;;  %s5218_s19 = sadd.s32 4294967294, %s5989_s18   ;;  %s5989_s18 = sphi %s6084_s18, %s7397_s18   ;;  %s5985_s17 = sphi %s6082_s17, %s7396_s17   ;;  %s5981_s16 = sphi %s6080_s16, %s7395_s16   ;;  %s5977_s15 = sphi %s6078_s15, %s7394_s15  }
   0x8   : > { %s6103_s20 = sadd.s32 1, %s5989_s18   ;;  %s355_s21 = sadd.s32 1, %s5985_s17 }
   0x9   : > { %s352_s22 = ssub.s32 %s5989_s18, %s6103_s20  ;;  %p365_p0 = scmp.ne.s32.totalorder %s5985_s17, %s5981_s16 }
   0xa   : > { %p353_p1 = scmp.eq.s32.totalorder %s352_s22, 0  ;;  %p366_p2 = scmp.eq.s32.totalorder %s6099_s7, 1 }
   0xb   : > { %p371_p3 = scmp.ne.s32.totalorder %s5981_s16, %s5977_s15  ;;  %p372_p4 = scmp.eq.s32.totalorder %s5218_s19, 1 }
   0xc   : > { %s6114_s23 = scalar_select %p353_p1, %s5985_s17, %s355_s21  }
   0xd   : > { %p6116_p5 = por %p366_p2, %p365_p0  ;;  %p6120_p6 = por %p372_p4, %p371_p3 }
   0xe   : > { %p5221_p7 = scmp.ge.s32.totalorder %s5989_s18, 1  ;;  %p460_p8 = scmp.lt.s32.totalorder %s5989_s18, 3 }
  0x10   : > { %p461_p9 = pnand %p5221_p7, %p460_p8 }
  0x12   : > { %464 = sbr.rel (%p461_p9) target bundleno = 2775 (0xad7), region = 76 }
  0x17   : > { %s7353_s1 = sld [smem:[#allocation20_spill]]  ;;  %s5223_s28 = sshll.u32 %s6099_s7, 4  ;;  %vm625_vm0 = vcmask 261120   ;;  %v5991_v11 = vmov 0.0   ;;  %vm5992_vm1 = vmmov 0   ;;  %v779_v28 = vlaneseq }
  0x18   : > { %p525_p10 = scmp.lt.s32.totalorder %s5223_s28, 31  ;;  %s7354_s0 = sld [smem:[#allocation19_spill]]  ;;  %5480 = vmatprep.subr.mxu1 %v5991_v11  ;;  %5482 = vmatprep.mubr.msk.f32.mxu1 %vm5992_vm1, %v5991_v11  ;;  %vm1427_vm2 = vcmask 64512   ;;  %vm4018_vm3 = vcmask 523264   ;;  %vm4285_vm4 = vcmask 1046528   ;;  %vm4930_vm5 = vcmask 1041409  }
  0x19   : > { %s5225_s27 = sshll.u32 %s6099_s7, 3  ;;  %s7362_s2 = sld [smem:[#allocation21_spill]]  ;;  %v6255_v31 = vshrl.u32 %v779_v28, 7  ;;  %vm4801_vm6 = vcmask 130112   ;;  %vm5006_vm7 = vcmask 1042434   ;;  %vm5009_vm8 = vcmask 1043459  }
  0x1a   : > { %s7399_s28 = smov (!%p525_p10, %s5223_s28), 31  ;;  %p531_p11 = scmp.lt.s32.totalorder %s5225_s27, 15  ;;  %vm5012_vm9 = vcmask 1044484   ;;  %vm5015_vm10 = vcmask 1045509   ;;  %vm5018_vm11 = vcmask 1046534   ;;  %vm5021_vm12 = vcmask 1047559  }
  0x1b   : > { %s5224_s19 = sshll.u32 %s7399_s28, 2  ;;  %7363 = vst [vmem:[#allocation13_spill] sm:$0xff] %v6255_v31  ;;  %v6259_v34 = vsub.s32 0, %v6255_v31  ;;  %s5228_s30 = sshll.u32 %s7399_s28, 3  ;;  %vm5041_vm13 = vcmask 130048   ;;  %vm5098_vm14 = vcmask 7168  }
  0x1c   : > { %s7401_s27 = smov (!%p531_p11, %s5225_s27), 15  ;;  %s6806_s22 = scalar_lea.vmem %s7318_s4, %s5228_s30  ;;  %vm5100_vm15 = vcmask 15360  }
  0x1d   : > { %v5777_v1 = vld [vmem:[%s7353_s1 + $0x8] sm:$0xff]   ;;  %v5778_v2 = vld [vmem:[%s7353_s1] sm:$0xff]   ;;  %7364 = vst [vmem:[#allocation14_spill] sm:$0xff] %v6259_v34 }
  0x1e   : > { %5460 = vmatprep.subr.bf16.mxu0 %v5777_v1  ;;  %s528_s26 = scalar_lea.vmem %s7354_s0, %s5224_s19  ;;  %s5994_s0 = smov 32  }
  0x1f   : > { %5461 = vmatpush3.bf16.msra.mxu0 %v5777_v1  ;;  %v5779_v3 = vld [vmem:[%s528_s26] sm:$0xff]   ;;  %v5780_v4 = vld [vmem:[%s528_s26 + $0x8] sm:$0xff]   ;;  %v5781_v5 = vld [vmem:[%s528_s26 + $0x10] sm:$0xff]   ;;  %s6252_s19 = scalar_lea.vmem %s7362_s2, %s7401_s27 }
  0x20   : > { %5462 = vmatprep.subr.bf16.mxu0 %v5778_v2  ;;  %5464 = vmatprep.mubr.msk.bf16.mxu0 %vm625_vm0, %v5779_v3  ;;  %v5782_v6 = vld [vmem:[%s528_s26 + $0x18] sm:$0xff]   ;;  %v5783_v7 = vld [vmem:[%s528_s26 + $0x20] sm:$0xff]   ;;  %v5784_v8 = vld [vmem:[%s528_s26 + $0x28] sm:$0xff]  }
  0x21   : > { %v5785_v9 = vld [vmem:[%s528_s26 + $0x30] sm:$0xff]   ;;  %v5786_v10 = vld [vmem:[%s528_s26 + $0x38] sm:$0xff]   ;;  %v747_v29 = vld [vmem:[%s6252_s19] sm:$0x1]  ;;  %s6401_s26 = scalar_lea.vmem %s7317_s3, %s7401_s27  ;;  %s6814_s27 = scalar_lea.vmem %s7319_s5, %s5228_s30 }
  0x22   : > { %v5249_v30 = vadd.f32 -1.0, %v747_v29  ;;  %v748_v32 = vld [vmem:[%s6252_s19 + $0x1] sm:$0x1]  ;;  %v749_v36 = vld [vmem:[%s6252_s19 + $0x2] sm:$0x1]  ;;  %s521_s30 = sand.u32 1, %s5981_s16  }
  0x23   : > { %5463 = vmatpush3.bf16.msra.mxu0 %v5778_v2  ;;  %v5250_v35 = vadd.f32 -1.0, %v748_v32  ;;  %v5251_v39 = vadd.f32 -1.0, %v749_v36  ;;  %v750_v40 = vld [vmem:[%s6252_s19 + $0x3] sm:$0x1]  ;;  %v751_v47 = vld [vmem:[%s6252_s19 + $0x4] sm:$0x1] }
  0x24   : > { %5525 = vmatprep.subr.mxu0 %v5991_v11  ;;  %v763_v33 = vmul.f32 1e+30, %v5249_v30  ;;  %v5252_v45 = vadd.f32 -1.0, %v750_v40  ;;  %v5253_v53 = vadd.f32 -1.0, %v751_v47  ;;  %v752_v55 = vld [vmem:[%s6252_s19 + $0x5] sm:$0x1] }
  0x25   : > { %v764_v38 = vmul.f32 1e+30, %v5250_v35  ;;  %v765_v44 = vmul.f32 1e+30, %v5251_v39  ;;  %v5254_v61 = vadd.f32 -1.0, %v752_v55  ;;  %s5222_s21 = sshll.u32 %s521_s30, 3 }
  0x26   : > { %5465 = vmatmul.mubr.msk.bf16.vlgmr.msra.gmra.mxu0 %vm625_vm0, %v5780_v4  ;;  %v782_v37 = vrot.slane %v763_v33, %v6259_v34  ;;  %v766_v52 = vmul.f32 1e+30, %v5252_v45  ;;  %v767_v60 = vmul.f32 1e+30, %v5253_v53  ;;  %v753_v63 = vld [vmem:[%s6252_s19 + $0x6] sm:$0x1] }
  0x27   : > { %5468 = vmatprep.mubr.msk.bf16.mxu0 %vm625_vm0, %v5781_v5  ;;  %v786_v43 = vrot.slane %v764_v38, %v6259_v34  ;;  %v790_v51 = vrot.slane %v765_v44, %v6259_v34  ;;  %v768_v4 = vmul.f32 1e+30, %v5254_v61  ;;  %v5255_v5 = vadd.f32 -1.0, %v753_v63  ;;  %s523_s28 = scalar_lea.vmem [#allocation3], %s5222_s21 }
  0x28   : > { %v794_v59 = vrot.slane %v766_v52, %v6259_v34  ;;  %v798_v3 = vrot.slane %v767_v60, %v6259_v34 }
  0x29   : > { %v802_v28 = vrot.slane %v768_v4, %v6259_v34  ;;  %v769_v29 = vmul.f32 1e+30, %v5255_v5 }
  0x2e   : > { %5469 = vmatmul.mubr.msk.bf16.gmra.mxu0 %vm625_vm0, %v5782_v6 }
  0x2f   : > { %5472 = vmatprep.mubr.msk.bf16.mxu0 %vm625_vm0, %v5783_v7  ;;  %v754_v7 = vld [vmem:[%s6252_s19 + $0x7] sm:$0x1]  ;;  %s5997_s19 = smov 127  }
  0x30   : > { %v5256_v30 = vadd.f32 -1.0, %v754_v7 }
  0x32   : > { %v770_v38 = vmul.f32 1e+30, %v5256_v30 }
  0x34   : > { %v810_v44 = vrot.slane %v770_v38, %v6259_v34 }
  0x36   : > { %5473 = vmatmul.mubr.msk.bf16.gmra.mxu0 %vm625_vm0, %v5784_v8 }
  0x37   : > { %5476 = vmatprep.mubr.msk.bf16.mxu0 %vm625_vm0, %v5785_v9 }
  0x3e   : > { %5477 = vmatmul.mubr.msk.bf16.gmra.mxu0 %vm625_vm0, %v5786_v10 }
  0x3f   : > { %5527 = vmatprep.mubr.msk.f32.mxu0 %vm5992_vm1, %v5991_v11 }
  0xe6   : > { %v6153_v12 = vpop.f32.mrf.mxu0 }
  0xe8   : > { %v6155_v13 = vpop.f32.mrf.mxu0 }
  0xea   : > { %v6157_v14 = vpop.f32.mrf.mxu0 }
  0xeb   : > { %5526 = vmatpush3.msra.mxu0 %v6157_v14 }
  0xec   : > { %v6160_v15 = vpop.f32.mrf.mxu0  ;;  %5535 = vmatprep.subr.mxu0 %v5991_v11 }
  0xed   : > { %5481 = vmatpush3.xpose.msk.msra.mxu1 %vm625_vm0, %v6160_v15 }
  0xee   : > { %v6165_v16 = vpop.f32.mrf.mxu0  ;;  %5485 = vmatprep.subr.mxu1 %v5991_v11 }
  0xf0   : > { %v6168_v17 = vpop.f32.mrf.mxu0  ;;  %5483 = vmatmul.mubr.msk.f32.vlgmr.msra.gmra.mxu1 %vm625_vm0, %v6155_v13 }
  0xf1   : > { %5486 = vmatpush3.xpose.msk.msra.mxu1 %vm625_vm0, %v6157_v14  ;;  %5487 = vmatprep.mubr.msk.f32.mxu1 %vm5992_vm1, %v5991_v11 }
  0xf2   : > { %v6176_v18 = vpop.f32.mrf.mxu0  ;;  %5490 = vmatprep.subr.mxu1 %v5991_v11 }
  0xf3   : > { %7355 = vst [vmem:[#allocation6_spill] sm:$0xff] %v6176_v18 }
  0xf4   : > { %v6179_v19 = vpop.f32.mrf.mxu0  ;;  %5488 = vmatmul.mubr.msk.f32.vlgmr.msra.gmra.mxu1 %vm625_vm0, %v6153_v12 }
  0xf5   : > { %5491 = vmatpush3.xpose.msk.msra.mxu1 %vm625_vm0, %v6179_v19  ;;  %5492 = vmatprep.mubr.msk.f32.mxu1 %vm5992_vm1, %v5991_v11 }
  0xf6   : > { %v6187_v20 = vpop.f32.mrf.mxu0  ;;  %5495 = vmatprep.subr.mxu1 %v5991_v11 }
  0xf7   : > { %7356 = vst [vmem:[#allocation7_spill] sm:$0xff] %v6187_v20 }
  0xf8   : > { %v6190_v21 = vpop.f32.mrf.mxu0  ;;  %5493 = vmatmul.mubr.msk.f32.vlgmr.msra.gmra.mxu1 %vm625_vm0, %v6168_v17 }
  0xf9   : > { %7357 = vst [vmem:[#allocation8_spill] sm:$0xff] %v6190_v21  ;;  %5496 = vmatpush3.xpose.msk.msra.mxu1 %vm625_vm0, %v6176_v18  ;;  %5497 = vmatprep.mubr.msk.f32.mxu1 %vm5992_vm1, %v5991_v11 }
  0xfa   : > { %v6198_v22 = vpop.f32.mrf.mxu0  ;;  %5500 = vmatprep.subr.mxu1 %v5991_v11 }
  0xfc   : > { %v6201_v23 = vpop.f32.mrf.mxu0  ;;  %5498 = vmatmul.mubr.msk.f32.vlgmr.msra.gmra.mxu1 %vm625_vm0, %v6165_v16 }
  0xfd   : > { %5501 = vmatpush3.xpose.msk.msra.mxu1 %vm625_vm0, %v6201_v23  ;;  %5502 = vmatprep.mubr.msk.f32.mxu1 %vm5992_vm1, %v5991_v11 }
  0xfe   : > { %v6209_v24 = vpop.f32.mrf.mxu0  ;;  %5505 = vmatprep.subr.mxu1 %v5991_v11 }
  0xff   : > { %7358 = vst [vmem:[#allocation9_spill] sm:$0xff] %v6209_v24 }
 0x100   : > { %v6212_v25 = vpop.f32.mrf.mxu0  ;;  %5503 = vmatmul.mubr.msk.f32.vlgmr.msra.gmra.mxu1 %vm625_vm0, %v6190_v21 }
 0x101   : > { %7359 = vst [vmem:[#allocation10_spill] sm:$0xff] %v6212_v25  ;;  %5506 = vmatpush3.xpose.msk.msra.mxu1 %vm625_vm0, %v6198_v22  ;;  %5507 = vmatprep.mubr.msk.f32.mxu1 %vm5992_vm1, %v5991_v11 }
 0x102   : > { %v6220_v26 = vpop.f32.mrf.mxu0  ;;  %5510 = vmatprep.subr.mxu1 %v5991_v11 }
 0x103   : > { %7360 = vst [vmem:[#allocation11_spill] sm:$0xff] %v6220_v26 }
 0x104   : > { %v6223_v27 = vpop.f32.mrf.mxu0  ;;  %5508 = vmatmul.mubr.msk.f32.vlgmr.msra.gmra.mxu1 %vm625_vm0, %v6187_v20 }
 0x105   : > { %7361 = vst [vmem:[#allocation12_spill] sm:$0xff] %v6223_v27  ;;  %5511 = vmatpush3.xpose.msk.msra.mxu1 %vm625_vm0, %v6223_v27  ;;  %5512 = vmatprep.mubr.msk.f32.mxu1 %vm5992_vm1, %v5991_v11 }
 0x106   : > { %5515 = vmatprep.subr.mxu1 %v5991_v11 }
 0x108   : > { %5513 = vmatmul.mubr.msk.f32.vlgmr.msra.gmra.mxu1 %vm625_vm0, %v6212_v25 }
 0x109   : > { %5516 = vmatpush3.xpose.msk.msra.mxu1 %vm625_vm0, %v6220_v26  ;;  %5517 = vmatprep.mubr.msk.f32.mxu1 %vm5992_vm1, %v5991_v11 }
 0x10a   : > { %5520 = vmatprep.subr.mxu1 %v5991_v11 }
 0x10c   : > { %5518 = vmatmul.mubr.msk.f32.vlgmr.msra.gmra.mxu1 %vm625_vm0, %v6209_v24 }
 0x10d   : > { %5521 = vmatpush3.msra.mxu1 %v6160_v15  ;;  %5522 = vmatprep.mubr.msk.f32.mxu1 %vm5992_vm1, %v5991_v11 }
 0x10e   : > { %5530 = vmatprep.subr.mxu1 %v5991_v11 }
 0x1b0   : > { %v891_v41 = vpop.f32.mrf.mxu1 }
 0x1b1   : > { %v6264_v42 = vadd.f32 %v891_v41, %v782_v37  ;;  %v806_v37 = vrot.slane %v769_v29, %v6259_v34 }
 0x1b2   : > { %v5484_v46 = vpop.f32.mrf.mxu1 }
 0x1b3   : > { %v1428_v48 = vsel %vm1427_vm2, %v6264_v42, -inf }
 0x1b4   : > { %1429 = vmax.xlane.f32.xlu0 %v1428_v48  ;;  %v967_v49 = vpop.f32.mrf.mxu1 }
 0x1b5   : > { %v968_v50 = vadd.f32 %v967_v49, %v786_v43 }
 0x1b6   : > { %v5489_v54 = vpop.f32.mrf.mxu1 }
 0x1b7   : > { %v1431_v56 = vsel %vm1427_vm2, %v968_v50, -inf }
 0x1b8   : > { %1432 = vmax.xlane.f32.xlu0 %v1431_v56  ;;  %v1043_v57 = vpop.f32.mrf.mxu1 }
 0x1b9   : > { %v1044_v58 = vadd.f32 %v1043_v57, %v790_v51 }
 0x1ba   : > { %v5494_v62 = vpop.f32.mrf.mxu1 }
 0x1bb   : > { %v1434_v0 = vsel %vm1427_vm2, %v1044_v58, -inf }
 0x1bc   : > { %1435 = vmax.xlane.f32.xlu1 %v1434_v0  ;;  %v1119_v1 = vpop.f32.mrf.mxu1 }
 0x1bd   : > { %v1120_v2 = vadd.f32 %v1119_v1, %v794_v59 }
 0x1be   : > { %v5499_v6 = vpop.f32.mrf.mxu1 }
 0x1bf   : > { %v1437_v8 = vsel %vm1427_vm2, %v1120_v2, -inf }
 0x1c0   : > { %1438 = vmax.xlane.f32.xlu1 %v1437_v8  ;;  %v1195_v9 = vpop.f32.mrf.mxu1 }
 0x1c1   : > { %v1196_v10 = vadd.f32 %v1195_v9, %v798_v3 }
 0x1c2   : > { %v5504_v32 = vpop.f32.mrf.mxu1 }
 0x1c3   : > { %v1440_v33 = vsel %vm1427_vm2, %v1196_v10, -inf }
 0x1c4   : > { %1441 = vmax.xlane.f32.xlu0 %v1440_v33  ;;  %v1271_v35 = vpop.f32.mrf.mxu1 }
 0x1c5   : > { %v1272_v36 = vadd.f32 %v1271_v35, %v802_v28 }
 0x1c6   : > { %v5509_v39 = vpop.f32.mrf.mxu1 }
 0x1c7   : > { %v1443_v40 = vsel %vm1427_vm2, %v1272_v36, -inf }
 0x1c8   : > { %1444 = vmax.xlane.f32.xlu1 %v1443_v40  ;;  %v1347_v41 = vpop.f32.mrf.mxu1 }
 0x1c9   : > { %v1348_v43 = vadd.f32 %v1347_v41, %v806_v37 }
 0x1ca   : > { %v5514_v45 = vpop.f32.mrf.mxu1 }
 0x1cb   : > { %v1446_v46 = vsel %vm1427_vm2, %v1348_v43, -inf }
 0x1cc   : > { %1447 = vmax.xlane.f32.xlu0 %v1446_v46  ;;  %v1423_v47 = vpop.f32.mrf.mxu1 }
 0x1cd   : > { %v1424_v48 = vadd.f32 %v1423_v47, %v810_v44 }
 0x1ce   : > { %v5519_v49 = vpop.f32.mrf.mxu1 }
 0x1cf   : > { %v1449_v51 = vsel %vm1427_vm2, %v1424_v48, -inf }
 0x1d0   : > { %1450 = vmax.xlane.f32.xlu1 %v1449_v51 }
 0x23d   : > { %v1430_v52 = vpop.xlane.xlu0 %1429 }
 0x23e   : > { %v1452_v53 = vsub.f32 %v6264_v42, %v1430_v52 }
 0x240   : > { %v1460_v54 = vmul.f32 1.442695, %v1452_v53 }
 0x241   : > { %v1433_v55 = vpop.xlane.xlu0 %1432 }
 0x242   : > { %5795 = vpow2.f32 %v1460_v54  ;;  %v1453_v56 = vsub.f32 %v968_v50, %v1433_v55 }
 0x244   : > { %v1462_v57 = vmul.f32 1.442695, %v1453_v56 }
 0x245   : > { %v1436_v59 = vpop.xlane.xlu1 %1435 }
 0x246   : > { %5797 = vpow2.f32 %v1462_v57  ;;  %v1454_v60 = vsub.f32 %v1044_v58, %v1436_v59 }
 0x248   : > { %v1464_v61 = vmul.f32 1.442695, %v1454_v60 }
 0x249   : > { %v1439_v62 = vpop.xlane.xlu1 %1438 }
 0x24a   : > { %5799 = vpow2.f32 %v1464_v61  ;;  %v1455_v63 = vsub.f32 %v1120_v2, %v1439_v62 }
 0x24c   : > { %v1466_v0 = vmul.f32 1.442695, %v1455_v63 }
 0x24d   : > { %v1442_v1 = vpop.xlane.xlu0 %1441 }
 0x24e   : > { %5801 = vpow2.f32 %v1466_v0  ;;  %v1456_v3 = vsub.f32 %v1196_v10, %v1442_v1 }
 0x24f   : > { %v5796_v4 = vpop.eup %5795 }
 0x250   : > { %v1468_v5 = vmul.f32 1.442695, %v1456_v3  ;;  %v1476_v42 = vsel %vm1427_vm2, %v5796_v4, 0.0 }
 0x251   : > { %v1445_v6 = vpop.xlane.xlu1 %1444  ;;  %1477 = vadd.xlane.f32.xlu0 %v1476_v42 }
 0x252   : > { %5803 = vpow2.f32 %v1468_v5  ;;  %v1457_v50 = vsub.f32 %v1272_v36, %v1445_v6 }
 0x253   : > { %v5798_v7 = vpop.eup %5797 }
 0x254   : > { %v1470_v8 = vmul.f32 1.442695, %v1457_v50  ;;  %v1479_v58 = vsel %vm1427_vm2, %v5798_v7, 0.0 }
 0x255   : > { %v1448_v9 = vpop.xlane.xlu0 %1447  ;;  %1480 = vadd.xlane.f32.xlu1 %v1479_v58 }
 0x256   : > { %5805 = vpow2.f32 %v1470_v8  ;;  %v1458_v2 = vsub.f32 %v1348_v43, %v1448_v9 }
 0x257   : > { %v5800_v28 = vpop.eup %5799 }
 0x258   : > { %v1472_v29 = vmul.f32 1.442695, %v1458_v2  ;;  %v1482_v10 = vsel %vm1427_vm2, %v5800_v28, 0.0 }
 0x259   : > { %1483 = vadd.xlane.f32.xlu0 %v1482_v10  ;;  %v1451_v30 = vpop.xlane.xlu1 %1450  ;;  %v2100_v10 = vld [vmem:[%s6401_s26] sm:$0x1] }
 0x25a   : > { %5807 = vpow2.f32 %v1472_v29  ;;  %v1459_v32 = vsub.f32 %v1424_v48, %v1451_v30 }
 0x25b   : > { %v5802_v33 = vpop.eup %5801 }
 0x25c   : > { %v1474_v35 = vmul.f32 1.442695, %v1459_v32  ;;  %v1485_v36 = vsel %vm1427_vm2, %v5802_v33, 0.0 }
 0x25d   : > { %1486 = vadd.xlane.f32.xlu1 %v1485_v36  ;;  %v2101_v36 = vld [vmem:[%s6401_s26 + $0x1] sm:$0x1] }
 0x25e   : > { %5809 = vpow2.f32 %v1474_v35 }
 0x25f   : > { %v5804_v37 = vpop.eup %5803 }
 0x260   : > { %v1488_v38 = vsel %vm1427_vm2, %v5804_v37, 0.0 }
 0x261   : > { %1489 = vadd.xlane.f32.xlu0 %v1488_v38 }
 0x263   : > { %v5806_v39 = vpop.eup %5805 }
 0x264   : > { %v1491_v40 = vsel %vm1427_vm2, %v5806_v39, 0.0 }
 0x265   : > { %1492 = vadd.xlane.f32.xlu1 %v1491_v40  ;;  %v5282_v40 = vadd.f32 -1.0, %v2101_v36 }
 0x267   : > { %v5808_v41 = vpop.eup %5807 }
 0x268   : > { %v1494_v43 = vsel %vm1427_vm2, %v5808_v41, 0.0 }
 0x269   : > { %1495 = vadd.xlane.f32.xlu0 %v1494_v43  ;;  %v2103_v43 = vld [vmem:[%s6401_s26 + $0x3] sm:$0x1] }
 0x26b   : > { %v5810_v44 = vpop.eup %5809 }
 0x26c   : > { %v1497_v45 = vsel %vm1427_vm2, %v5810_v44, 0.0 }
 0x26d   : > { %1498 = vadd.xlane.f32.xlu1 %v1497_v45 }
 0x2da   : > { %v1478_v46 = vpop.xlane.xlu0 %1477 }
 0x2db   : > { %5811 = vrcp.f32 %v1478_v46 }
 0x2de   : > { %v1481_v47 = vpop.xlane.xlu1 %1480 }
 0x2df   : > { %5813 = vrcp.f32 %v1481_v47  ;;  %v5284_v47 = vadd.f32 -1.0, %v2103_v43 }
 0x2e2   : > { %v1484_v48 = vpop.xlane.xlu0 %1483 }
 0x2e3   : > { %5815 = vrcp.f32 %v1484_v48 }
 0x2e6   : > { %v1487_v49 = vpop.xlane.xlu1 %1486 }
 0x2e7   : > { %5817 = vrcp.f32 %v1487_v49 }
 0x2e8   : > { %v5812_v51 = vpop.eup %5811 }
 0x2e9   : > { %v1501_v52 = vmul.f32 %v5812_v51, %v5796_v4  ;;  %v2117_v51 = vmul.f32 1e+30, %v5282_v40 }
 0x2ea   : > { %v1490_v53 = vpop.xlane.xlu0 %1489 }
 0x2eb   : > { %5819 = vrcp.f32 %v1490_v53  ;;  %5523 = vmatmul.mubr.msk.f32.vlgmr.msra.gmra.mxu1 %vm1427_vm2, %v1501_v52  ;;  %v2105_v53 = vld [vmem:[%s6401_s26 + $0x5] sm:$0x1] }
 0x2ec   : > { %v5814_v54 = vpop.eup %5813  ;;  %5531 = vmatpush3.msra.mxu1 %v6179_v19  ;;  %5532 = vmatprep.mubr.msk.f32.mxu1 %vm5992_vm1, %v5991_v11 }
 0x2ed   : > { %v1503_v55 = vmul.f32 %v5814_v54, %v5798_v7  ;;  %5540 = vmatprep.subr.mxu1 %v5991_v11 }
 0x2ee   : > { %v1493_v56 = vpop.xlane.xlu1 %1492 }
 0x2ef   : > { %5821 = vrcp.f32 %v1493_v56  ;;  %5528 = vmatmul.mubr.msk.f32.vlgmr.msra.gmra.mxu0 %vm1427_vm2, %v1503_v55  ;;  %v2106_v55 = vld [vmem:[%s6401_s26 + $0x6] sm:$0x1] }
 0x2f0   : > { %v5816_v57 = vpop.eup %5815  ;;  %5536 = vmatpush3.msra.mxu0 %v6176_v18  ;;  %5537 = vmatprep.mubr.msk.f32.mxu0 %vm5992_vm1, %v5991_v11 }
 0x2f1   : > { %v1505_v59 = vmul.f32 %v5816_v57, %v5800_v28  ;;  %5545 = vmatprep.subr.mxu0 %v5991_v11 }
 0x2f2   : > { %v1496_v60 = vpop.xlane.xlu0 %1495 }
 0x2f3   : > { %5823 = vrcp.f32 %v1496_v60  ;;  %5533 = vmatmul.mubr.msk.f32.vlgmr.msra.gmra.mxu1 %vm1427_vm2, %v1505_v59  ;;  %v2119_v59 = vmul.f32 1e+30, %v5284_v47 }
 0x2f4   : > { %v5818_v61 = vpop.eup %5817  ;;  %5541 = vmatpush3.msra.mxu1 %v6201_v23  ;;  %5542 = vmatprep.mubr.msk.f32.mxu1 %vm5992_vm1, %v5991_v11 }
 0x2f5   : > { %v1507_v62 = vmul.f32 %v5818_v61, %v5802_v33  ;;  %5550 = vmatprep.subr.mxu1 %v5991_v11  ;;  %v5281_v33 = vadd.f32 -1.0, %v2100_v10  ;;  %v5286_v61 = vadd.f32 -1.0, %v2105_v53 }
 0x2f6   : > { %v1499_v63 = vpop.xlane.xlu1 %1498 }
 0x2f7   : > { %5825 = vrcp.f32 %v1499_v63  ;;  %5538 = vmatmul.mubr.msk.f32.vlgmr.msra.gmra.mxu0 %vm1427_vm2, %v1507_v62  ;;  %v2139_v63 = vrot.slane %v2117_v51, %v6259_v34 }
 0x2f8   : > { %v5820_v0 = vpop.eup %5819  ;;  %5546 = vmatpush3.msra.mxu0 %v6198_v22  ;;  %5547 = vmatprep.mubr.msk.f32.mxu0 %vm5992_vm1, %v5991_v11 }
 0x2f9   : > { %v1509_v1 = vmul.f32 %v5820_v0, %v5804_v37  ;;  %5555 = vmatprep.subr.mxu0 %v5991_v11  ;;  %v2102_v37 = vld [vmem:[%s6401_s26 + $0x2] sm:$0x1] }
 0x2fb   : > { %5543 = vmatmul.mubr.msk.f32.vlgmr.msra.gmra.mxu1 %vm1427_vm2, %v1509_v1  ;;  %v5287_v1 = vadd.f32 -1.0, %v2106_v55 }
 0x2fc   : > { %v5822_v3 = vpop.eup %5821  ;;  %5551 = vmatpush3.msra.mxu1 %v6223_v27  ;;  %5552 = vmatprep.mubr.msk.f32.mxu1 %vm5992_vm1, %v5991_v11 }
 0x2fd   : > { %v1511_v4 = vmul.f32 %v5822_v3, %v5806_v39  ;;  %5560 = vmatprep.subr.mxu1 %v5991_v11  ;;  %v2116_v39 = vmul.f32 1e+30, %v5281_v33  ;;  %v2122_v33 = vmul.f32 1e+30, %v5287_v1 }
 0x2ff   : > { %5548 = vmatmul.mubr.msk.f32.vlgmr.msra.gmra.mxu0 %vm1427_vm2, %v1511_v4  ;;  %v2135_v49 = vrot.slane %v2116_v39, %v6259_v34 }
 0x300   : > { %v5824_v5 = vpop.eup %5823  ;;  %5556 = vmatpush3.msra.mxu0 %v6220_v26  ;;  %5557 = vmatprep.mubr.msk.f32.mxu0 %vm5992_vm1, %v5991_v11 }
 0x301   : > { %v1513_v42 = vmul.f32 %v5824_v5, %v5808_v41  ;;  %5565 = vmatprep.subr.mxu0 %v5991_v11  ;;  %v5283_v41 = vadd.f32 -1.0, %v2102_v37  ;;  %v2107_v5 = vld [vmem:[%s6401_s26 + $0x7] sm:$0x1] }
 0x303   : > { %5553 = vmatmul.mubr.msk.f32.vlgmr.msra.gmra.mxu1 %vm1427_vm2, %v1513_v42  ;;  %v2118_v52 = vmul.f32 1e+30, %v5283_v41 }
 0x304   : > { %v5826_v6 = vpop.eup %5825  ;;  %5561 = vmatpush3.xpose.msk.msra.mxu1 %vm625_vm0, %v6155_v13  ;;  %5562 = vmatprep.mubr.msk.f32.mxu1 %vm5992_vm1, %v5991_v11 }
 0x305   : > { %5570 = vmatprep.subr.mxu1 %v5991_v11  ;;  %v1515_v50 = vmul.f32 %v5826_v6, %v5810_v44  ;;  %v2104_v44 = vld [vmem:[%s6401_s26 + $0x4] sm:$0x1]  ;;  %v2143_v0 = vrot.slane %v2118_v52, %v6259_v34  ;;  %s5117_s26 = sshll.u32 %s523_s28, 4  ;;  %s5118_s26 = int_to_ptr.vmem [resolvable:$true] %s5117_s26 }
 0x306   : > { %v5285_v48 = vadd.f32 -1.0, %v2104_v44  ;;  %s5929_s1 = scalar_lea.vmem %s5118_s26, 128 }
 0x307   : > { %5558 = vmatmul.mubr.msk.f32.vlgmr.msra.gmra.mxu0 %vm1427_vm2, %v1515_v50  ;;  %5563 = vmatmul.mubr.msk.f32.vlgmr.msra.gmra.mxu1 %vm625_vm0, %v6160_v15  ;;  %p5930_p12 = scmp.ne.s32.totalorder %s5118_s26, %s5929_s1 }
 0x308   : > { %5566 = vmatpush3.xpose.msk.msra.mxu0 %vm625_vm0, %v6153_v12  ;;  %5571 = vmatpush3.xpose.msk.msra.mxu1 %vm625_vm0, %v6168_v17  ;;  %v2120_v60 = vmul.f32 1e+30, %v5285_v48  ;;  %v2159_v48 = vrot.slane %v2122_v33, %v6259_v34 }
 0x309   : > { %5567 = vmatprep.mubr.msk.f32.mxu0 %vm5992_vm1, %v5991_v11  ;;  %5572 = vmatprep.mubr.msk.f32.mxu1 %vm5992_vm1, %v5991_v11  ;;  %p5931_p13 = pnand %p5930_p12, %p6116_p5 }
 0x30a   : > { %5575 = vmatprep.subr.mxu0 %v5991_v11  ;;  %5580 = vmatprep.subr.mxu1 %v5991_v11 }
 0x30b   : > { %5568 = vmatmul.mubr.msk.f32.vlgmr.msra.gmra.mxu0 %vm625_vm0, %v6157_v14  ;;  %5573 = vmatmul.mubr.msk.f32.vlgmr.msra.gmra.mxu1 %vm625_vm0, %v6179_v19  ;;  %p5932_p0 = pneg %p5931_p13 }
 0x30c   : > { %5576 = vmatpush3.xpose.msk.msra.mxu0 %vm625_vm0, %v6165_v16  ;;  %5581 = vmatpush3.xpose.msk.msra.mxu1 %vm625_vm0, %v6190_v21 }
 0x30d   : > { %5577 = vmatprep.mubr.msk.f32.mxu0 %vm5992_vm1, %v5991_v11  ;;  %5582 = vmatprep.mubr.msk.f32.mxu1 %vm5992_vm1, %v5991_v11 }
 0x30e   : > { %5585 = vmatprep.subr.mxu0 %v5991_v11  ;;  %5590 = vmatprep.subr.mxu1 %v5991_v11 }
 0x30f   : > { %5578 = vmatmul.mubr.msk.f32.vlgmr.msra.gmra.mxu0 %vm625_vm0, %v6176_v18  ;;  %5583 = vmatmul.mubr.msk.f32.vlgmr.msra.gmra.mxu1 %vm625_vm0, %v6201_v23 }
 0x310   : > { %5586 = vmatpush3.xpose.msk.msra.mxu0 %vm625_vm0, %v6187_v20  ;;  %5591 = vmatpush3.xpose.msk.msra.mxu1 %vm625_vm0, %v6212_v25 }
 0x311   : > { %5587 = vmatprep.mubr.msk.f32.mxu0 %vm5992_vm1, %v5991_v11  ;;  %5592 = vmatprep.mubr.msk.f32.mxu1 %vm5992_vm1, %v5991_v11 }
 0x312   : > { %5595 = vmatprep.subr.mxu0 %v5991_v11  ;;  %5600 = vmatprep.subr.mxu1 %v5991_v11 }
 0x313   : > { %5588 = vmatmul.mubr.msk.f32.vlgmr.msra.gmra.mxu0 %vm625_vm0, %v6198_v22  ;;  %5593 = vmatmul.mubr.msk.f32.vlgmr.msra.gmra.mxu1 %vm625_vm0, %v6223_v27 }
 0x314   : > { %5596 = vmatpush3.xpose.msk.msra.mxu0 %vm625_vm0, %v6209_v24  ;;  %5601 = vmatpush3.msra.mxu1 %v6155_v13 }
 0x315   : > { %5597 = vmatprep.mubr.msk.f32.mxu0 %vm5992_vm1, %v5991_v11  ;;  %5605 = vmatprep.subr.mxu0 %v5991_v11 }
 0x316   : > { %5602 = vmatprep.mubr.msk.f32.mxu1 %vm5992_vm1, %v5991_v11  ;;  %5610 = vmatprep.subr.mxu1 %v5991_v11 }
 0x317   : > { %5598 = vmatmul.mubr.msk.f32.vlgmr.msra.gmra.mxu0 %vm625_vm0, %v6220_v26 }
 0x318   : > { %5606 = vmatpush3.msra.mxu0 %v6153_v12  ;;  %5607 = vmatprep.mubr.msk.f32.mxu0 %vm5992_vm1, %v5991_v11 }
 0x319   : > { %5615 = vmatprep.subr.mxu0 %v5991_v11 }
 0x3ab   : > { %v6391_v7 = vpop.f32.mrf.mxu1 }
 0x3ad   : > { %v5524_v8 = vpop.f32.mrf.mxu1 }
 0x3ae   : > { %v2147_v8 = vrot.slane %v2119_v59, %v6259_v34 }
 0x3af   : > { %v6393_v58 = vpop.f32.mrf.mxu0 }
 0x3b1   : > { %v5529_v9 = vpop.f32.mrf.mxu0 }
 0x3b2   : > { %v2151_v9 = vrot.slane %v2120_v60, %v6259_v34 }
 0x3b3   : > { %v6395_v2 = vpop.f32.mrf.mxu1 }
 0x3b5   : > { %v5534_v28 = vpop.f32.mrf.mxu1 }
 0x3b6   : > { %v2121_v28 = vmul.f32 1e+30, %v5286_v61 }
 0x3b7   : > { %v6403_v29 = vpop.f32.mrf.mxu0 }
 0x3b8   : > { %v2155_v44 = vrot.slane %v2121_v28, %v6259_v34 }
 0x3b9   : > { %v5539_v30 = vpop.f32.mrf.mxu0 }
 0x3bb   : > { %v6406_v32 = vpop.f32.mrf.mxu1 }
 0x3bc   : > { %7365 = vst [vmem:[#allocation15_spill] sm:$0xff] %v6406_v32 }
 0x3bd   : > { %v5544_v35 = vpop.f32.mrf.mxu1 }
 0x3be   : > { %v5288_v35 = vadd.f32 -1.0, %v2107_v5 }
 0x3bf   : > { %v6410_v38 = vpop.f32.mrf.mxu0 }
 0x3c0   : > { %7366 = vst [vmem:[#allocation16_spill] sm:$0xff] %v6410_v38 }
 0x3c1   : > { %v5549_v45 = vpop.f32.mrf.mxu0 }
 0x3c3   : > { %v6414_v46 = vpop.f32.mrf.mxu1 }
 0x3c4   : > { %7367 = vst [vmem:[#allocation17_spill] sm:$0xff] %v6414_v46 }
 0x3c5   : > { %v5554_v54 = vpop.f32.mrf.mxu1 }
 0x3c7   : > { %v6419_v56 = vpop.f32.mrf.mxu0  ;;  %v2238_v57 = vpop.f32.mrf.mxu1 }
 0x3c8   : > { %7368 = vst [vmem:[#allocation18_spill] sm:$0xff] %v6419_v56  ;;  %v2239_v62 = vadd.f32 %v2238_v57, %v2135_v49  ;;  %v2123_v49 = vmul.f32 1e+30, %v5288_v35 }
 0x3c9   : > { %v5559_v3 = vpop.f32.mrf.mxu0  ;;  %v5564_v4 = vpop.f32.mrf.mxu1 }
 0x3ca   : > { %v2732_v42 = vsel %vm1427_vm2, %v2239_v62, -inf  ;;  %v2163_v61 = vrot.slane %v2123_v49, %v6259_v34 }
 0x3cb   : > { %v2308_v6 = vpop.f32.mrf.mxu0  ;;  %2733 = vmax.xlane.f32.xlu0 %v2732_v42  ;;  %v2378_v50 = vpop.f32.mrf.mxu1 }
 0x3cc   : > { %v2309_v10 = vadd.f32 %v2308_v6, %v2139_v63  ;;  %v2379_v30 = vadd.f32 %v2378_v50, %v2143_v0 }
 0x3cd   : > { %v5569_v36 = vpop.f32.mrf.mxu0  ;;  %v5574_v37 = vpop.f32.mrf.mxu1 }
 0x3ce   : > { %v2735_v39 = vsel %vm1427_vm2, %v2309_v10, -inf  ;;  %v2738_v40 = vsel %vm1427_vm2, %v2379_v30, -inf }
 0x3cf   : > { %2736 = vmax.xlane.f32.xlu1 %v2735_v39  ;;  %v2448_v41 = vpop.f32.mrf.mxu0  ;;  %2739 = vmax.xlane.f32.xlu0 %v2738_v40  ;;  %v2518_v43 = vpop.f32.mrf.mxu1 }
 0x3d0   : > { %v2449_v45 = vadd.f32 %v2448_v41, %v2147_v8  ;;  %v2519_v47 = vadd.f32 %v2518_v43, %v2151_v9 }
 0x3d1   : > { %v5579_v51 = vpop.f32.mrf.mxu0  ;;  %v5584_v52 = vpop.f32.mrf.mxu1 }
 0x3d2   : > { %v2741_v53 = vsel %vm1427_vm2, %v2449_v45, -inf  ;;  %v2744_v54 = vsel %vm1427_vm2, %v2519_v47, -inf }
 0x3d3   : > { %2742 = vmax.xlane.f32.xlu1 %v2741_v53  ;;  %v2588_v55 = vpop.f32.mrf.mxu0  ;;  %2745 = vmax.xlane.f32.xlu0 %v2744_v54  ;;  %v2658_v57 = vpop.f32.mrf.mxu1 }
 0x3d4   : > { %v2589_v59 = vadd.f32 %v2588_v55, %v2155_v44  ;;  %v2659_v60 = vadd.f32 %v2658_v57, %v2159_v48 }
 0x3d5   : > { %v5589_v63 = vpop.f32.mrf.mxu0  ;;  %v5594_v0 = vpop.f32.mrf.mxu1 }
 0x3d6   : > { %v2747_v1 = vsel %vm1427_vm2, %v2589_v59, -inf  ;;  %v2750_v3 = vsel %vm1427_vm2, %v2659_v60, -inf }
 0x3d7   : > { %2748 = vmax.xlane.f32.xlu1 %v2747_v1  ;;  %v2728_v4 = vpop.f32.mrf.mxu0  ;;  %2751 = vmax.xlane.f32.xlu0 %v2750_v3 }
 0x3d8   : > { %v2729_v5 = vadd.f32 %v2728_v4, %v2163_v61 }
 0x3d9   : > { %v5599_v42 = vpop.f32.mrf.mxu0 }
 0x3da   : > { %v2753_v6 = vsel %vm1427_vm2, %v2729_v5, -inf }
 0x3db   : > { %2754 = vmax.xlane.f32.xlu1 %v2753_v6 }
 0x454   : > { %v2734_v50 = vpop.xlane.xlu0 %2733 }
 0x455   : > { %v2756_v8 = vsub.f32 %v2239_v62, %v2734_v50  ;;  %v5313_v50 = vld [vmem:[%s7320_s6] ss:$0 sm:$0xff] }
 0x457   : > { %v2764_v9 = vmul.f32 1.442695, %v2756_v8 }
 0x458   : > { %v2737_v28 = vpop.xlane.xlu1 %2736  ;;  %v2740_v33 = vpop.xlane.xlu0 %2739 }
 0x459   : > { %5827 = vpow2.f32 %v2764_v9  ;;  %v2757_v35 = vsub.f32 %v2309_v10, %v2737_v28  ;;  %v2758_v36 = vsub.f32 %v2379_v30, %v2740_v33  ;;  %v3411_v9 = vmul.f32 %v5313_v50, %v6155_v13 }
 0x45b   : > { %v2766_v37 = vmul.f32 1.442695, %v2757_v35  ;;  %v2768_v39 = vmul.f32 1.442695, %v2758_v36  ;;  %v3412_v35 = vmul.f32 %v5313_v50, %v6160_v15  ;;  %v3427_v36 = vsel %vm625_vm0, %v3411_v9, 0.0 }
 0x45c   : > { %v2743_v40 = vpop.xlane.xlu1 %2742  ;;  %v2746_v41 = vpop.xlane.xlu0 %2745  ;;  %v3425_v9 = vmul.f32 %v6209_v24, %v5313_v50 }
 0x45d   : > { %5829 = vpow2.f32 %v2766_v37  ;;  %v2759_v43 = vsub.f32 %v2449_v45, %v2743_v40  ;;  %v2760_v44 = vsub.f32 %v2519_v47, %v2746_v41  ;;  %v3413_v37 = vmul.f32 %v6153_v12, %v5313_v50 }
 0x45e   : > { %5831 = vpow2.f32 %v2768_v39  ;;  %v3430_v39 = vsel %vm625_vm0, %v3412_v35, 0.0  ;;  %v3414_v40 = vmul.f32 %v6157_v14, %v5313_v50  ;;  %v3426_v35 = vmul.f32 %v6220_v26, %v5313_v50 }
 0x45f   : > { %v2770_v48 = vmul.f32 1.442695, %v2759_v43  ;;  %v2772_v49 = vmul.f32 1.442695, %v2760_v44  ;;  %v3433_v41 = vsel %vm625_vm0, %v3413_v37, 0.0  ;;  %v3415_v43 = vmul.f32 %v5313_v50, %v6168_v17 }
 0x460   : > { %v2749_v51 = vpop.xlane.xlu1 %2748  ;;  %v2752_v52 = vpop.xlane.xlu0 %2751  ;;  %v3436_v44 = vsel %vm625_vm0, %v3414_v40, 0.0  ;;  %v3472_v37 = vsel %vm625_vm0, %v3426_v35, 0.0 }
 0x461   : > { %5833 = vpow2.f32 %v2770_v48  ;;  %v2761_v62 = vsub.f32 %v2589_v59, %v2749_v51  ;;  %v2762_v53 = vsub.f32 %v2659_v60, %v2752_v52  ;;  %v3416_v48 = vmul.f32 %v5313_v50, %v6179_v19 }
 0x462   : > { %5835 = vpow2.f32 %v2772_v49  ;;  %v3439_v49 = vsel %vm625_vm0, %v3415_v43, 0.0  ;;  %v3417_v51 = vmul.f32 %v6165_v16, %v5313_v50 }
 0x463   : > { %v2774_v54 = vmul.f32 1.442695, %v2761_v62  ;;  %v2776_v55 = vmul.f32 1.442695, %v2762_v53  ;;  %v3442_v52 = vsel %vm625_vm0, %v3416_v48, 0.0  ;;  %v3418_v62 = vmul.f32 %v6176_v18, %v5313_v50 }
 0x464   : > { %v2755_v10 = vpop.xlane.xlu1 %2754  ;;  %v3445_v53 = vsel %vm625_vm0, %v3417_v51, 0.0 }
 0x465   : > { %5837 = vpow2.f32 %v2774_v54  ;;  %v2763_v30 = vsub.f32 %v2729_v5, %v2755_v10  ;;  %v3419_v54 = vmul.f32 %v5313_v50, %v6190_v21  ;;  %v3420_v10 = vmul.f32 %v5313_v50, %v6201_v23 }
 0x466   : > { %v6437_v57 = vpop.eup %5827  ;;  %5839 = vpow2.f32 %v2776_v55  ;;  %v3448_v55 = vsel %vm625_vm0, %v3418_v62, 0.0 }
 0x467   : > { %v2778_v61 = vmul.f32 1.442695, %v2763_v30  ;;  %v2780_v45 = vsel %vm1427_vm2, %v6437_v57, 0.0  ;;  %v3451_v30 = vsel %vm625_vm0, %v3419_v54, 0.0 }
 0x468   : > { %2781 = vadd.xlane.f32.xlu0 %v2780_v45  ;;  %v3454_v45 = vsel %vm625_vm0, %v3420_v10, 0.0 }
 0x469   : > { %5841 = vpow2.f32 %v2778_v61  ;;  %v3421_v61 = vmul.f32 %v6187_v20, %v5313_v50 }
 0x46a   : > { %v6441_v47 = vpop.eup %5829 }
 0x46b   : > { %v6443_v63 = vpop.eup %5831  ;;  %v2783_v59 = vsel %vm1427_vm2, %v6441_v47, 0.0 }
 0x46c   : > { %2784 = vadd.xlane.f32.xlu1 %v2783_v59  ;;  %v2786_v60 = vsel %vm1427_vm2, %v6443_v63, 0.0  ;;  %v3422_v59 = vmul.f32 %v6198_v22, %v5313_v50 }
 0x46d   : > { %2787 = vadd.xlane.f32.xlu0 %v2786_v60  ;;  %v3457_v60 = vsel %vm625_vm0, %v3421_v61, 0.0 }
 0x46e   : > { %v6449_v0 = vpop.eup %5833 }
 0x46f   : > { %v6451_v1 = vpop.eup %5835  ;;  %v2789_v3 = vsel %vm1427_vm2, %v6449_v0, 0.0 }
 0x470   : > { %2790 = vadd.xlane.f32.xlu1 %v2789_v3  ;;  %v2792_v4 = vsel %vm1427_vm2, %v6451_v1, 0.0  ;;  %v3423_v3 = vmul.f32 %v5313_v50, %v6212_v25 }
 0x471   : > { %2793 = vadd.xlane.f32.xlu0 %v2792_v4  ;;  %v3460_v4 = vsel %vm625_vm0, %v3422_v59, 0.0 }
 0x472   : > { %v6457_v5 = vpop.eup %5837 }
 0x473   : > { %v6459_v42 = vpop.eup %5839  ;;  %v2795_v6 = vsel %vm1427_vm2, %v6457_v5, 0.0 }
 0x474   : > { %2796 = vadd.xlane.f32.xlu1 %v2795_v6  ;;  %v2798_v8 = vsel %vm1427_vm2, %v6459_v42, 0.0  ;;  %v3424_v6 = vmul.f32 %v5313_v50, %v6223_v27 }
 0x475   : > { %2799 = vadd.xlane.f32.xlu0 %v2798_v8  ;;  %v3463_v8 = vsel %vm625_vm0, %v3423_v3, 0.0 }
 0x476   : > { %v6469_v28 = vpop.eup %5841 }
 0x477   : > { %v2801_v33 = vsel %vm1427_vm2, %v6469_v28, 0.0 }
 0x478   : > { %2802 = vadd.xlane.f32.xlu1 %v2801_v33  ;;  %v3466_v33 = vsel %vm625_vm0, %v3424_v6, 0.0 }
 0x479   : > { %3428 = vadd.xlane.f32.xlu0 %v3427_v36  ;;  %v3469_v36 = vsel %vm625_vm0, %v3425_v9, 0.0 }
 0x47c   : > { %3431 = vadd.xlane.f32.xlu1 %v3430_v39  ;;  %v5993_v39 = vmov 0  }
 0x47d   : > { %3434 = vadd.xlane.f32.xlu0 %v3433_v41  ;;  %5736 = vset.pattern.permute.xlu1 %v5993_v39 }
 0x47e   : > { %5735 = vset.pattern.permute.xlu0 %v5993_v39 }
 0x480   : > { %3437 = vadd.xlane.f32.xlu1 %v3436_v44 }
 0x481   : > { %3440 = vadd.xlane.f32.xlu0 %v3439_v49 }
 0x484   : > { %3443 = vadd.xlane.f32.xlu1 %v3442_v52  ;;  %v6504_v52 = vld [vmem:[#allocation2] ss:$0 sm:$0xff] }
 0x485   : > { %3446 = vadd.xlane.f32.xlu0 %v3445_v53 }
 0x488   : > { %3449 = vadd.xlane.f32.xlu1 %v3448_v55 }
 0x489   : > { %3452 = vadd.xlane.f32.xlu0 %v3451_v30 }
 0x48c   : > { %3455 = vadd.xlane.f32.xlu1 %v3454_v45 }
 0x48d   : > { %3458 = vadd.xlane.f32.xlu0 %v3457_v60 }
 0x490   : > { %3461 = vadd.xlane.f32.xlu1 %v3460_v4 }
 0x491   : > { %3464 = vadd.xlane.f32.xlu0 %v3463_v8 }
 0x494   : > { %3467 = vadd.xlane.f32.xlu1 %v3466_v33 }
 0x495   : > { %3470 = vadd.xlane.f32.xlu0 %v3469_v36 }
 0x498   : > { %3473 = vadd.xlane.f32.xlu1 %v3472_v37 }
 0x4f1   : > { %v2782_v40 = vpop.xlane.xlu0 %2781 }
 0x4f2   : > { %5843 = vrcp.f32 %v2782_v40 }
 0x4f5   : > { %v2785_v41 = vpop.xlane.xlu1 %2784 }
 0x4f6   : > { %5845 = vrcp.f32 %v2785_v41  ;;  %v2788_v43 = vpop.xlane.xlu0 %2787 }
 0x4f7   : > { %5847 = vrcp.f32 %v2788_v43 }
 0x4f9   : > { %v2791_v44 = vpop.xlane.xlu1 %2790 }
 0x4fa   : > { %5849 = vrcp.f32 %v2791_v44  ;;  %v2794_v48 = vpop.xlane.xlu0 %2793 }
 0x4fb   : > { %5851 = vrcp.f32 %v2794_v48 }
 0x4fd   : > { %v2797_v50 = vpop.xlane.xlu1 %2796 }
 0x4fe   : > { %5853 = vrcp.f32 %v2797_v50  ;;  %v2800_v49 = vpop.xlane.xlu0 %2799 }
 0x4ff   : > { %v5844_v51 = vpop.eup %5843  ;;  %5855 = vrcp.f32 %v2800_v49 }
 0x500   : > { %v2805_v62 = vmul.f32 %v5844_v51, %v6437_v57 }
 0x501   : > { %v2803_v53 = vpop.xlane.xlu1 %2802 }
 0x502   : > { %5857 = vrcp.f32 %v2803_v53  ;;  %v3429_v54 = vpop.xlane.xlu0 %3428  ;;  %5603 = vmatmul.mubr.msk.f32.vlgmr.msra.gmra.mxu1 %vm1427_vm2, %v2805_v62 }
 0x503   : > { %v5846_v55 = vpop.eup %5845  ;;  %v3482_v10 = vadd.f32 %v6504_v52, %v3429_v54  ;;  %5611 = vmatpush3.msra.mxu1 %v6168_v17  ;;  %5612 = vmatprep.mubr.msk.f32.mxu1 %vm5992_vm1, %v5991_v11 }
 0x504   : > { %v5848_v30 = vpop.eup %5847  ;;  %5620 = vmatprep.subr.mxu1 %v5991_v11  ;;  %v2807_v61 = vmul.f32 %v5846_v55, %v6441_v47 }
 0x505   : > { %v5315_v45 = vmul.f32 -1.442695, %v3482_v10  ;;  %v3432_v57 = vpop.xlane.xlu1 %3431  ;;  %v2809_v59 = vmul.f32 %v5848_v30, %v6443_v63 }
 0x506   : > { %v3483_v60 = vadd.f32 %v6504_v52, %v3432_v57  ;;  %v3435_v3 = vpop.xlane.xlu0 %3434  ;;  %5608 = vmatmul.mubr.msk.f32.vlgmr.msra.gmra.mxu0 %vm1427_vm2, %v2807_v61 }
 0x507   : > { %v5850_v4 = vpop.eup %5849  ;;  %5859 = vpow2.f32 %v5315_v45  ;;  %v3484_v6 = vadd.f32 %v6504_v52, %v3435_v3  ;;  %5613 = vmatmul.mubr.msk.f32.vlgmr.msra.gmra.mxu1 %vm1427_vm2, %v2809_v59  ;;  %5616 = vmatpush3.msra.mxu0 %v6165_v16 }
 0x508   : > { %v5852_v8 = vpop.eup %5851  ;;  %v5316_v9 = vmul.f32 -1.442695, %v3483_v60  ;;  %5621 = vmatpush3.msra.mxu1 %v6190_v21  ;;  %5617 = vmatprep.mubr.msk.f32.mxu0 %vm5992_vm1, %v5991_v11  ;;  %v2811_v47 = vmul.f32 %v5850_v4, %v6449_v0 }
 0x509   : > { %v5317_v63 = vmul.f32 -1.442695, %v3484_v6  ;;  %5625 = vmatprep.subr.mxu0 %v5991_v11  ;;  %v3438_v33 = vpop.xlane.xlu1 %3437  ;;  %5622 = vmatprep.mubr.msk.f32.mxu1 %vm5992_vm1, %v5991_v11  ;;  %v2813_v35 = vmul.f32 %v5852_v8, %v6451_v1 }
 0x50a   : > { %5861 = vpow2.f32 %v5316_v9  ;;  %v3485_v36 = vadd.f32 %v6504_v52, %v3438_v33  ;;  %5630 = vmatprep.subr.mxu1 %v5991_v11  ;;  %v3441_v37 = vpop.xlane.xlu0 %3440  ;;  %5618 = vmatmul.mubr.msk.f32.vlgmr.msra.gmra.mxu0 %vm1427_vm2, %v2811_v47 }
 0x50b   : > { %v5854_v39 = vpop.eup %5853  ;;  %5863 = vpow2.f32 %v5317_v63  ;;  %v3486_v0 = vadd.f32 %v6504_v52, %v3441_v37  ;;  %5623 = vmatmul.mubr.msk.f32.vlgmr.msra.gmra.mxu1 %vm1427_vm2, %v2813_v35  ;;  %5626 = vmatpush3.msra.mxu0 %v6187_v20 }
 0x50c   : > { %v5856_v40 = vpop.eup %5855  ;;  %v5318_v41 = vmul.f32 -1.442695, %v3485_v36  ;;  %5631 = vmatpush3.msra.mxu1 %v6212_v25  ;;  %5627 = vmatprep.mubr.msk.f32.mxu0 %vm5992_vm1, %v5991_v11  ;;  %v2815_v1 = vmul.f32 %v5854_v39, %v6457_v5 }
 0x50d   : > { %5635 = vmatprep.subr.mxu0 %v5991_v11  ;;  %v3444_v43 = vpop.xlane.xlu1 %3443  ;;  %5632 = vmatprep.mubr.msk.f32.mxu1 %vm5992_vm1, %v5991_v11  ;;  %v2817_v44 = vmul.f32 %v5856_v40, %v6459_v42  ;;  %v5319_v48 = vmul.f32 -1.442695, %v3486_v0 }
 0x50e   : > { %5865 = vpow2.f32 %v5318_v41  ;;  %v3487_v50 = vadd.f32 %v6504_v52, %v3444_v43  ;;  %v3447_v49 = vpop.xlane.xlu0 %3446  ;;  %5628 = vmatmul.mubr.msk.f32.vlgmr.msra.gmra.mxu0 %vm1427_vm2, %v2815_v1 }
 0x50f   : > { %v5858_v51 = vpop.eup %5857  ;;  %5633 = vmatmul.mubr.msk.f32.vlgmr.msra.gmra.mxu1 %vm1427_vm2, %v2817_v44  ;;  %5636 = vmatpush3.msra.mxu0 %v6209_v24  ;;  %v3488_v62 = vadd.f32 %v6504_v52, %v3447_v49  ;;  %5867 = vpow2.f32 %v5319_v48 }
 0x510   : > { %5637 = vmatprep.mubr.msk.f32.mxu0 %vm5992_vm1, %v5991_v11  ;;  %v2819_v5 = vmul.f32 %v5858_v51, %v6469_v28  ;;  %v5320_v53 = vmul.f32 -1.442695, %v3487_v50 }
 0x511   : > { %v3450_v42 = vpop.xlane.xlu1 %3449  ;;  %v5321_v30 = vmul.f32 -1.442695, %v3488_v62 }
 0x512   : > { %v3453_v54 = vpop.xlane.xlu0 %3452  ;;  %5638 = vmatmul.mubr.msk.f32.vlgmr.msra.gmra.mxu0 %vm1427_vm2, %v2819_v5  ;;  %v3489_v61 = vadd.f32 %v6504_v52, %v3450_v42  ;;  %5869 = vpow2.f32 %v5320_v53 }
 0x513   : > { %v3490_v6 = vadd.f32 %v6504_v52, %v3453_v54 }
 0x514   : > { %v5860_v55 = vpop.eup %5859  ;;  %v5322_v4 = vmul.f32 -1.442695, %v3489_v61 }
 0x515   : > { %v3546_v10 = vadd.f32 1.0, %v5860_v55  ;;  %v3456_v45 = vpop.xlane.xlu1 %3455  ;;  %v5323_v35 = vmul.f32 -1.442695, %v3490_v6 }
 0x516   : > { %v3491_v57 = vadd.f32 %v6504_v52, %v3456_v45  ;;  %v3459_v28 = vpop.xlane.xlu0 %3458 }
 0x517   : > { %v5862_v11 = vpop.eup %5861  ;;  %5871 = vrcp.f32 %v3546_v10  ;;  %v3492_v36 = vadd.f32 %v6504_v52, %v3459_v28 }
 0x518   : > { %v5864_v59 = vpop.eup %5863  ;;  %v3547_v60 = vadd.f32 1.0, %v5862_v11  ;;  %v5324_v3 = vmul.f32 -1.442695, %v3491_v57  ;;  %5873 = vpow2.f32 %v5321_v30 }
 0x519   : > { %v3462_v8 = vpop.xlane.xlu1 %3461  ;;  %v3548_v9 = vadd.f32 1.0, %v5864_v59  ;;  %v5325_v43 = vmul.f32 -1.442695, %v3492_v36 }
 0x51a   : > { %5875 = vrcp.f32 %v3547_v60  ;;  %v3493_v47 = vadd.f32 %v6504_v52, %v3462_v8  ;;  %v3465_v37 = vpop.xlane.xlu0 %3464 }
 0x51b   : > { %v5866_v63 = vpop.eup %5865  ;;  %5877 = vpow2.f32 %v5324_v3  ;;  %v3494_v44 = vadd.f32 %v6504_v52, %v3465_v37 }
 0x51c   : > { %v5326_v33 = vmul.f32 -1.442695, %v3493_v47  ;;  %5879 = vpow2.f32 %v5322_v4  ;;  %v3549_v0 = vadd.f32 1.0, %v5866_v63  ;;  %v5868_v41 = vpop.eup %5867 }
 0x51d   : > { %v3468_v39 = vpop.xlane.xlu1 %3467  ;;  %5881 = vrcp.f32 %v3548_v9  ;;  %v3550_v50 = vadd.f32 1.0, %v5868_v41  ;;  %v5327_v53 = vmul.f32 -1.442695, %v3494_v44 }
 0x51e   : > { %v3495_v40 = vadd.f32 %v6504_v52, %v3468_v39  ;;  %5883 = vpow2.f32 %v5326_v33  ;;  %v3471_v5 = vpop.xlane.xlu0 %3470 }
 0x51f   : > { %5885 = vpow2.f32 %v5323_v35  ;;  %v5870_v51 = vpop.eup %5869  ;;  %v3496_v10 = vadd.f32 %v6504_v52, %v3471_v5 }
 0x520   : > { %v5328_v1 = vmul.f32 -1.442695, %v3495_v40  ;;  %5887 = vrcp.f32 %v3549_v0  ;;  %v3551_v55 = vadd.f32 1.0, %v5870_v51 }
 0x521   : > { %v3474_v48 = vpop.xlane.xlu1 %3473  ;;  %v5329_v28 = vmul.f32 -1.442695, %v3496_v10  ;;  %v5789_v10 = vld [vmem:[%s7322_s8 + $0x10] sm:$0xff]  }
 0x522   : > { %v3497_v49 = vadd.f32 %v6504_v52, %v3474_v48  ;;  %5889 = vpow2.f32 %v5328_v1 }
 0x523   : > { %5891 = vpow2.f32 %v5325_v43 }
 0x524   : > { %v5872_v62 = vpop.eup %5871  ;;  %v5330_v42 = vmul.f32 -1.442695, %v3497_v49  ;;  %5893 = vrcp.f32 %v3550_v50 }
 0x525   : > { %3708 = vperm.xlu0 %5735, %v5872_v62   ;;  %v5874_v54 = vpop.eup %5873 }
 0x526   : > { %5895 = vpow2.f32 %v5330_v42  ;;  %v3552_v45 = vadd.f32 1.0, %v5874_v54  ;;  %v5787_v54 = vld [vmem:[%s7322_s8 + $0x18] sm:$0xff]  }
 0x527   : > { %v5876_v30 = vpop.eup %5875  ;;  %5897 = vpow2.f32 %v5327_v53  ;;  %5640 = vmatprep.subr.bf16.mxu1 %v5787_v54 }
 0x528   : > { %3713 = vperm.xlu1 %5736, %v5876_v30   ;;  %v5878_v61 = vpop.eup %5877  ;;  %5899 = vrcp.f32 %v3551_v55  ;;  %v5788_v55 = vld [vmem:[%s7323_s9 + $0x18] sm:$0xff]   ;;  %v3608_v30 = vsel %vm625_vm0, %v6153_v12, 0.0  ;;  %5641 = vmatpush3.bf16.msra.mxu1 %v5787_v54 }
 0x529   : > { %v5880_v57 = vpop.eup %5879  ;;  %v3555_v11 = vadd.f32 1.0, %v5878_v61  ;;  %v5790_v61 = vld [vmem:[%s7323_s9 + $0x10] sm:$0xff]   ;;  %5664 = vmatprep.subr.bf16.mxu0 %v5788_v55  ;;  %5642 = vmatprep.subr.bf16.mxu1 %v5789_v10 }
 0x52a   : > { %v5882_v59 = vpop.eup %5881  ;;  %v3553_v4 = vadd.f32 1.0, %v5880_v57  ;;  %5665 = vmatpush3.bf16.msra.mxu0 %v5788_v55  ;;  %v3609_v57 = vrot.slane %v3608_v30, 4 }
 0x52b   : > { %5901 = vrcp.f32 %v3555_v11  ;;  %v5884_v60 = vpop.eup %5883  ;;  %5666 = vmatprep.subr.bf16.mxu0 %v5790_v61 }
 0x52c   : > { %3718 = vperm.xlu1 %5736, %v5882_v59   ;;  %5903 = vrcp.f32 %v3552_v45  ;;  %v5886_v3 = vpop.eup %5885  ;;  %v3557_v6 = vadd.f32 1.0, %v5884_v60  ;;  %v3594_v45 = vsel %vm625_vm0, %v6155_v13, 0.0  ;;  %v3601_v59 = vsel %vm625_vm0, %v6160_v15, 0.0  ;;  %5643 = vmatpush3.bf16.msra.mxu1 %v5789_v10 }
 0x52d   : > { %5905 = vpow2.f32 %v5329_v28  ;;  %v5888_v52 = vpop.eup %5887  ;;  %v3554_v47 = vadd.f32 1.0, %v5886_v3  ;;  %v3595_v11 = vrot.slane %v3594_v45, 4  ;;  %v3615_v28 = vsel %vm625_vm0, %v6157_v14, 0.0 }
 0x52e   : > { %5907 = vrcp.f32 %v3557_v6  ;;  %v3636_v3 = vsel %vm625_vm0, %v6165_v16, 0.0  ;;  %5667 = vmatpush3.bf16.msra.mxu0 %v5790_v61 }
 0x52f   : > { %v5890_v8 = vpop.eup %5889  ;;  %5909 = vrcp.f32 %v3553_v4  ;;  %v3610_v4 = vadd.f32 %v3609_v57, %v3608_v30  ;;  %v3596_v6 = vadd.f32 %v3595_v11, %v3594_v45  ;;  %v3692_v45 = vsel %vm625_vm0, %v6209_v24, 0.0 }
 0x530   : > { %3723 = vperm.xlu1 %5736, %v5888_v52   ;;  %v5892_v9 = vpop.eup %5891  ;;  %v3559_v63 = vadd.f32 1.0, %v5890_v8  ;;  %v3616_v52 = vrot.slane %v3615_v28, 4  ;;  %v3622_v8 = vsel %vm625_vm0, %v6168_v17, 0.0 }
 0x531   : > { %v5894_v33 = vpop.eup %5893  ;;  %v3556_v39 = vadd.f32 1.0, %v5892_v9  ;;  %v3602_v9 = vrot.slane %v3601_v59, 4 }
 0x532   : > { %5911 = vrcp.f32 %v3559_v63  ;;  %v3637_v63 = vrot.slane %v3636_v3, 4 }
 0x533   : > { %v5896_v35 = vpop.eup %5895  ;;  %5913 = vrcp.f32 %v3554_v47  ;;  %v3629_v47 = vsel %vm625_vm0, %v6179_v19, 0.0 }
 0x534   : > { %3728 = vperm.xlu1 %5736, %v5894_v33   ;;  %v3561_v36 = vadd.f32 1.0, %v5896_v35  ;;  %v5898_v37 = vpop.eup %5897  ;;  %v3643_v35 = vsel %vm625_vm0, %v6176_v18, 0.0 }
 0x535   : > { %v5900_v0 = vpop.eup %5899  ;;  %v3558_v1 = vadd.f32 1.0, %v5898_v37  ;;  %v3623_v37 = vrot.slane %v3622_v8, 4 }
 0x536   : > { %5915 = vrcp.f32 %v3561_v36  ;;  %v3611_v36 = vrot.slane %v3610_v4, 2 }
 0x537   : > { %5917 = vrcp.f32 %v3556_v39  ;;  %v3671_v39 = vsel %vm625_vm0, %v6198_v22, 0.0  ;;  %v3624_v54 = vadd.f32 %v3623_v37, %v3622_v8  ;;  %v3699_v8 = vsel %vm625_vm0, %v6220_v26, 0.0 }
 0x538   : > { %3733 = vperm.xlu1 %5736, %v5900_v0   ;;  %v5902_v40 = vpop.eup %5901  ;;  %5919 = vrcp.f32 %v3558_v1  ;;  %v3597_v0 = vrot.slane %v3596_v6, 2  ;;  %v3657_v1 = vsel %vm625_vm0, %v6201_v23, 0.0 }
 0x539   : > { %v5904_v41 = vpop.eup %5903  ;;  %3753 = vperm.xlu0 %5735, %v5902_v40   ;;  %v3617_v40 = vadd.f32 %v3616_v52, %v3615_v28  ;;  %v3658_v55 = vrot.slane %v3657_v1, 4  ;;  %v3625_v31 = vrot.slane %v3624_v54, 2 }
 0x53a   : > { %v5906_v43 = vpop.eup %5905 }
 0x53b   : > { %v5908_v44 = vpop.eup %5907  ;;  %v3560_v48 = vadd.f32 1.0, %v5906_v43  ;;  %v3603_v43 = vadd.f32 %v3602_v9, %v3601_v59  ;;  %v3618_v10 = vrot.slane %v3617_v40, 2 }
 0x53c   : > { %3738 = vperm.xlu1 %5736, %v5904_v41   ;;  %v5910_v50 = vpop.eup %5909  ;;  %v3630_v41 = vrot.slane %v3629_v47, 4 }
 0x53d   : > { %3763 = vperm.xlu0 %5735, %v5908_v44   ;;  %5921 = vrcp.f32 %v3560_v48  ;;  %v3638_v44 = vadd.f32 %v3637_v63, %v3636_v3  ;;  %v3644_v48 = vrot.slane %v3643_v35, 4  ;;  %v3598_v3 = vadd.f32 %v3597_v0, %v3596_v6 }
 0x53e   : > { %v3631_v30 = vadd.f32 %v3630_v41, %v3629_v47  ;;  %v3604_v52 = vrot.slane %v3603_v43, 2  ;;  %v3693_v47 = vrot.slane %v3692_v45, 4  ;;  %v3619_v37 = vadd.f32 %v3618_v10, %v3617_v40 }
 0x53f   : > { %v5912_v49 = vpop.eup %5911  ;;  %v3645_v57 = vadd.f32 %v3644_v48, %v3643_v35  ;;  %v3639_v63 = vrot.slane %v3638_v44, 2 }
 0x540   : > { %3743 = vperm.xlu1 %5736, %v5910_v50   ;;  %v5914_v51 = vpop.eup %5913  ;;  %v3650_v50 = vsel %vm625_vm0, %v6190_v21, 0.0  ;;  %v3632_v41 = vrot.slane %v3631_v30, 2  ;;  %v3605_v6 = vadd.f32 %v3604_v52, %v3603_v43  ;;  %v3694_v26 = vadd.f32 %v3693_v47, %v3692_v45 }
 0x541   : > { %3773 = vperm.xlu0 %5735, %v5912_v49   ;;  %v3651_v61 = vrot.slane %v3650_v50, 4  ;;  %v3646_v35 = vrot.slane %v3645_v57, 2  ;;  %v3640_v38 = vadd.f32 %v3639_v63, %v3638_v44  ;;  %v3620_v40 = vrot.slane %v3619_v37, 1 }
 0x542   : > { %v3633_v10 = vadd.f32 %v3632_v41, %v3631_v30  ;;  %v3606_v43 = vrot.slane %v3605_v6, 1 }
 0x543   : > { %v5916_v5 = vpop.eup %5915  ;;  %v3652_v56 = vadd.f32 %v3651_v61, %v3650_v50  ;;  %v3647_v61 = vadd.f32 %v3646_v35, %v3645_v57  ;;  %v6621_v30 = vadd.f32 %v3620_v40, %v3619_v37 }
 0x544   : > { %3748 = vperm.xlu1 %5736, %v5914_v51   ;;  %v5918_v62 = vpop.eup %5917  ;;  %v3672_v51 = vrot.slane %v3671_v39, 4  ;;  %v3634_v57 = vrot.slane %v3633_v10, 1  ;;  %v3607_v18 = vadd.f32 %v3606_v43, %v3605_v6 }
 0x545   : > { %3783 = vperm.xlu0 %5735, %v5916_v5   ;;  %v5920_v42 = vpop.eup %5919  ;;  %v3685_v5 = vsel %vm625_vm0, %v6223_v27, 0.0  ;;  %v3653_v50 = vrot.slane %v3652_v56, 2 }
 0x546   : > { %v3686_v11 = vrot.slane %v3685_v5, 4  ;;  %v3673_v34 = vadd.f32 %v3672_v51, %v3671_v39  ;;  %v3700_v39 = vrot.slane %v3699_v8, 4  ;;  %v3599_v51 = vrot.slane %v3598_v3, 1 }
 0x547   : > { %v3654_v47 = vadd.f32 %v3653_v50, %v3652_v56 }
 0x548   : > { %3758 = vperm.xlu1 %5736, %v5918_v62   ;;  %v3664_v62 = vsel %vm625_vm0, %v6187_v20, 0.0  ;;  %v3687_v48 = vadd.f32 %v3686_v11, %v3685_v5  ;;  %v3674_v32 = vrot.slane %v3673_v34, 2  ;;  %v3641_v11 = vrot.slane %v3640_v38, 1 }
 0x549   : > { %v3665_v28 = vrot.slane %v3664_v62, 4  ;;  %v3600_v52 = vadd.f32 %v3599_v51, %v3598_v3 }
 0x54a   : > { %v5922_v53 = vpop.eup %5921  ;;  %v3688_v5 = vrot.slane %v3687_v48, 2  ;;  %v3675_v44 = vadd.f32 %v3674_v32, %v3673_v34  ;;  %v6623_v21 = vadd.f32 %v3641_v11, %v3640_v38 }
 0x54b   : > { %v3666_v46 = vadd.f32 %v3665_v28, %v3664_v62 }
 0x54c   : > { %3768 = vperm.xlu1 %5736, %v5920_v42   ;;  %v3678_v42 = vsel %vm625_vm0, %v6212_v25, 0.0  ;;  %v3689_v41 = vadd.f32 %v3688_v5, %v3687_v48  ;;  %v3676_v34 = vrot.slane %v3675_v44, 1  ;;  %v6631_v48 = vadd.f32 %v3634_v57, %v3633_v10 }
 0x54d   : > { %v3679_v59 = vrot.slane %v3678_v42, 4  ;;  %v3667_v62 = vrot.slane %v3666_v46, 2 }
 0x54e   : > { %v3690_v6 = vrot.slane %v3689_v41, 1 }
 0x54f   : > { %v3680_v24 = vadd.f32 %v3679_v59, %v3678_v42  ;;  %v3701_v59 = vadd.f32 %v3700_v39, %v3699_v8  ;;  %v3668_v35 = vadd.f32 %v3667_v62, %v3666_v46 }
 0x550   : > { %3778 = vperm.xlu1 %5736, %v5922_v53   ;;  %v3612_v53 = vadd.f32 %v3611_v36, %v3610_v4  ;;  %v3659_v4 = vadd.f32 %v3658_v55, %v3657_v1  ;;  %v3626_v55 = vadd.f32 %v3625_v31, %v3624_v54 }
 0x551   : > { %v3681_v42 = vrot.slane %v3680_v24, 2  ;;  %v3669_v51 = vrot.slane %v3668_v35, 1 }
 0x552   : > { %v3613_v36 = vrot.slane %v3612_v53, 1  ;;  %v3660_v27 = vrot.slane %v3659_v4, 2  ;;  %v3627_v63 = vrot.slane %v3626_v55, 1 }
 0x553   : > { %v3682_v20 = vadd.f32 %v3681_v42, %v3680_v24  ;;  %v3655_v24 = vrot.slane %v3654_v47, 1 }
 0x554   : > { %v6614_v25 = vadd.f32 %v3613_v36, %v3612_v53  ;;  %v3661_v31 = vadd.f32 %v3660_v27, %v3659_v4  ;;  %v3695_v53 = vrot.slane %v3694_v26, 2  ;;  %v3648_v36 = vrot.slane %v3647_v61, 1 }
 0x555   : > { %v3702_v27 = vrot.slane %v3701_v59, 2  ;;  %v3628_v4 = vadd.f32 %v3627_v63, %v3626_v55  ;;  %v3683_v40 = vrot.slane %v3682_v20, 1  ;;  %v6665_v63 = vadd.f32 %v3690_v6, %v3689_v41 }
 0x556   : > { %v3662_v8 = vrot.slane %v3661_v31, 1  ;;  %v3696_v37 = vadd.f32 %v3695_v53, %v3694_v26  ;;  %v6635_v38 = vadd.f32 %v3648_v36, %v3647_v61  ;;  %v6640_v26 = vadd.f32 %v3676_v34, %v3675_v44 }
 0x557   : > { %v6644_v62 = vadd.f32 %v3702_v27, %v3701_v59  ;;  %v6655_v44 = vadd.f32 %v3655_v24, %v3654_v47  ;;  %v5791_v59 = vld [vmem:[%s7322_s8 + $0x8] sm:$0xff]   ;;  %v6667_v53 = vadd.f32 %v3669_v51, %v3668_v35  ;;  %v7371_v51 = vld [vmem:[#allocation7_spill] sm:$0xff] }
 0x558   : > { %v6647_v42 = vadd.f32 %v3662_v8, %v3661_v31  ;;  %v3697_v43 = vrot.slane %v3696_v37, 1  ;;  %5644 = vmatprep.subr.bf16.mxu1 %v5791_v59 }
 0x559   : > { %v3704_v36 = vrot.slane %v6644_v62, 1  ;;  %5645 = vmatpush3.bf16.msra.mxu1 %v5791_v59 }
 0x55a   : > { %v6682_v41 = vadd.f32 %v3697_v43, %v3696_v37  ;;  %v7369_v37 = vld [vmem:[#allocation8_spill] sm:$0xff] }
 0x5a0   : > { %v3709_v1 = vpop.permute.xlu0 %3708 }
 0x5a1   : > { %v3786_v45 = vmul.f32 %v3709_v1, %v6155_v13  ;;  %v3818_v50 = vmul.f32 %v3709_v1, %v6391_v7 }
 0x5a3   : > { %v6580_v60 = vpop.permute.xlu1 %3713  ;;  %v3802_v39 = vsub.f32 %v3600_v52, %v3786_v45  ;;  %v6669_v45 = vadd.f32 %v3683_v40, %v3682_v20 }
 0x5a4   : > { %v3787_v55 = vmul.f32 %v6580_v60, %v6160_v15 }
 0x5a5   : > { %v6651_v11 = vadd.f32 %v3818_v50, %v3802_v39 }
 0x5a6   : > { %v3803_v57 = vsub.f32 %v3607_v18, %v3787_v55 }
 0x5a7   : > { %v6588_v33 = vpop.permute.xlu1 %3718 }
 0x5a8   : > { %v3788_v3 = vmul.f32 %v6153_v12, %v6588_v33  ;;  %v3820_v52 = vmul.f32 %v6588_v33, %v6393_v58 }
 0x5aa   : > { %v3804_v10 = vsub.f32 %v6614_v25, %v3788_v3  ;;  %v5792_v25 = vld [vmem:[%s7323_s9 + $0x8] sm:$0xff]  }
 0x5ab   : > { %v6598_v49 = vpop.permute.xlu1 %3723  ;;  %5668 = vmatprep.subr.bf16.mxu0 %v5792_v25 }
 0x5ac   : > { %v3789_v7 = vmul.f32 %v6157_v14, %v6598_v49  ;;  %v6675_v3 = vadd.f32 %v3820_v52, %v3804_v10  ;;  %5669 = vmatpush3.bf16.msra.mxu0 %v5792_v25  ;;  %v7372_v25 = vld [vmem:[#allocation10_spill] sm:$0xff] }
 0x5af   : > { %v6608_v9 = vpop.permute.xlu1 %3728 }
 0x5b0   : > { %v3790_v56 = vmul.f32 %v6608_v9, %v6168_v17  ;;  %v3822_v47 = vmul.f32 %v6608_v9, %v6395_v2  ;;  %v3882_v2 = vmul.f32 %v6651_v11, %v6155_v13 }
 0x5b2   : > { %v3806_v1 = vsub.f32 %v3628_v4, %v3790_v56 }
 0x5b3   : > { %v6612_v0 = vpop.permute.xlu1 %3733 }
 0x5b4   : > { %v6618_v54 = vpop.permute.xlu0 %3753  ;;  %v3791_v58 = vmul.f32 %v6612_v0, %v6179_v19  ;;  %v6687_v9 = vadd.f32 %v3822_v47, %v3806_v1  ;;  %v7373_v47 = vld [vmem:[#allocation12_spill] sm:$0xff] }
 0x5b5   : > { %v3795_v4 = vmul.f32 %v6618_v54, %v6201_v23 }
 0x5b6   : > { %v3807_v10 = vsub.f32 %v6631_v48, %v3791_v58  ;;  %v6715_v1 = vmul.f32 %v6687_v9, %v6168_v17 }
 0x5b7   : > { %v6616_v28 = vpop.permute.xlu1 %3738 }
 0x5b8   : > { %v6633_v46 = vpop.permute.xlu0 %3763  ;;  %v3792_v61 = vmul.f32 %v6165_v16, %v6616_v28 }
 0x5b9   : > { %v6697_v8 = vmul.f32 %v6198_v22, %v6633_v46 }
 0x5ba   : > { %v3808_v33 = vsub.f32 %v6623_v21, %v3792_v61  ;;  %v3824_v21 = vmul.f32 %v6616_v28, %v6403_v29  ;;  %v3884_v28 = vmul.f32 %v6153_v12, %v6675_v3 }
 0x5bb   : > { %v6625_v32 = vpop.permute.xlu1 %3743 }
 0x5bc   : > { %v6680_v20 = vpop.permute.xlu0 %3773  ;;  %v6710_v61 = vadd.f32 %v3824_v21, %v3808_v33 }
 0x5bd   : > { %v3799_v48 = vmul.f32 %v6680_v20, %v7373_v47 }
 0x5bf   : > { %v6642_v5 = vpop.permute.xlu1 %3748 }
 0x5c0   : > { %v3794_v39 = vmul.f32 %v6642_v5, %v7369_v37  ;;  %v3784_v58 = vpop.permute.xlu0 %3783 }
 0x5c2   : > { %v2889_v31 = vpop.f32.mrf.mxu1 }
 0x5c3   : > { %v3819_v34 = vmul.f32 %v6580_v60, %v2889_v31  ;;  %v3759_v27 = vpop.permute.xlu1 %3758  ;;  %v3805_v60 = vsub.f32 %v6621_v30, %v3789_v7  ;;  %v7370_v30 = vld [vmem:[#allocation6_spill] sm:$0xff] }
 0x5c4   : > { %v5604_v18 = vpop.f32.mrf.mxu1  ;;  %v3793_v24 = vmul.f32 %v7370_v30, %v6625_v32  ;;  %v3796_v40 = vmul.f32 %v7371_v51, %v3759_v27 }
 0x5c5   : > { %v6689_v35 = vadd.f32 %v3819_v34, %v3803_v57  ;;  %v3811_v57 = vsub.f32 %v6647_v42, %v3795_v4  ;;  %v3810_v34 = vsub.f32 %v6655_v44, %v3794_v39  ;;  %v5793_v18 = vld [vmem:[%s7322_s8] sm:$0xff]   ;;  %v3813_v42 = vsub.f32 %v6640_v26, %v6697_v8 }
 0x5c6   : > { %v2962_v56 = vpop.f32.mrf.mxu0  ;;  %v3812_v4 = vsub.f32 %v6667_v53, %v3796_v40  ;;  %5646 = vmatprep.subr.bf16.mxu1 %v5793_v18 }
 0x5c7   : > { %v3883_v6 = vmul.f32 %v6689_v35, %v6160_v15  ;;  %v3821_v50 = vmul.f32 %v6598_v49, %v2962_v56  ;;  %v3035_v55 = vpop.f32.mrf.mxu1  ;;  %v3769_v29 = vpop.permute.xlu1 %3768  ;;  %v3888_v56 = vmul.f32 %v6165_v16, %v6710_v61  ;;  %5647 = vmatpush3.bf16.msra.mxu1 %v5793_v18  ;;  %v3705_v18 = vadd.f32 %v3704_v36, %v6644_v62 }
 0x5c8   : > { %v3823_v43 = vmul.f32 %v6612_v0, %v3035_v55  ;;  %v5609_v7 = vpop.f32.mrf.mxu0  ;;  %v3798_v49 = vmul.f32 %v3769_v29, %v7372_v25  ;;  %v7375_v55 = vld [vmem:[#allocation16_spill] sm:$0xff] }
 0x5c9   : > { %v6717_v59 = vadd.f32 %v3821_v50, %v3805_v60  ;;  %v5614_v52 = vpop.f32.mrf.mxu1  ;;  %v5737_v31 = vpack.i.bf16 %v3883_v6, %v3882_v2  ;;  %v5794_v60 = vld [vmem:[%s7323_s9] sm:$0xff]   ;;  %v3809_v2 = vsub.f32 %v6635_v38, %v3793_v24  ;;  %v7376_v24 = vld [vmem:[#allocation9_spill] sm:$0xff]  ;;  %v3815_v7 = vsub.f32 %v6665_v63, %v3799_v48 }
 0x5ca   : > { %v6724_v0 = vadd.f32 %v3823_v43, %v3807_v10  ;;  %v3108_v33 = vpop.f32.mrf.mxu0  ;;  %v7374_v6 = vld [vmem:[#allocation15_spill] sm:$0xff]  ;;  %v3828_v10 = vmul.f32 %v3759_v27, %v7375_v55  ;;  %5670 = vmatprep.subr.bf16.mxu0 %v5794_v60 }
 0x5cb   : > { %v3825_v44 = vmul.f32 %v6625_v32, %v3108_v33  ;;  %v3181_v21 = vpop.f32.mrf.mxu1  ;;  %v3779_v39 = vpop.permute.xlu1 %3778  ;;  %5738 = vrot.lane.b32.xlu1 %v5737_v31, %s5994_s0  ;;  %v3826_v50 = vmul.f32 %v6642_v5, %v7374_v6  ;;  %v3885_v38 = vmul.f32 %v6157_v14, %v6717_v59  ;;  %v3814_v32 = vsub.f32 %v6669_v45, %v3798_v49  ;;  %v7377_v27 = vld [vmem:[#allocation11_spill] sm:$0xff]  ;;  %v7378_v49 = vld [vmem:[#allocation17_spill] sm:$0xff] }
 0x5cc   : > { %v5619_v26 = vpop.f32.mrf.mxu0  ;;  %v3827_v8 = vmul.f32 %v6618_v54, %v3181_v21  ;;  %v3800_v40 = vmul.f32 %v7376_v24, %v3779_v39  ;;  %v3801_v52 = vmul.f32 %v7377_v27, %v3784_v58  ;;  %v3887_v31 = vmul.f32 %v6724_v0, %v6179_v19  ;;  %5671 = vmatpush3.bf16.msra.mxu0 %v5794_v60 }
 0x5cd   : > { %v6746_v53 = vadd.f32 %v3825_v44, %v3809_v2  ;;  %v5624_v43 = vpop.f32.mrf.mxu1  ;;  %v6751_v5 = vadd.f32 %v3826_v50, %v3810_v34  ;;  %v6756_v45 = vadd.f32 %v3828_v10, %v3812_v4  ;;  %v3830_v2 = vmul.f32 %v3769_v29, %v7378_v49  ;;  %v7379_v4 = vld [vmem:[#allocation18_spill] sm:$0xff]  ;;  %v4466_v49 = vld [vmem:[%s6806_s22 + $0x8] sm:$0xff] }
 0x5ce   : > { %v3254_v33 = vpop.f32.mrf.mxu0  ;;  %v6761_v44 = vadd.f32 %v3827_v8, %v3811_v57  ;;  %v3816_v63 = vsub.f32 %v6682_v41, %v3800_v40  ;;  %v5742_v6 = vpack.i.bf16 %v3885_v38, %v3884_v28  ;;  %v3832_v55 = vmul.f32 %v3779_v39, %v7379_v4  ;;  %v4472_v4 = vld [vmem:[%s6806_s22 + $0x38] sm:$0xff] }
 0x5cf   : > { %v3889_v54 = vmul.f32 %v7370_v30, %v6746_v53  ;;  %v3327_v21 = vpop.f32.mrf.mxu1  ;;  %v3829_v48 = vmul.f32 %v6633_v46, %v3254_v33  ;;  %v6769_v29 = vadd.f32 %v3830_v2, %v3814_v32  ;;  %v5747_v46 = vpack.i.bf16 %v3887_v31, %v6715_v1  ;;  %v4465_v33 = vld [vmem:[%s6806_s22] sm:$0xff] }
 0x5d0   : > { %v3831_v34 = vmul.f32 %v6680_v20, %v3327_v21  ;;  %v5629_v50 = vpop.f32.mrf.mxu0  ;;  %v3891_v57 = vmul.f32 %v6761_v44, %v6201_v23  ;;  %5743 = vrot.lane.b32.xlu0 %v5742_v6, %s5994_s0  ;;  %v3890_v62 = vmul.f32 %v6751_v5, %v7369_v37  ;;  %v3817_v36 = vsub.f32 %v3705_v18, %v3801_v52  ;;  %v4689_v2 = vld [vmem:[%s6814_s27] sm:$0xff]  ;;  %v4694_v6 = vld [vmem:[%s6814_s27 + $0x28] sm:$0xff]  ;;  %v4468_v18 = vld [vmem:[%s6806_s22 + $0x18] sm:$0xff] }
 0x5d1   : > { %v5634_v60 = vpop.f32.mrf.mxu1  ;;  %v6774_v10 = vadd.f32 %v3829_v48, %v3813_v42  ;;  %v5752_v28 = vpack.i.bf16 %v3889_v54, %v3888_v56  ;;  %v3892_v39 = vmul.f32 %v7371_v51, %v6756_v45  ;;  %v6784_v26 = vadd.f32 %v3832_v55, %v3816_v63  ;;  %5748 = vrot.lane.b32.xlu1 %v5747_v46, %s5994_s0  ;;  %v4690_v54 = vld [vmem:[%s6814_s27 + $0x8] sm:$0xff]  ;;  %v5356_v21 = vld [vmem:[%s7325_s11] ss:$0 sm:$0xff]  ;;  %v4467_v50 = vld [vmem:[%s6806_s22 + $0x10] sm:$0xff] }
 0x5d2   : > { %v6776_v41 = vadd.f32 %v3831_v34, %v3815_v7  ;;  %v3400_v20 = vpop.f32.mrf.mxu0  ;;  %v5757_v8 = vpack.i.bf16 %v3891_v57, %v3890_v62  ;;  %v4469_v63 = vld [vmem:[%s6806_s22 + $0x20] sm:$0xff]  ;;  %v4470_v48 = vld [vmem:[%s6806_s22 + $0x28] sm:$0xff]  ;;  %v4471_v57 = vld [vmem:[%s6806_s22 + $0x30] sm:$0xff] }
 0x5d3   : > { %v3833_v38 = vmul.f32 %v3784_v58, %v3400_v20  ;;  %v3893_v42 = vmul.f32 %v6198_v22, %v6774_v10  ;;  %v3894_v58 = vmul.f32 %v6769_v29, %v7372_v25  ;;  %v3896_v7 = vmul.f32 %v7376_v24, %v6784_v26  ;;  %v4693_v34 = vld [vmem:[%s6814_s27 + $0x20] sm:$0xff]  ;;  %v4691_v55 = vld [vmem:[%s6814_s27 + $0x10] sm:$0xff]  ;;  %v4692_v60 = vld [vmem:[%s6814_s27 + $0x18] sm:$0xff] }
 0x5d4   : > { %v3895_v32 = vmul.f32 %v6776_v41, %v7373_v47  ;;  %v5639_v1 = vpop.f32.mrf.mxu0  ;;  %5753 = vrot.lane.b32.xlu0 %v5752_v28, %s5994_s0  ;;  %v4695_v46 = vld [vmem:[%s6814_s27 + $0x30] sm:$0xff]  ;;  %v4696_v20 = vld [vmem:[%s6814_s27 + $0x38] sm:$0xff]  ;;  %v4473_v28 = vld [vmem:[%s6806_s22 + $0x40] sm:$0xff] }
 0x5d5   : > { %v6791_v56 = vadd.f32 %v3833_v38, %v3817_v36  ;;  %v5762_v40 = vpack.i.bf16 %v3893_v42, %v3892_v39  ;;  %5758 = vrot.lane.b32.xlu1 %v5757_v8, %s5994_s0  ;;  %v4474_v62 = vld [vmem:[%s6806_s22 + $0x48] sm:$0xff]  ;;  %v4697_v36 = vld [vmem:[%s6814_s27 + $0x40] sm:$0xff]  ;;  %v4475_v39 = vld [vmem:[%s6806_s22 + $0x50] sm:$0xff] }
 0x5d6   : > { %v5767_v52 = vpack.i.bf16 %v3895_v32, %v3894_v58  ;;  %v4698_v38 = vld [vmem:[%s6814_s27 + $0x48] sm:$0xff]  ;;  %v4476_v42 = vld [vmem:[%s6806_s22 + $0x58] sm:$0xff]  ;;  %v4699_v32 = vld [vmem:[%s6814_s27 + $0x50] sm:$0xff] }
 0x5d7   : > { %v3897_v43 = vmul.f32 %v7377_v27, %v6791_v56  ;;  %v4700_v1 = vld [vmem:[%s6814_s27 + $0x58] sm:$0xff]  ;;  %v4477_v8 = vld [vmem:[%s6806_s22 + $0x60] sm:$0xff]  ;;  %v4478_v58 = vld [vmem:[%s6806_s22 + $0x68] sm:$0xff] }
 0x5d8   : > { %5763 = vrot.lane.b32.xlu0 %v5762_v40, %s5994_s0  ;;  %v4701_v40 = vld [vmem:[%s6814_s27 + $0x60] sm:$0xff] }
 0x5d9   : > { %v5772_v31 = vpack.i.bf16 %v3897_v43, %v3896_v7  ;;  %5768 = vrot.lane.b32.xlu1 %v5767_v52, %s5994_s0  ;;  %v4702_v43 = vld [vmem:[%s6814_s27 + $0x68] sm:$0xff]  ;;  %v4479_v7 = vld [vmem:[%s6806_s22 + $0x70] sm:$0xff]  ;;  %v4480_v52 = vld [vmem:[%s6806_s22 + $0x78] sm:$0xff]  ;;  %s5996_s22 = smov 16  }
 0x5dc   : > { %5773 = vrot.lane.b32.xlu0 %v5772_v31, %s5994_s0  ;;  %s5995_s0 = smov 8   ;;  %v3850_v31 = vsub.f32 %v6155_v13, %v6651_v11  ;;  %v3856_v13 = vsub.f32 %v6165_v16, %v6710_v61  ;;  %v3857_v16 = vsub.f32 %v7370_v30, %v6746_v53 }
 0x5dd   : > { %4483 = vperm.xlu1 %5736, %v4465_v33   ;;  %v3851_v33 = vsub.f32 %v6160_v15, %v6689_v35  ;;  %v3853_v15 = vsub.f32 %v6157_v14, %v6717_v59  ;;  %v3858_v35 = vsub.f32 %v7369_v37, %v6751_v5  ;;  %v3859_v14 = vsub.f32 %v6201_v23, %v6761_v44 }
 0x5de   : > { %v3872_v37 = vmul.f32 %v3856_v13, %v3856_v13  ;;  %v3861_v44 = vsub.f32 %v6198_v22, %v6774_v10 }
 0x5df   : > { %v3869_v59 = vmul.f32 %v3853_v15, %v3853_v15  ;;  %v3875_v23 = vmul.f32 %v3859_v14, %v3859_v14 }
 0x5e0   : > { %4488 = vperm.xlu0 %5735, %v4466_v49  }
 0x5e1   : > { %4707 = vperm.xlu1 %5736, %v4689_v2   ;;  %v3866_v2 = vmul.f32 %v3850_v31, %v3850_v31 }
 0x5e4   : > { %4712 = vperm.xlu0 %5735, %v4690_v54   ;;  %v3867_v54 = vmul.f32 %v3851_v33, %v3851_v33 }
 0x5e5   : > { %4430 = vrot.lane.b32.xlu1 %v5356_v21, %s5995_s0 }
 0x5e8   : > { %4503 = vperm.xlu0 %5735, %v4469_v63  }
 0x5e9   : > { %4508 = vperm.xlu1 %5736, %v4470_v48   ;;  %v3852_v48 = vsub.f32 %v6153_v12, %v6675_v3  ;;  %v3860_v12 = vsub.f32 %v7371_v51, %v6756_v45  ;;  %v3874_v45 = vmul.f32 %v3858_v35, %v3858_v35 }
 0x5eb   : > { %v3868_v3 = vmul.f32 %v3852_v48, %v3852_v48 }
 0x5ec   : > { %4727 = vperm.xlu0 %5735, %v4693_v34   ;;  %v3854_v34 = vsub.f32 %v6168_v17, %v6687_v9  ;;  %v3855_v17 = vsub.f32 %v6179_v19, %v6724_v0  ;;  %v3862_v0 = vsub.f32 %v7372_v25, %v6769_v29  ;;  %v3864_v29 = vsub.f32 %v7376_v24, %v6784_v26 }
 0x5ed   : > { %4732 = vperm.xlu1 %5736, %v4694_v6  }
 0x5ee   : > { %v3870_v9 = vmul.f32 %v3854_v34, %v3854_v34  ;;  %v3871_v19 = vmul.f32 %v3855_v17, %v3855_v17 }
 0x5f0   : > { %4493 = vperm.xlu0 %5735, %v4467_v50  }
 0x5f1   : > { %4498 = vperm.xlu1 %5736, %v4468_v18   ;;  %v3876_v18 = vmul.f32 %v3860_v12, %v3860_v12 }
 0x5f4   : > { %4513 = vperm.xlu0 %5735, %v4471_v57  }
 0x5f5   : > { %4518 = vperm.xlu1 %5736, %v4472_v4  }
 0x5f8   : > { %4717 = vperm.xlu0 %5735, %v4691_v55  }
 0x5f9   : > { %4722 = vperm.xlu1 %5736, %v4692_v60   ;;  %v3873_v60 = vmul.f32 %v3857_v16, %v3857_v16 }
 0x5fc   : > { %4737 = vperm.xlu0 %5735, %v4695_v46  }
 0x5fd   : > { %4742 = vperm.xlu1 %5736, %v4696_v20  }
 0x600   : > { %4523 = vperm.xlu0 %5735, %v4473_v28  }
 0x601   : > { %4528 = vperm.xlu1 %5736, %v4474_v62  }
 0x604   : > { %4747 = vperm.xlu0 %5735, %v4697_v36  }
 0x605   : > { %4752 = vperm.xlu1 %5736, %v4698_v38   ;;  %v3863_v38 = vsub.f32 %v7373_v47, %v6776_v41 }
 0x608   : > { %4533 = vperm.xlu0 %5735, %v4475_v39  }
 0x609   : > { %4538 = vperm.xlu1 %5736, %v4476_v42  }
 0x60c   : > { %4757 = vperm.xlu0 %5735, %v4699_v32  }
 0x60d   : > { %4762 = vperm.xlu1 %5736, %v4700_v1  }
 0x610   : > { %4543 = vperm.xlu0 %5735, %v4477_v8   ;;  %v3877_v8 = vmul.f32 %v3861_v44, %v3861_v44 }
 0x611   : > { %4548 = vperm.xlu1 %5736, %v4478_v58   ;;  %v3865_v58 = vsub.f32 %v7377_v27, %v6791_v56 }
 0x614   : > { %4767 = vperm.xlu0 %5735, %v4701_v40  }
 0x615   : > { %4772 = vperm.xlu1 %5736, %v4702_v43  }
 0x618   : > { %4553 = vperm.xlu0 %5735, %v4479_v7   ;;  %v3878_v7 = vmul.f32 %v3862_v0, %v3862_v0 }
 0x619   : > { %4558 = vperm.xlu1 %5736, %v4480_v52   ;;  %v3879_v52 = vmul.f32 %v3863_v38, %v3863_v38 }
 0x63d   : > { %v5739_v49 = vpop.permute.xlu1 %5738 }
 0x63e   : > { %v5741_v21 = vunpack.i.h.bf16 %v5739_v49  ;;  %v5740_v63 = vunpack.i.l.bf16 %v5739_v49 }
 0x640   : > { %v3962_v6 = vsel %vm625_vm0, %v3866_v2, %v5740_v63  ;;  %v3963_v50 = vsel %vm625_vm0, %v3867_v54, %v5741_v21  ;;  %v3880_v54 = vmul.f32 %v3864_v29, %v3864_v29  ;;  %v3881_v21 = vmul.f32 %v3865_v58, %v3865_v58 }
 0x641   : > { %v3978_v11 = vpack.c.bf16 %v3963_v50, %v3962_v6 }
 0x642   : > { %v5744_v61 = vpop.permute.xlu0 %5743 }
 0x643   : > { %5648 = vmatprep.mubr.msk.bf16.mxu1 %vm4018_vm3, %v3978_v11  ;;  %5672 = vmatprep.mubr.msk.bf16.mxu0 %vm4018_vm3, %v3978_v11  ;;  %v5746_v5 = vunpack.i.h.bf16 %v5744_v61  ;;  %v5745_v51 = vunpack.i.l.bf16 %v5744_v61  ;;  %v5749_v57 = vpop.permute.xlu1 %5748 }
 0x644   : > { %v5751_v30 = vunpack.i.h.bf16 %v5749_v57  ;;  %v5750_v53 = vunpack.i.l.bf16 %v5749_v57 }
 0x645   : > { %v3965_v4 = vsel %vm625_vm0, %v3869_v59, %v5746_v5  ;;  %v3964_v55 = vsel %vm625_vm0, %v3868_v3, %v5745_v51 }
 0x646   : > { %v3979_v46 = vpack.c.bf16 %v3965_v4, %v3964_v55  ;;  %v5754_v20 = vpop.permute.xlu0 %5753  ;;  %v3966_v28 = vsel %vm625_vm0, %v3870_v9, %v5750_v53  ;;  %v3967_v62 = vsel %vm625_vm0, %v3871_v19, %v5751_v30 }
 0x647   : > { %v5756_v36 = vunpack.i.h.bf16 %v5754_v20  ;;  %v5755_v25 = vunpack.i.l.bf16 %v5754_v20  ;;  %v3980_v39 = vpack.c.bf16 %v3967_v62, %v3966_v28  ;;  %v5759_v42 = vpop.permute.xlu1 %5758 }
 0x648   : > { %5649 = vmatmul.mubr.msk.bf16.vlgmr.msra.gmra.mxu1 %vm4018_vm3, %v3979_v46  ;;  %5673 = vmatmul.mubr.msk.bf16.vlgmr.msra.gmra.mxu0 %vm4018_vm3, %v3979_v46  ;;  %v5761_v32 = vunpack.i.h.bf16 %v5759_v42  ;;  %v5760_v1 = vunpack.i.l.bf16 %v5759_v42 }
 0x649   : > { %v3969_v22 = vsel %vm625_vm0, %v3873_v60, %v5756_v36  ;;  %v3968_v10 = vsel %vm625_vm0, %v3872_v37, %v5755_v25  ;;  %5652 = vmatprep.mubr.msk.bf16.mxu1 %vm4018_vm3, %v3980_v39  ;;  %5676 = vmatprep.mubr.msk.bf16.mxu0 %vm4018_vm3, %v3980_v39 }
 0x64a   : > { %v3981_v24 = vpack.c.bf16 %v3969_v22, %v3968_v10  ;;  %v5764_v47 = vpop.permute.xlu0 %5763  ;;  %v3970_v41 = vsel %vm625_vm0, %v3874_v45, %v5760_v1  ;;  %v3971_v26 = vsel %vm625_vm0, %v3875_v23, %v5761_v32 }
 0x64b   : > { %v5766_v40 = vunpack.i.h.bf16 %v5764_v47  ;;  %v5765_v43 = vunpack.i.l.bf16 %v5764_v47  ;;  %v3982_v31 = vpack.c.bf16 %v3971_v26, %v3970_v41  ;;  %v5769_v33 = vpop.permute.xlu1 %5768 }
 0x64c   : > { %v5771_v56 = vunpack.i.h.bf16 %v5769_v33  ;;  %v5770_v2 = vunpack.i.l.bf16 %v5769_v33 }
 0x64d   : > { %v3973_v49 = vsel %vm625_vm0, %v3877_v8, %v5766_v40  ;;  %v3972_v27 = vsel %vm625_vm0, %v3876_v18, %v5765_v43 }
 0x64e   : > { %v3983_v63 = vpack.c.bf16 %v3973_v49, %v3972_v27  ;;  %v5774_v48 = vpop.permute.xlu0 %5773  ;;  %v3974_v34 = vsel %vm625_vm0, %v3878_v7, %v5770_v2  ;;  %v3975_v6 = vsel %vm625_vm0, %v3879_v52, %v5771_v56 }
 0x64f   : > { %v5776_v50 = vunpack.i.h.bf16 %v5774_v48  ;;  %v5775_v13 = vunpack.i.l.bf16 %v5774_v48  ;;  %v3984_v15 = vpack.c.bf16 %v3975_v6, %v3974_v34  ;;  %v4703_v34 = vld [vmem:[%s6814_s27 + $0x70] sm:$0xff] }
 0x650   : > { %5653 = vmatmul.mubr.msk.bf16.gmra.mxu1 %vm4018_vm3, %v3981_v24  ;;  %5677 = vmatmul.mubr.msk.bf16.gmra.mxu0 %vm4018_vm3, %v3981_v24 }
 0x651   : > { %v3977_v11 = vsel %vm625_vm0, %v3881_v21, %v5776_v50  ;;  %v3976_v35 = vsel %vm625_vm0, %v3880_v54, %v5775_v13  ;;  %5656 = vmatprep.mubr.msk.bf16.mxu1 %vm4018_vm3, %v3982_v31  ;;  %5680 = vmatprep.mubr.msk.bf16.mxu0 %vm4018_vm3, %v3982_v31  ;;  %v4704_v50 = vld [vmem:[%s6814_s27 + $0x78] sm:$0xff] }
 0x652   : > { %v3985_v12 = vpack.c.bf16 %v3977_v11, %v3976_v35 }
 0x658   : > { %5657 = vmatmul.mubr.msk.bf16.gmra.mxu1 %vm4018_vm3, %v3983_v63  ;;  %5681 = vmatmul.mubr.msk.bf16.gmra.mxu0 %vm4018_vm3, %v3983_v63  ;;  %v6928_v25 = vpop.permute.xlu1 %4483 }
 0x659   : > { %5660 = vmatprep.mubr.msk.bf16.mxu1 %vm4018_vm3, %v3984_v15  ;;  %5684 = vmatprep.mubr.msk.bf16.mxu0 %vm4018_vm3, %v3984_v15 }
 0x65b   : > { %v6936_v1 = vpop.permute.xlu0 %4488 }
 0x65c   : > { %v6934_v32 = vpop.permute.xlu1 %4707 }
 0x65f   : > { %v6944_v40 = vpop.permute.xlu0 %4712 }
 0x660   : > { %5661 = vmatmul.mubr.msk.bf16.gmra.mxu1 %vm4018_vm3, %v3985_v12  ;;  %5685 = vmatmul.mubr.msk.bf16.gmra.mxu0 %vm4018_vm3, %v3985_v12  ;;  %v6942_v26 = vpop.permute.xlu1 %4430 }
 0x663   : > { %v6953_v2 = vpop.permute.xlu0 %4503 }
 0x664   : > { %v6950_v49 = vpop.permute.xlu1 %4508 }
 0x667   : > { %v6965_v6 = vpop.permute.xlu0 %4727 }
 0x668   : > { %v6961_v48 = vpop.permute.xlu1 %4732 }
 0x66b   : > { %v4494_v15 = vpop.permute.xlu0 %4493 }
 0x66c   : > { %v4499_v13 = vpop.permute.xlu1 %4498 }
 0x670   : > { %v4519_v35 = vpop.permute.xlu1 %4518 }
 0x708   : > { %v5674_v17 = vpop.f32.mrf.mxu0  ;;  %v6968_v11 = vpop.f32.mrf.mxu1 }
 0x709   : > { %v4289_v14 = vrot.slane %v5674_v17, 1  ;;  %v4514_v17 = vpop.permute.xlu0 %4513 }
 0x70a   : > { %v6913_v3 = vpop.f32.mrf.mxu0  ;;  %v6970_v12 = vpop.f32.mrf.mxu1 }
 0x70b   : > { %v4286_v18 = vrot.slane %v6913_v3, 1 }
 0x70c   : > { %v5675_v9 = vpop.f32.mrf.mxu0  ;;  %v6972_v3 = vpop.f32.mrf.mxu1 }
 0x70d   : > { %v4291_v16 = vrot.slane %v5675_v9, 1  ;;  %v6974_v9 = vpop.permute.xlu1 %4722 }
 0x70e   : > { %v4209_v61 = vpop.f32.mrf.mxu0 }
 0x70f   : > { %v4287_v37 = vrot.slane %v4209_v61, 1  ;;  %v4292_v5 = vsel %vm4285_vm4, %v4289_v14, %v4291_v16 }
 0x710   : > { %v5678_v59 = vpop.f32.mrf.mxu0  ;;  %4364 = vrot.lane.b32.xlu1 %v4292_v5, %s5995_s0 }
 0x711   : > { %v4290_v51 = vsel %vm4285_vm4, %v4287_v37, %v4289_v14  ;;  %v4288_v57 = vsel %vm4285_vm4, %v4286_v18, %v4287_v37  ;;  %v4297_v23 = vrot.slane %v5678_v59, 1  ;;  %v6978_v14 = vpop.f32.mrf.mxu1  ;;  %v6980_v61 = vpop.permute.xlu1 %4742 }
 0x712   : > { %v4222_v45 = vpop.f32.mrf.mxu0  ;;  %4362 = vrot.lane.b32.xlu0 %v4290_v51, %s5995_s0 }
 0x713   : > { %v4293_v19 = vrot.slane %v4222_v45, 1  ;;  %v6982_v37 = vpop.f32.mrf.mxu1  ;;  %v6993_v45 = vld [vmem:[%s7324_s10] ss:$0 sm:$0xff] }
 0x714   : > { %v5679_v0 = vpop.f32.mrf.mxu0  ;;  %4360 = vrot.lane.b32.xlu1 %v4288_v57, %s5995_s0 }
 0x715   : > { %v4294_v55 = vsel %vm4285_vm4, %v4291_v16, %v4293_v19  ;;  %v4299_v53 = vrot.slane %v5679_v0, 1  ;;  %v6976_v16 = vpop.permute.xlu0 %4717  ;;  %v6986_v5 = vpop.f32.mrf.mxu1  ;;  %v4328_v0 = vadd.f32 %v6993_v45, %v6978_v14 }
 0x716   : > { %v4225_v4 = vpop.f32.mrf.mxu0  ;;  %4366 = vrot.lane.b32.xlu0 %v4294_v55, %s5995_s0  ;;  %v6988_v51 = vpop.permute.xlu1 %4528  ;;  %v4327_v55 = vadd.f32 %v6993_v45, %v6970_v12 }
 0x717   : > { %v4295_v44 = vrot.slane %v4225_v4, 1  ;;  %v4300_v46 = vsel %vm4285_vm4, %v4297_v23, %v4299_v53  ;;  %v7001_v57 = vpop.f32.mrf.mxu1  ;;  %v4329_v4 = vadd.f32 %v6968_v11, %v6993_v45 }
 0x718   : > { %v5682_v30 = vpop.f32.mrf.mxu0  ;;  %4372 = vrot.lane.b32.xlu1 %v4300_v46, %s5995_s0  ;;  %v4334_v46 = vadd.f32 %v7001_v57, %v6993_v45 }
 0x719   : > { %v4298_v28 = vsel %vm4285_vm4, %v4295_v44, %v4297_v23  ;;  %v4296_v29 = vsel %vm4285_vm4, %v4293_v19, %v4295_v44  ;;  %v4305_v10 = vrot.slane %v5682_v30, 1  ;;  %v6984_v59 = vpop.permute.xlu0 %4737  ;;  %v4330_v19 = vadd.f32 %v6972_v3, %v6993_v45  ;;  %v7009_v23 = vpop.f32.mrf.mxu1 }
 0x71a   : > { %v4238_v60 = vpop.f32.mrf.mxu0  ;;  %4370 = vrot.lane.b32.xlu0 %v4298_v28, %s5995_s0  ;;  %v4343_v28 = vmax.f32 %v4327_v55, 0.0 }
 0x71b   : > { %v4301_v62 = vrot.slane %v4238_v60, 1  ;;  %v4346_v30 = vmax.f32 %v4330_v19, 0.0  ;;  %v4344_v60 = vmax.f32 %v4328_v0, 0.0 }
 0x71c   : > { %v5683_v20 = vpop.f32.mrf.mxu0  ;;  %4368 = vrot.lane.b32.xlu1 %v4296_v29, %s5995_s0  ;;  %v4331_v29 = vadd.f32 %v6993_v45, %v6986_v5 }
 0x71d   : > { %v4302_v38 = vsel %vm4285_vm4, %v4299_v53, %v4301_v62  ;;  %v4307_v39 = vrot.slane %v5683_v20, 1  ;;  %v7007_v53 = vpop.permute.xlu1 %4752  ;;  %v4345_v20 = vmax.f32 %v4329_v4, 0.0 }
 0x71e   : > { %v4241_v36 = vpop.f32.mrf.mxu0  ;;  %4374 = vrot.lane.b32.xlu0 %v4302_v38, %s5995_s0  ;;  %v4562_v38 = vmul.f32 %v6936_v1, %v4344_v60 }
 0x71f   : > { %v4303_v42 = vrot.slane %v4241_v36, 1  ;;  %v4308_v8 = vsel %vm4285_vm4, %v4305_v10, %v4307_v39  ;;  %v4564_v36 = vmul.f32 %v4499_v13, %v4346_v30 }
 0x720   : > { %v5686_v22 = vpop.f32.mrf.mxu0 }
 0x721   : > { %v4306_v58 = vsel %vm4285_vm4, %v4303_v42, %v4305_v10  ;;  %v4304_v7 = vsel %vm4285_vm4, %v4301_v62, %v4303_v42  ;;  %v4313_v33 = vrot.slane %v5686_v22, 1  ;;  %v4333_v62 = vadd.f32 %v6982_v37, %v6993_v45  ;;  %v7024_v10 = vpop.permute.xlu1 %4538 }
 0x722   : > { %v4254_v24 = vpop.f32.mrf.mxu0  ;;  %4380 = vrot.lane.b32.xlu0 %v4308_v8, %s5995_s0  ;;  %4378 = vrot.lane.b32.xlu1 %v4306_v58, %s5995_s0  ;;  %v4350_v42 = vmax.f32 %v4334_v46, 0.0  ;;  %v4332_v22 = vadd.f32 %v6993_v45, %v7009_v23  ;;  %v4563_v8 = vmul.f32 %v4494_v15, %v4345_v20  ;;  %v4561_v58 = vmul.f32 %v6928_v25, %v4343_v28 }
 0x723   : > { %v4309_v47 = vrot.slane %v4254_v24, 1  ;;  %v4349_v24 = vmax.f32 %v4333_v62, 0.0 }
 0x724   : > { %v5687_v41 = vpop.f32.mrf.mxu0  ;;  %v4568_v1 = vmul.f32 %v4519_v35, %v4350_v42 }
 0x725   : > { %v4315_v43 = vrot.slane %v5687_v41, 1  ;;  %v4310_v52 = vsel %vm4285_vm4, %v4307_v39, %v4309_v47  ;;  %v7020_v39 = vpop.f32.mrf.mxu1  ;;  %v4598_v41 = vsel %vm1427_vm2, %v4564_v36, -inf }
 0x726   : > { %4376 = vrot.lane.b32.xlu0 %v4304_v7, %s5995_s0  ;;  %v4257_v31 = vpop.f32.mrf.mxu0  ;;  %4382 = vrot.lane.b32.xlu1 %v4310_v52, %s5995_s0  ;;  %v4584_v7 = vsel %vm1427_vm2, %v4562_v38, -inf  ;;  %v4626_v19 = vsel %vm1427_vm2, %v4568_v1, -inf }
 0x727   : > { %v4311_v27 = vrot.slane %v4257_v31, 1  ;;  %v4316_v56 = vsel %vm4285_vm4, %v4313_v33, %v4315_v43  ;;  %v4319_v54 = vsel %vm4285_vm4, %v4315_v43, %v4286_v18  ;;  %v6995_v18 = vpop.permute.xlu0 %4523  ;;  %v4347_v43 = vmax.f32 %v4331_v29, 0.0  ;;  %v7029_v52 = vpop.f32.mrf.mxu1 }
 0x728   : > { %v4348_v31 = vmax.f32 %v4332_v22, 0.0  ;;  %v4627_v20 = vrot.slane %v4626_v19, 4 }
 0x729   : > { %v4312_v21 = vsel %vm4285_vm4, %v4309_v47, %v4311_v27  ;;  %v4314_v63 = vsel %vm4285_vm4, %v4311_v27, %v4313_v33  ;;  %v4591_v33 = vsel %vm1427_vm2, %v4563_v8, -inf  ;;  %v4577_v27 = vsel %vm1427_vm2, %v4561_v58, -inf }
 0x72a   : > { %4388 = vrot.lane.b32.xlu0 %v4316_v56, %s5995_s0  ;;  %4390 = vrot.lane.b32.xlu1 %v4319_v54, %s5995_s0  ;;  %v4599_v56 = vrot.slane %v4598_v41, 4  ;;  %v4567_v54 = vmul.f32 %v4514_v17, %v4349_v24  ;;  %v4565_v25 = vmul.f32 %v6953_v2, %v4347_v43  ;;  %v4592_v15 = vrot.slane %v4591_v33, 4  ;;  %v7044_v17 = vpop.f32.mrf.mxu1 }
 0x72b   : > { %v7011_v44 = vpop.permute.xlu0 %4747  ;;  %v4578_v35 = vrot.slane %v4577_v27, 4  ;;  %v4566_v0 = vmul.f32 %v6950_v49, %v4348_v31  ;;  %v4338_v22 = vadd.f32 %v7044_v17, %v6993_v45 }
 0x72c   : > { %v4600_v4 = vmax.f32 %v4598_v41, %v4599_v56  ;;  %v4619_v2 = vsel %vm1427_vm2, %v4567_v54, -inf  ;;  %v4605_v30 = vsel %vm1427_vm2, %v4565_v25, -inf  ;;  %v4593_v28 = vmax.f32 %v4591_v33, %v4592_v15  ;;  %v7049_v38 = vpop.f32.mrf.mxu1 }
 0x72d   : > { %v4579_v62 = vmax.f32 %v4577_v27, %v4578_v35  ;;  %v4620_v36 = vrot.slane %v4619_v2, 4  ;;  %v4612_v29 = vsel %vm1427_vm2, %v4566_v0, -inf  ;;  %v4606_v49 = vrot.slane %v4605_v30, 4 }
 0x72e   : > { %4384 = vrot.lane.b32.xlu0 %v4312_v21, %s5995_s0  ;;  %4386 = vrot.lane.b32.xlu1 %v4314_v63, %s5995_s0  ;;  %v4585_v21 = vrot.slane %v4584_v7, 4  ;;  %v4337_v63 = vadd.f32 %v7020_v39, %v6993_v45  ;;  %v4601_v58 = vrot.slane %v4600_v4, 2  ;;  %v4613_v1 = vrot.slane %v4612_v29, 4  ;;  %v7060_v54 = vpop.f32.mrf.mxu1  ;;  %s5998_s0 = smov 1  }
 0x72f   : > { %v4534_v47 = vpop.permute.xlu0 %4533  ;;  %v4336_v31 = vadd.f32 %v6993_v45, %v7049_v38  ;;  %v4594_v33 = vrot.slane %v4593_v28, 2  ;;  %v4580_v27 = vrot.slane %v4579_v62, 2  ;;  %v4621_v56 = vmax.f32 %v4619_v2, %v4620_v36  ;;  %7381 = vst [vmem:[#allocation6_spill] sm:$0xff] %v7060_v54 }
 0x730   : > { %v4586_v55 = vmax.f32 %v4584_v7, %v4585_v21  ;;  %v4353_v60 = vmax.f32 %v4337_v63, 0.0  ;;  %v4628_v7 = vmax.f32 %v4626_v19, %v4627_v20  ;;  %v4607_v21 = vmax.f32 %v4605_v30, %v4606_v49 }
 0x731   : > { %v4354_v25 = vmax.f32 %v4338_v22, 0.0  ;;  %v4602_v63 = vmax.f32 %v4600_v4, %v4601_v58  ;;  %v4614_v19 = vmax.f32 %v4612_v29, %v4613_v1  ;;  %v4352_v0 = vmax.f32 %v4336_v31, 0.0 }
 0x732   : > { %4777 = vperm.xlu0 %5735, %v4703_v34   ;;  %4782 = vperm.xlu1 %5736, %v4704_v50   ;;  %v4335_v34 = vadd.f32 %v6993_v45, %v7029_v52  ;;  %v7038_v50 = vpop.permute.xlu1 %4762  ;;  %v4587_v24 = vrot.slane %v4586_v55, 2  ;;  %v4571_v41 = vmul.f32 %v4534_v47, %v4353_v60  ;;  %v4341_v60 = vadd.f32 %v7060_v54, %v6993_v45 }
 0x733   : > { %7380 = vst [vmem:[#allocation8_spill] sm:$0xff] %v7038_v50  ;;  %v7040_v13 = vpop.permute.xlu0 %4757  ;;  %v4595_v2 = vmax.f32 %v4593_v28, %v4594_v33  ;;  %v4581_v20 = vmax.f32 %v4579_v62, %v4580_v27  ;;  %v4622_v30 = vrot.slane %v4621_v56, 2  ;;  %v4608_v36 = vrot.slane %v4607_v21, 2 }
 0x734   : > { %v4351_v46 = vmax.f32 %v4335_v34, 0.0  ;;  %v4588_v34 = vmax.f32 %v4586_v55, %v4587_v24  ;;  %v4647_v15 = vsel %vm1427_vm2, %v4571_v41, -inf  ;;  %v4572_v49 = vmul.f32 %v7024_v10, %v4354_v25 }
 0x735   : > { %v4648_v4 = vrot.slane %v4647_v15, 4  ;;  %v4603_v22 = vrot.slane %v4602_v63, 1  ;;  %v4615_v41 = vrot.slane %v4614_v19, 2  ;;  %v4570_v29 = vmul.f32 %v6988_v51, %v4352_v0 }
 0x736   : > { %v7051_v42 = vpop.permute.xlu1 %4548  ;;  %v4569_v43 = vmul.f32 %v6995_v18, %v4351_v46  ;;  %v4629_v18 = vrot.slane %v4628_v7, 2  ;;  %v4589_v58 = vrot.slane %v4588_v34, 1  ;;  %v4596_v1 = vrot.slane %v4595_v2, 1 }
 0x737   : > { %v7055_v8 = vpop.permute.xlu0 %4543  ;;  %v4582_v31 = vrot.slane %v4581_v20, 1  ;;  %v4609_v28 = vmax.f32 %v4607_v21, %v4608_v36  ;;  %v4649_v62 = vmax.f32 %v4647_v15, %v4648_v4  ;;  %v4654_v27 = vsel %vm1427_vm2, %v4572_v49, -inf }
 0x738   : > { %v4633_v47 = vsel %vm1427_vm2, %v4569_v43, -inf  ;;  %v4630_v24 = vmax.f32 %v4628_v7, %v4629_v18  ;;  %v4357_v43 = vmax.f32 %v4341_v60, 0.0  ;;  %v4604_v25 = vmax.f32 %v4602_v63, %v4603_v22 }
 0x739   : > { %v4634_v55 = vrot.slane %v4633_v47, 4  ;;  %v4590_v7 = vmax.f32 %v4588_v34, %v4589_v58  ;;  %v4616_v50 = vmax.f32 %v4614_v19, %v4615_v41  ;;  %v4640_v51 = vsel %vm1427_vm2, %v4570_v29, -inf }
 0x73a   : > { %v7064_v35 = vpop.permute.xlu1 %4772  ;;  %v4631_v18 = vrot.slane %v4630_v24, 1  ;;  %v4597_v60 = vmax.f32 %v4595_v2, %v4596_v1  ;;  %v4610_v15 = vrot.slane %v4609_v28, 1  ;;  %v4641_v19 = vrot.slane %v4640_v51, 4 }
 0x73b   : > { %7382 = vst [vmem:[#allocation7_spill] sm:$0xff] %v7064_v35  ;;  %v7068_v46 = vpop.permute.xlu0 %4767  ;;  %v4623_v35 = vmax.f32 %v4621_v56, %v4622_v30  ;;  %v4635_v33 = vmax.f32 %v4633_v47, %v4634_v55  ;;  %v4583_v56 = vmax.f32 %v4581_v20, %v4582_v31  ;;  %v4655_v30 = vrot.slane %v4654_v27, 4 }
 0x73c   : > { %7383 = vst [vmem:[#allocation10_spill] sm:$0xff] %v7068_v46  ;;  %v7075_v46 = vpop.f32.mrf.mxu1  ;;  %v4650_v47 = vrot.slane %v4649_v62, 2  ;;  %v7081_v63 = vsel %vm4930_vm5, %v4604_v25, %v4597_v60  ;;  %v4632_v2 = vmax.f32 %v4630_v24, %v4631_v18  ;;  %v4617_v20 = vrot.slane %v4616_v50, 1 }
 0x73d   : > { %7384 = vst [vmem:[#allocation12_spill] sm:$0xff] %v7075_v46  ;;  %v4624_v21 = vrot.slane %v4623_v35, 1  ;;  %v4636_v36 = vrot.slane %v4635_v33, 2  ;;  %v7084_v34 = vsel %vm4930_vm5, %v4590_v7, %v4583_v56  ;;  %v4339_v58 = vadd.f32 %v6993_v45, %v7075_v46 }
 0x73e   : > { %v7072_v54 = vpop.permute.xlu1 %4558  ;;  %v7078_v4 = vpop.f32.mrf.mxu1  ;;  %v4656_v29 = vmax.f32 %v4654_v27, %v4655_v30  ;;  %v4611_v25 = vmax.f32 %v4609_v28, %v4610_v15  ;;  %v4651_v7 = vmax.f32 %v4649_v62, %v4650_v47  ;;  %v4642_v24 = vmax.f32 %v4640_v51, %v4641_v19 }
 0x73f   : > { %v4554_v10 = vpop.permute.xlu0 %4553  ;;  %7385 = vst [vmem:[#allocation15_spill] sm:$0xff] %v7078_v4  ;;  %v4618_v27 = vmax.f32 %v4616_v50, %v4617_v20  ;;  %v4355_v30 = vmax.f32 %v4339_v58, 0.0 }
 0x740   : > { %v4575_v0 = vmul.f32 %v4554_v10, %v4357_v43  ;;  %v4342_v43 = vadd.f32 %v7078_v4, %v6993_v45  ;;  %v4625_v10 = vmax.f32 %v4623_v35, %v4624_v21  ;;  %v4652_v62 = vrot.slane %v4651_v7, 1 }
 0x741   : > { %v4643_v15 = vrot.slane %v4642_v24, 2  ;;  %v4573_v58 = vmul.f32 %v7055_v8, %v4355_v30 }
 0x742   : > { %v4675_v22 = vsel %vm1427_vm2, %v4575_v0, -inf  ;;  %v4358_v46 = vmax.f32 %v4342_v43, 0.0 }
 0x743   : > { %v4676_v18 = vrot.slane %v4675_v22, 4 }
 0x745   : > { %v4677_v47 = vmax.f32 %v4675_v22, %v4676_v18 }
 0x747   : > { %v4678_v18 = vrot.slane %v4677_v47, 2 }
 0x782   : > { %v4365_v55 = vpop.permute.xlu1 %4364 }
 0x783   : > { %v4410_v49 = vadd.f32 %v6968_v11, %v4365_v55  ;;  %v4637_v11 = vmax.f32 %v4635_v33, %v4636_v36  ;;  %v7096_v55 = vsel %vm4930_vm5, %v4632_v2, %v4625_v10 }
 0x784   : > { %v4363_v41 = vpop.permute.xlu0 %4362 }
 0x785   : > { %v4435_v1 = vadd.f32 %v6942_v26, %v4410_v49  ;;  %v4409_v31 = vadd.f32 %v4363_v41, %v6978_v14  ;;  %v4657_v49 = vrot.slane %v4656_v29, 2  ;;  %v4638_v33 = vrot.slane %v4637_v11, 1  ;;  %v7111_v41 = vpop.f32.mrf.mxu1 }
 0x786   : > { %v4361_v56 = vpop.permute.xlu1 %4360 }
 0x787   : > { %v4451_v60 = vmax.f32 %v4435_v1, 0.0  ;;  %v4434_v0 = vadd.f32 %v6942_v26, %v4409_v31  ;;  %v4408_v4 = vadd.f32 %v4361_v56, %v6970_v12  ;;  %v7105_v12 = vsel %vm4930_vm5, %v4618_v27, %v4611_v25 }
 0x788   : > { %v4367_v28 = vpop.permute.xlu0 %4366  ;;  %v4658_v20 = vmax.f32 %v4656_v29, %v4657_v49  ;;  %v7114_v31 = vmax.f32 %v4651_v7, %v4652_v62  ;;  %v7116_v10 = vmax.f32 %v4637_v11, %v4638_v33  ;;  %v4644_v25 = vmax.f32 %v4642_v24, %v4643_v15 }
 0x789   : > { %v4787_v14 = vmul.f32 %v6976_v16, %v4451_v60  ;;  %v4450_v35 = vmax.f32 %v4434_v0, 0.0  ;;  %v4433_v51 = vadd.f32 %v6942_v26, %v4408_v4  ;;  %v4411_v21 = vadd.f32 %v6972_v3, %v4367_v28 }
 0x78a   : > { %v4576_v4 = vmul.f32 %v7072_v54, %v4358_v46  ;;  %v4661_v46 = vsel %vm1427_vm2, %v4573_v58, -inf  ;;  %v4373_v7 = vpop.permute.xlu1 %4372  ;;  %v4659_v27 = vrot.slane %v4658_v20, 1  ;;  %v4645_v49 = vrot.slane %v4644_v25, 1 }
 0x78b   : > { %v4816_v36 = vsel %vm4801_vm6, %v4787_v14, -inf  ;;  %v4786_v50 = vmul.f32 %v6944_v40, %v4450_v35  ;;  %v4449_v2 = vmax.f32 %v4433_v51, 0.0  ;;  %v4436_v16 = vadd.f32 %v6942_v26, %v4411_v21 }
 0x78c   : > { %v4817_v19 = vrot.slane %v4816_v36, 4  ;;  %v4682_v0 = vsel %vm1427_vm2, %v4576_v4, -inf  ;;  %v4414_v30 = vadd.f32 %v6982_v37, %v4373_v7  ;;  %v7126_v14 = vmax.f32 %v4677_v47, %v4678_v18  ;;  %v4371_v28 = vpop.permute.xlu0 %4370 }
 0x78d   : > { %v4809_v3 = vsel %vm4801_vm6, %v4786_v50, -inf  ;;  %v4785_v40 = vmul.f32 %v6934_v32, %v4449_v2  ;;  %v4452_v1 = vmax.f32 %v4436_v16, 0.0  ;;  %v4340_v32 = vadd.f32 %v6993_v45, %v7111_v41 }
 0x78e   : > { %v4818_v22 = vmax.f32 %v4816_v36, %v4817_v19  ;;  %v4810_v43 = vrot.slane %v4809_v3, 4  ;;  %v4439_v51 = vadd.f32 %v6942_v26, %v4414_v30  ;;  %v4413_v45 = vadd.f32 %v4371_v28, %v7009_v23 }
 0x78f   : > { %v4802_v8 = vsel %vm4801_vm6, %v4785_v40, -inf  ;;  %v4788_v54 = vmul.f32 %v6974_v9, %v4452_v1  ;;  %v4662_v21 = vrot.slane %v4661_v46, 4  ;;  %v4683_v15 = vrot.slane %v4682_v0, 4 }
 0x790   : > { %v4819_v29 = vrot.slane %v4818_v22, 2  ;;  %v4811_v60 = vmax.f32 %v4809_v3, %v4810_v43  ;;  %v4803_v56 = vrot.slane %v4802_v8, 4  ;;  %v4660_v19 = vmax.f32 %v4658_v20, %v4659_v27  ;;  %v4369_v43 = vpop.permute.xlu1 %4368 }
 0x791   : > { %v4823_v24 = vsel %vm4801_vm6, %v4788_v54, -inf  ;;  %v4356_v2 = vmax.f32 %v4340_v32, 0.0  ;;  %v4455_v16 = vmax.f32 %v4439_v51, 0.0  ;;  %v4438_v37 = vadd.f32 %v6942_v26, %v4413_v45 }
 0x792   : > { %v4812_v11 = vrot.slane %v4811_v60, 2  ;;  %v4804_v35 = vmax.f32 %v4802_v8, %v4803_v56  ;;  %v4824_v9 = vrot.slane %v4823_v24, 4  ;;  %v4820_v62 = vmax.f32 %v4818_v22, %v4819_v29  ;;  %v4375_v8 = vpop.permute.xlu0 %4374 }
 0x793   : > { %v4646_v47 = vmax.f32 %v4644_v25, %v4645_v49  ;;  %v4791_v40 = vmul.f32 %v6984_v59, %v4455_v16  ;;  %v4454_v1 = vmax.f32 %v4438_v37, 0.0  ;;  %v4412_v23 = vadd.f32 %v4369_v43, %v6986_v5 }
 0x794   : > { %v4813_v33 = vmax.f32 %v4811_v60, %v4812_v11  ;;  %v4805_v36 = vrot.slane %v4804_v35, 2  ;;  %v4825_v50 = vmax.f32 %v4823_v24, %v4824_v9  ;;  %v4821_v22 = vrot.slane %v4820_v62, 1 }
 0x795   : > { %v4663_v18 = vmax.f32 %v4661_v46, %v4662_v21  ;;  %v7133_v29 = vmax.f32 %v4682_v0, %v4683_v15  ;;  %v4844_v54 = vsel %vm4801_vm6, %v4791_v40, -inf  ;;  %v4790_v25 = vmul.f32 %v6961_v48, %v4454_v1 }
 0x796   : > { %v4814_v58 = vrot.slane %v4813_v33, 1  ;;  %v4806_v4 = vmax.f32 %v4804_v35, %v4805_v36  ;;  %v4826_v3 = vrot.slane %v4825_v50, 2  ;;  %v4437_v32 = vadd.f32 %v6942_v26, %v4412_v23  ;;  %v4379_v36 = vpop.permute.xlu1 %4378 }
 0x797   : > { %v4415_v56 = vadd.f32 %v7001_v57, %v4375_v8  ;;  %v4845_v11 = vrot.slane %v4844_v54, 4  ;;  %v4822_v24 = vmax.f32 %v4820_v62, %v4821_v22  ;;  %v4837_v5 = vsel %vm4801_vm6, %v4790_v25, -inf  ;;  %v4381_v62 = vpop.permute.xlu0 %4380 }
 0x798   : > { %v4807_v60 = vrot.slane %v4806_v4, 1  ;;  %v4827_v20 = vmax.f32 %v4825_v50, %v4826_v3  ;;  %v4815_v7 = vmax.f32 %v4813_v33, %v4814_v58  ;;  %v4453_v46 = vmax.f32 %v4437_v32, 0.0 }
 0x799   : > { %v4440_v0 = vadd.f32 %v6942_v26, %v4415_v56  ;;  %v4846_v35 = vmax.f32 %v4844_v54, %v4845_v11  ;;  %v4838_v9 = vrot.slane %v4837_v5, 4  ;;  %v7144_v48 = vsel %vm4930_vm5, %v4660_v19, %v7114_v31 }
 0x79a   : > { %v4808_v27 = vmax.f32 %v4806_v4, %v4807_v60  ;;  %v4828_v59 = vrot.slane %v4827_v20, 1  ;;  %v4574_v57 = vmul.f32 %v7051_v42, %v4356_v2  ;;  %v4789_v28 = vmul.f32 %v6965_v6, %v4453_v46  ;;  %v4383_v56 = vpop.permute.xlu1 %4382 }
 0x79b   : > { %v4456_v33 = vmax.f32 %v4440_v0, 0.0  ;;  %v7150_v51 = vsel %vm4930_vm5, %v4646_v47, %v7116_v10  ;;  %v4839_v15 = vmax.f32 %v4837_v5, %v4838_v9  ;;  %v4418_v50 = vadd.f32 %v7020_v39, %v4381_v62 }
 0x79c   : > { %v4963_v30 = vsel %vm4930_vm5, %v4815_v7, %v4808_v27  ;;  %v4829_v49 = vmax.f32 %v4827_v20, %v4828_v59  ;;  %v4830_v6 = vsel %vm4801_vm6, %v4789_v28, -inf  ;;  %v4664_v10 = vrot.slane %v4663_v18, 2  ;;  %v4377_v20 = vpop.permute.xlu0 %4376 }
 0x79d   : > { %v7154_v45 = vsel %vm1427_vm2, %v7084_v34, %v4963_v30  ;;  %v4792_v42 = vmul.f32 %v6980_v61, %v4456_v33  ;;  %v4847_v2 = vrot.slane %v4846_v35, 2  ;;  %v4840_v34 = vrot.slane %v4839_v15, 2 }
 0x79e   : > { %v4964_v21 = vsel %vm4930_vm5, %v4829_v49, %v4822_v24  ;;  %v4831_v16 = vrot.slane %v4830_v6, 4  ;;  %v4443_v47 = vadd.f32 %v6942_v26, %v4418_v50  ;;  %v4417_v58 = vadd.f32 %v4379_v36, %v7049_v38  ;;  %v4391_v33 = vpop.permute.xlu1 %4390 }
 0x79f   : > { %v7159_v31 = vsel %vm1427_vm2, %v7081_v63, %v4964_v21  ;;  %v4851_v37 = vsel %vm4801_vm6, %v4792_v42, -inf  ;;  %v4987_v63 = vmax.f32 %v7154_v45, 0.0  ;;  %v4841_v61 = vmax.f32 %v4839_v15, %v4840_v34  ;;  %v7386_v34 = vld [vmem:[#allocation8_spill] sm:$0xff] }
 0x7a0   : > { %v4988_v19 = vmax.f32 %v7159_v31, 0.0  ;;  %v4852_v3 = vrot.slane %v4851_v37, 4  ;;  %v4685_v39 = vrot.slane %v7133_v29, 2  ;;  %v4832_v43 = vmax.f32 %v4830_v6, %v4831_v16 }
 0x7a1   : > { %v4459_v22 = vmax.f32 %v4443_v47, 0.0  ;;  %v4442_v40 = vadd.f32 %v6942_v26, %v4417_v58  ;;  %v4668_v1 = vsel %vm1427_vm2, %v4574_v57, -inf  ;;  %v4848_v23 = vmax.f32 %v4846_v35, %v4847_v2 }
 0x7a2   : > { %v5003_v4 = vrot.slane %v4988_v19, 7  ;;  %v4853_v60 = vmax.f32 %v4851_v37, %v4852_v3  ;;  %v4833_v8 = vrot.slane %v4832_v43, 2  ;;  %v4416_v32 = vadd.f32 %v4377_v20, %v7029_v52  ;;  %v4389_v52 = vpop.permute.xlu0 %4388  ;;  %v4387_v3 = vpop.permute.xlu1 %4386 }
 0x7a3   : > { %v4795_v54 = vmul.f32 %v7040_v13, %v4459_v22  ;;  %v4458_v25 = vmax.f32 %v4442_v40, 0.0  ;;  %v7181_v7 = vmax.f32 %v4663_v18, %v4664_v10  ;;  %v4842_v27 = vrot.slane %v4841_v61, 1 }
 0x7a4   : > { %v7177_v38 = vsel %vm4930_vm5, %v5003_v4, %v4987_v63  ;;  %v4854_v59 = vrot.slane %v4853_v60, 2  ;;  %v4419_v11 = vadd.f32 %v7044_v17, %v4383_v56  ;;  %v4834_v24 = vmax.f32 %v4832_v43, %v4833_v8  ;;  %v7387_v43 = vld [vmem:[#allocation12_spill] sm:$0xff]  ;;  %v7389_v8 = vld [vmem:[#allocation6_spill] sm:$0xff] }
 0x7a5   : > { %v4872_v5 = vsel %vm4801_vm6, %v4795_v54, -inf  ;;  %v4794_v46 = vmul.f32 %v7007_v53, %v4458_v25  ;;  %v4441_v0 = vadd.f32 %v6942_v26, %v4416_v32  ;;  %v4849_v30 = vrot.slane %v4848_v23, 1 }
 0x7a6   : > { %v4855_v49 = vmax.f32 %v4853_v60, %v4854_v59  ;;  %v4873_v13 = vrot.slane %v4872_v5, 4  ;;  %v4444_v35 = vadd.f32 %v6942_v26, %v4419_v11  ;;  %v4669_v9 = vrot.slane %v4668_v1, 4  ;;  %v4385_v37 = vpop.permute.xlu0 %4384  ;;  %v7388_v60 = vld [vmem:[#allocation15_spill] sm:$0xff] }
 0x7a7   : > { %v4835_v18 = vrot.slane %v4834_v24, 1  ;;  %v4865_v57 = vsel %vm4801_vm6, %v4794_v46, -inf  ;;  %v4457_v28 = vmax.f32 %v4441_v0, 0.0  ;;  %v7190_v53 = vmax.f32 %v7133_v29, %v4685_v39 }
 0x7a8   : > { %v4856_v17 = vrot.slane %v4855_v49, 1  ;;  %v4874_v62 = vmax.f32 %v4872_v5, %v4873_v13  ;;  %v4866_v21 = vrot.slane %v4865_v57, 4  ;;  %v4460_v15 = vmax.f32 %v4444_v35, 0.0 }
 0x7a9   : > { %v4843_v36 = vmax.f32 %v4841_v61, %v4842_v27  ;;  %v4836_v6 = vmax.f32 %v4834_v24, %v4835_v18  ;;  %v4793_v42 = vmul.f32 %v7011_v44, %v4457_v28  ;;  %v4850_v50 = vmax.f32 %v4848_v23, %v4849_v30 }
 0x7aa   : > { %v4857_v10 = vmax.f32 %v4855_v49, %v4856_v17  ;;  %v4867_v2 = vmax.f32 %v4865_v57, %v4866_v21  ;;  %v4796_v16 = vmul.f32 %v7386_v34, %v4460_v15  ;;  %v4875_v58 = vrot.slane %v4874_v62, 2  ;;  %v7391_v21 = vld [vmem:[#allocation7_spill] sm:$0xff] }
 0x7ab   : > { %v4965_v47 = vsel %vm4930_vm5, %v4843_v36, %v4836_v6  ;;  %v4858_v4 = vsel %vm4801_vm6, %v4793_v42, -inf  ;;  %v4420_v29 = vadd.f32 %v4385_v37, %v7387_v43  ;;  %v4670_v61 = vmax.f32 %v4668_v1, %v4669_v9 }
 0x7ac   : > { %v7199_v44 = vsel %vm1427_vm2, %v7105_v12, %v4965_v47  ;;  %v4966_v39 = vsel %vm4930_vm5, %v4857_v10, %v4850_v50  ;;  %v4868_v22 = vrot.slane %v4867_v2, 2  ;;  %v4859_v40 = vrot.slane %v4858_v4, 4 }
 0x7ad   : > { %v4879_v23 = vsel %vm4801_vm6, %v4796_v16, -inf  ;;  %v4423_v20 = vadd.f32 %v7388_v60, %v4391_v33  ;;  %v4422_v54 = vadd.f32 %v7389_v8, %v4389_v52  ;;  %v4989_v25 = vmax.f32 %v7199_v44, 0.0  ;;  %v7390_v33 = vld [vmem:[#allocation10_spill] sm:$0xff]  ;;  %v4778_v43 = vpop.permute.xlu0 %4777 }
 0x7ae   : > { %v7208_v32 = vsel %vm1427_vm2, %v7096_v55, %v4966_v39  ;;  %v4880_v1 = vrot.slane %v4879_v23, 4  ;;  %v4421_v12 = vadd.f32 %v4387_v3, %v7111_v41  ;;  %v4876_v56 = vmax.f32 %v4874_v62, %v4875_v58 }
 0x7af   : > { %v4869_v27 = vmax.f32 %v4867_v2, %v4868_v22  ;;  %v4860_v59 = vmax.f32 %v4858_v4, %v4859_v40  ;;  %v4445_v11 = vadd.f32 %v6942_v26, %v4420_v29  ;;  %v4666_v24 = vrot.slane %v7181_v7, 1  ;;  %v4783_v22 = vpop.permute.xlu1 %4782 }
 0x7b0   : > { %v4671_v5 = vrot.slane %v4670_v61, 2  ;;  %v4881_v46 = vmax.f32 %v4879_v23, %v4880_v1  ;;  %v4446_v0 = vadd.f32 %v6942_v26, %v4421_v12  ;;  %v4447_v49 = vadd.f32 %v6942_v26, %v4422_v54 }
 0x7b1   : > { %v4861_v30 = vrot.slane %v4860_v59, 2  ;;  %v4461_v13 = vmax.f32 %v4445_v11, 0.0  ;;  %v4990_v55 = vmax.f32 %v7208_v32, 0.0  ;;  %v4448_v41 = vadd.f32 %v6942_v26, %v4423_v20 }
 0x7b2   : > { %v4882_v35 = vrot.slane %v4881_v46, 2  ;;  %v4462_v52 = vmax.f32 %v4446_v0, 0.0  ;;  %v5005_v9 = vrot.slane %v4989_v25, 6  ;;  %v4877_v18 = vrot.slane %v4876_v56, 1 }
 0x7b3   : > { %v4870_v57 = vrot.slane %v4869_v27, 1  ;;  %v4862_v28 = vmax.f32 %v4860_v59, %v4861_v30  ;;  %v4797_v17 = vmul.f32 %v7390_v33, %v4461_v13  ;;  %v5008_v6 = vrot.slane %v4990_v55, 5 }
 0x7b4   : > { %v4883_v62 = vmax.f32 %v4881_v46, %v4882_v35  ;;  %v4798_v15 = vmul.f32 %v7391_v21, %v4462_v52  ;;  %v5007_v36 = vsel %vm5006_vm7, %v5005_v9, %v7177_v38  ;;  %v4672_v42 = vmax.f32 %v4670_v61, %v4671_v5 }
 0x7b5   : > { %v4863_v26 = vrot.slane %v4862_v28, 1  ;;  %v4886_v50 = vsel %vm4801_vm6, %v4797_v17, -inf  ;;  %v4463_v10 = vmax.f32 %v4447_v49, 0.0  ;;  %v5010_v37 = vsel %vm5009_vm8, %v5008_v6, %v5007_v36 }
 0x7b6   : > { %v4884_v2 = vrot.slane %v4883_v62, 1  ;;  %v4893_v34 = vsel %vm4801_vm6, %v4798_v15, -inf  ;;  %v4887_v16 = vrot.slane %v4886_v50, 4  ;;  %v4871_v47 = vmax.f32 %v4869_v27, %v4870_v57 }
 0x7b7   : > { %v4864_v58 = vmax.f32 %v4862_v28, %v4863_v26  ;;  %v4894_v4 = vrot.slane %v4893_v34, 4  ;;  %v4464_v3 = vmax.f32 %v4448_v41, 0.0  ;;  %v4878_v38 = vmax.f32 %v4876_v56, %v4877_v18 }
 0x7b8   : > { %v4885_v29 = vmax.f32 %v4883_v62, %v4884_v2  ;;  %v4888_v39 = vmax.f32 %v4886_v50, %v4887_v16  ;;  %v4799_v61 = vmul.f32 %v4778_v43, %v4463_v10  ;;  %v4673_v40 = vrot.slane %v4672_v42, 1 }
 0x7b9   : > { %v4967_v23 = vsel %vm4930_vm5, %v4871_v47, %v4864_v58  ;;  %v4895_v60 = vmax.f32 %v4893_v34, %v4894_v4  ;;  %v4800_v20 = vmul.f32 %v4783_v22, %v4464_v3  ;;  %v4687_v49 = vrot.slane %v7190_v53, 1 }
 0x7ba   : > { %v4968_v8 = vsel %vm4930_vm5, %v4885_v29, %v4878_v38  ;;  %v4889_v54 = vrot.slane %v4888_v39, 2  ;;  %v4900_v1 = vsel %vm4801_vm6, %v4799_v61, -inf  ;;  %v4983_v12 = vsel %vm1427_vm2, %v7150_v51, %v4967_v23 }
 0x7bb   : > { %v4896_v27 = vrot.slane %v4895_v60, 2  ;;  %v4907_v56 = vsel %vm4801_vm6, %v4800_v20, -inf  ;;  %v4901_v59 = vrot.slane %v4900_v1, 4  ;;  %v4984_v11 = vsel %vm1427_vm2, %v7144_v48, %v4968_v8  ;;  %v7392_v20 = vld [vmem:[#allocation13_spill] sm:$0xff] }
 0x7bc   : > { %v4890_v5 = vmax.f32 %v4888_v39, %v4889_v54  ;;  %v4908_v46 = vrot.slane %v4907_v56, 4  ;;  %v4991_v0 = vmax.f32 %v4983_v12, 0.0  ;;  %v4992_v30 = vmax.f32 %v4984_v11, 0.0  ;;  %v5043_v54 = vld [vmem:[%s7326_s12] sm:$0x3] }
 0x7bd   : > { %v4897_v13 = vmax.f32 %v4895_v60, %v4896_v27  ;;  %v4902_v35 = vmax.f32 %v4900_v1, %v4901_v59  ;;  %v4674_v41 = vmax.f32 %v4672_v42, %v4673_v40  ;;  %v4667_v48 = vmax.f32 %v7181_v7, %v4666_v24  ;;  %v7393_v1 = vld [vmem:[#allocation14_spill] sm:$0xff] }
 0x7be   : > { %v4891_v52 = vrot.slane %v4890_v5, 1  ;;  %v4909_v9 = vmax.f32 %v4907_v56, %v4908_v46  ;;  %v5011_v57 = vrot.slane %v4991_v0, 4  ;;  %v5014_v28 = vrot.slane %v4992_v30, 3 }
 0x7bf   : > { %v4898_v51 = vrot.slane %v4897_v13, 1  ;;  %v4903_v18 = vrot.slane %v4902_v35, 2  ;;  %v5024_v33 = vrot.slane %v4987_v63, 1  ;;  %v5026_v36 = vrot.slane %v4989_v25, 7 }
 0x7c0   : > { %v4892_v17 = vmax.f32 %v4890_v5, %v4891_v52  ;;  %v4910_v62 = vrot.slane %v4909_v9, 2  ;;  %v5013_v6 = vsel %vm5012_vm9, %v5011_v57, %v5010_v37  ;;  %v4680_v42 = vrot.slane %v7126_v14, 1 }
 0x7c1   : > { %v4899_v21 = vmax.f32 %v4897_v13, %v4898_v51  ;;  %v4904_v15 = vmax.f32 %v4902_v35, %v4903_v18  ;;  %v5016_v50 = vsel %vm5015_vm10, %v5014_v28, %v5013_v6  ;;  %v4688_v10 = vmax.f32 %v7190_v53, %v4687_v49 }
 0x7c2   : > { %v4911_v26 = vmax.f32 %v4909_v9, %v4910_v62  ;;  %v4937_v7 = vsel %vm4930_vm5, %v4674_v41, %v4667_v48  ;;  %v5025_v44 = vsel %vm4930_vm5, %v4988_v19, %v5024_v33  ;;  %v5028_v25 = vrot.slane %v4990_v55, 6 }
 0x7c3   : > { %v4905_v45 = vrot.slane %v4904_v15, 1  ;;  %v4969_v63 = vsel %vm4930_vm5, %v4899_v21, %v4892_v17  ;;  %v5027_v37 = vsel %vm5006_vm7, %v5026_v36, %v5025_v44  ;;  %v5030_v53 = vrot.slane %v4991_v0, 5 }
 0x7c4   : > { %v4912_v24 = vrot.slane %v4911_v26, 1  ;;  %v4985_v2 = vsel %vm1427_vm2, %v4937_v7, %v4969_v63  ;;  %v4681_v47 = vmax.f32 %v7126_v14, %v4680_v42  ;;  %v5029_v31 = vsel %vm5009_vm8, %v5028_v25, %v5027_v37 }
 0x7c5   : > { %v4906_v34 = vmax.f32 %v4904_v15, %v4905_v45  ;;  %v4993_v16 = vmax.f32 %v4985_v2, 0.0  ;;  %v5032_v19 = vrot.slane %v4992_v30, 4  ;;  %v5031_v55 = vsel %vm5012_vm9, %v5030_v53, %v5029_v31  ;;  %v5357_v30 = vld [vmem:[%s7327_s13] ss:$0 sm:$0xff] }
 0x7c6   : > { %v4913_v58 = vmax.f32 %v4911_v26, %v4912_v24  ;;  %v4938_v43 = vsel %vm4930_vm5, %v4688_v10, %v4681_v47  ;;  %v5062_v8 = vsub.s32 1, %v7392_v20  ;;  %v5048_v12 = vrot.slane %v5043_v54, %v7393_v1 }
 0x7c7   : > { %v5017_v4 = vrot.slane %v4993_v16, 2  ;;  %v5034_v38 = vrot.slane %v4993_v16, 3  ;;  %v5033_v14 = vsel %vm5015_vm10, %v5032_v19, %v5031_v55 }
 0x7c8   : > { %v4970_v3 = vsel %vm4930_vm5, %v4913_v58, %v4906_v34  ;;  %v5063_v27 = vrot.slane %v5043_v54, %v5062_v8 }
 0x7c9   : > { %v4986_v32 = vsel %vm1427_vm2, %v4938_v43, %v4970_v3  ;;  %v5019_v29 = vsel %vm5018_vm11, %v5017_v4, %v5016_v50  ;;  %v5035_v40 = vsel %vm5018_vm11, %v5034_v38, %v5033_v14 }
 0x7ca   : > { %v4994_v39 = vmax.f32 %v4986_v32, 0.0 }
 0x7cc   : > { %v5036_v22 = vrot.slane %v4994_v39, 2  ;;  %v5020_v61 = vrot.slane %v4994_v39, 1 }
 0x7ce   : > { %v5037_v23 = vsel %vm5021_vm12, %v5036_v22, %v5035_v40  ;;  %v5022_v60 = vsel %vm5021_vm12, %v5020_v61, %v5019_v29 }
 0x7cf   : > { %5038 = vrot.lane.b32.xlu0 %v5037_v23, %s5996_s22  ;;  %s5359_s22 = sshll.u32 %s6099_s7, 7  ;;  %s5999_s7 = smov [#allocation3]  }
 0x7d0   : > { %s5933_s21 = sshll.u32 %s5999_s7, 4  ;;  %s5934_s21 = int_to_ptr.vmem [resolvable:$false] %s5933_s21 }
 0x7d1   : > { %s5935_s2 = scalar_lea.vmem %s5934_s21, 256  ;;  %p5936_p1 = scmp.lt.s32.totalorder %s5118_s26, %s5934_s21 }
 0x7d2   : > { %p5937_p2 = scmp.lt.s32.totalorder %s5935_s2, %s5929_s1 }
 0x7d4   : > { %p5938_p3 = por %p5937_p2, %p5936_p1 }
 0x7d6   : > { %p5939_p4 = pnand %p5938_p3, %p5932_p0 }
 0x841   : > { %v5039_v56 = vpop.permute.xlu0 %5038 }
 0x842   : > { %v5042_v59 = vsel %vm5041_vm13, %v5022_v60, %v5039_v56 }
 0x843   : > { %v5049_v11 = vmul.f32 %v5048_v12, %v5042_v59  ;;  %v5064_v5 = vmul.f32 %v5063_v27, %v5042_v59 }
 0x845   : > { %v5065_v46 = vsel %vm625_vm0, %v5064_v5, 0.0  ;;  %v5050_v0 = vsel %vm625_vm0, %v5049_v11, 0.0 }
 0x846   : > { %5066 = vadd.xlane.f32.xlu1 %v5065_v46  ;;  %5051 = vadd.xlane.f32.xlu0 %v5050_v0 }
 0x8cf   : > { %v5067_v49 = vpop.xlane.xlu1 %5066  ;;  %v5052_v35 = vpop.xlane.xlu0 %5051 }
 0x8d0   : > { %v5068_v13 = vadd.f32 %v5357_v30, %v5067_v49  ;;  %v5059_v41 = vadd.f32 %v5357_v30, %v5052_v35 }
 0x8d2   : > { %5070 = vrot.lane.b32.xlu0 %v5068_v13, %s5997_s19 }
 0x944   : > { %v5071_v52 = vpop.permute.xlu0 %5070 }
 0x945   : > { %v5073_v9 = vmax.f32 %v5059_v41, %v5071_v52 }
 0x947   : > { %5078 = vrot.lane.b32.xlu1 %v5073_v9, %s5998_s0  ;;  %v5074_v48 = vsub.f32 %v5059_v41, %v5073_v9 }
 0x949   : > { %v5075_v33 = vmul.f32 1.442695, %v5074_v48 }
 0x9b9   : > { %v5079_v51 = vpop.permute.xlu1 %5078 }
 0x9ba   : > { %v5081_v18 = vsub.f32 %v5068_v13, %v5079_v51 }
 0x9bc   : > { %v5082_v57 = vmul.f32 1.442695, %v5081_v18 }
 0x9be   : > { %5923 = vpow2.f32 %v5082_v57 }
 0x9bf   : > { %5925 = vpow2.f32 %v5075_v33 }
 0x9cb   : > { %v5924_v28 = vpop.eup %5923 }
 0x9cc   : > { %5085 = vrot.lane.b32.xlu1 %v5924_v28, %s5997_s19  ;;  %v5926_v17 = vpop.eup %5925  ;;  %s7279_s19 = scalar_lea.hbm %s7328_s14, %s5359_s22 }
 0xa3e   : > { %v5086_v62 = vpop.permute.xlu1 %5085 }
 0xa3f   : > { %v5088_v21 = vadd.f32 %v5926_v17, %v5086_v62 }
 0xa41   : > { %5927 = vlog2.f32 %v5088_v21 }
 0xa4e   : > { %v5928_v15 = vpop.eup %5927 }
 0xa4f   : > { %v5090_v36 = vmul.f32 0.6931472, %v5928_v15 }
 0xa51   : > { %v5091_v6 = vadd.f32 %v5090_v36, %v5073_v9 }
 0xa53   : > { %5094 = vrot.lane.b32.xlu0 %v5091_v6, %s5998_s0  ;;  %v5092_v26 = vsub.f32 %v5059_v41, %v5091_v6  ;;  %s5104_s0 = scalar_lea.sflag [#allocation4], %s521_s30 }
 0xac5   : > { %v5095_v42 = vpop.permute.xlu0 %5094 }
 0xac6   : > { %v5097_v50 = vsub.f32 %v5068_v13, %v5095_v42 }
 0xac8   : > { %v5099_v10 = vsel %vm5098_vm14, %v5092_v26, %v5097_v50 }
 0xac9   : > { %v5101_v7 = vsel %vm5100_vm15, %v5099_v10, 0.0 }
 0xaca   : > { %5102 = vst [vmem:[%s523_s28] sm:$0xff] %v5101_v7 }
 0xacb   : > { %5942 = shalt.err (!%p5939_p4)
}
 0xacc   : > { %s5943_s22 = scalar_lea.hbm %s7279_s19, 128  ;;  %s5947_s27 = scalar_lea.hbm %s7328_s14, 256 }
 0xacd   : > { %p5944_p7 = scmp.ne.s32.totalorder %s7279_s19, %s5943_s22  ;;  %p5948_p10 = scmp.lt.s32.totalorder %s7279_s19, %s7328_s14 }
 0xace   : > { %p5949_p11 = scmp.lt.s32.totalorder %s5947_s27, %s5943_s22 }
 0xacf   : > { %p5945_p8 = pnand %p5944_p7, %p6116_p5 }
 0xad0   : > { %p5950_p12 = por %p5949_p11, %p5948_p10 }
 0xad1   : > { %p5946_p9 = pneg %p5945_p8 }
 0xad3   : > { %p5951_p13 = pnand %p5950_p12, %p5946_p9 }
 0xad5   : > { %5954 = shalt.err (!%p5951_p13)
}
 0xad6   : > { %5688 = dma.vmem_to_hbm [thread:$0]  (%p6116_p5), %s5118_s26, 128, %s7279_s19, %s5104_s0  }
 0xad7 PF: > { %p5694_p0 = scmp.ge.s32.totalorder %s5989_s18, 2  ;;  %s5129_s1 = sand.u32 1, %s5977_s15  }
 0xad8   : > { %s5130_s2 = scalar_lea.sflag [#allocation4], %s5129_s1 }
 0xad9   : > { %p5691_p1 = pnand %p5694_p0, %p6120_p6 }
 0xadb   : > { %p5692_p2 = pneg %p5691_p1 }
 0xadd   : > { %5972 = dma.done.wait (%p5692_p2), %s5130_s2, 128  }
 0xade   : > { %5974 = vsyncadd (%p5692_p2), %s5130_s2, 4294967168  ;;  %p26_p3 = scmp.ge.s32.totalorder %s6103_s20, 4   ;;  %s7394_s15 = smov %s5981_s16 }
 0xadf   : > { %s7395_s16 = smov %s5985_s17  ;;  %s7396_s17 = smov %s6114_s23 }
 0xae0   : > { %s7397_s18 = smov %s6103_s20  ;;  %28 = sbr.rel (!%p26_p3) target bundleno = 7 (0x7), region = 123 }
 0xae5   :  { %5135 = vsyncpa [#allocation4], 1 }
 0xae6   :  { %5137 = vsyncpa [#allocation4 + $0x1], 1 }

</bundles_post_ra>
